<compile_context>
chip_gen: v7x
topology: tpu7x:2x2x1
jax: 0.10.0
libtpu: 0.0.40
codegen_flags: <defaults>
</compile_context>

<pallas_src>
import jax
import jax.numpy as jnp
from jax import lax
from jax.experimental import pallas as pl
from jax.experimental.pallas import tpu as pltpu

BN_EPS = 1e-5


# ----------------------------------------------------------------------------
# Pallas kernel 1: polyphase ConvTranspose2d(4, 2, 1) + folded BN + ReLU
# ----------------------------------------------------------------------------
def _deconv_bn_relu_kernel(x_ref, w_ref, s_ref, b_ref, o_ref):
    # x_ref: (1, H+2, W+2, Cin)   zero-padded (by 1) un-dilated input, NHWC
    # w_ref: (2, 2, 4*Cin, Cout)  per-phase weights, contraction order (dh, dw, ci)
    # s_ref, b_ref: (1, Cout)     folded BatchNorm scale / bias
    # o_ref: (1, 2H, W, 2*Cout)   == (2H, 2W, Cout) after a pure reshape in the wrapper
    H = o_ref.shape[1] // 2
    W = o_ref.shape[2]
    Cout = o_ref.shape[3] // 2
    Cin = x_ref.shape[3]

    x = x_ref[0]                       # (H+2, W+2, Cin)
    scale = s_ref[...]                 # (1, Cout)
    bias = b_ref[...]

    # Column-shifted concats shared across the two row phases:
    #   xcol[rw][h, b, dw*Cin + ci] = x[h, b + rw + dw, ci]
    xcol = [jnp.concatenate([x[:, o:o + W, :], x[:, o + 1:o + 1 + W, :]], axis=-1)
            for o in (0, 1)]           # each (H+2, W, 2*Cin)

    rows = []
    for rh in range(2):                # static unroll over the 2x2 output phases
        phases = []
        for rw in range(2):
            xc = xcol[rw]
            # patch[(a, b), (dh, dw, ci)] = x_pad[a + rh + dh, b + rw + dw, ci]
            patch = jnp.concatenate([xc[rh:rh + H], xc[rh + 1:rh + 1 + H]], axis=-1)
            patch = patch.reshape(H * W, 4 * Cin)
            y = jnp.dot(patch, w_ref[rh, rw],                 # one matmul per phase
                        preferred_element_type=jnp.float32)   # K = 4*Cin
            phases.append(jnp.maximum(y * scale + bias, 0.0))  # folded BN + ReLU
        # Pack the two rw phases along channels -> (H, W, 2*Cout); a later reshape
        # of the last two dims to (2W, Cout) gives the W-interleaved output.
        rows.append(jnp.concatenate(phases, axis=-1).reshape(H, W, 2 * Cout))
    # Interleave the two rh phases along rows (leading-dim merge, no relayout).
    out = jnp.stack(rows, axis=1).reshape(2 * H, W, 2 * Cout)
    o_ref[...] = out.reshape(1, 2 * H, W, 2 * Cout).astype(o_ref.dtype)


def _deconv_bn_relu(x_pad, w_phase, scale, bias, H, W, Cout):
    N, Hp, Wp, Cin = x_pad.shape
    out = pl.pallas_call(
        _deconv_bn_relu_kernel,
        out_shape=jax.ShapeDtypeStruct((N, 2 * H, W, 2 * Cout), jnp.float32),
        grid=(N,),
        in_specs=[
            pl.BlockSpec((1, Hp, Wp, Cin), lambda n: (n, 0, 0, 0)),
            pl.BlockSpec((2, 2, 4 * Cin, Cout), lambda n: (0, 0, 0, 0)),
            pl.BlockSpec((1, Cout), lambda n: (0, 0)),
            pl.BlockSpec((1, Cout), lambda n: (0, 0)),
        ],
        out_specs=pl.BlockSpec((1, 2 * H, W, 2 * Cout), lambda n: (n, 0, 0, 0)),
        compiler_params=pltpu.CompilerParams(dimension_semantics=("parallel",)),
    )(x_pad, w_phase, scale, bias)
    # Pure reshape: (N, 2H, W, 2*Cout) -> (N, 2H, 2W, Cout) (phase de-interleave).
    return out.reshape(N, 2 * H, 2 * W, Cout)


# ----------------------------------------------------------------------------
# Pallas kernel 2: three fused 3x3 conv + folded BN + ReLU layers (256ch)
# Intermediate activations stay in VMEM scratch; one im2col matmul per layer
# with contraction depth 9*C.
# ----------------------------------------------------------------------------
def _final3_bn_relu_kernel(x_ref, w_ref, s_ref, b_ref, o_ref, buf_ref):
    # x_ref: (1, H+2, W+2, C)  zero-padded input
    # w_ref: (3, 9*C, C)       im2col weights, contraction order (kh, kw, ci)
    # s_ref, b_ref: (3, 1, C)  folded BN scale / bias per layer
    # o_ref: (1, H, W, C)
    # buf_ref: VMEM (H+2, W+2, C) scratch holding the padded intermediate activation
    _, H, W, C = o_ref.shape

    buf_ref[...] = jnp.zeros_like(buf_ref)   # zero border once per grid step

    def im2col(xp):                          # xp: (H+2, W+2, C) value
        cols = [xp[kh:kh + H, kw:kw + W, :] for kh in range(3) for kw in range(3)]
        return jnp.concatenate(cols, axis=-1).reshape(H * W, 9 * C)

    x = x_ref[0]
    for layer in range(3):                   # static unroll, all data stays in VMEM
        y = jnp.dot(im2col(x), w_ref[layer], preferred_element_type=jnp.float32)
        y = jnp.maximum(y * s_ref[layer] + b_ref[layer], 0.0)
        if layer < 2:
            buf_ref[1:H + 1, 1:W + 1, :] = y.reshape(H, W, C)
            x = buf_ref[...]
        else:
            o_ref[...] = y.reshape(1, H, W, C).astype(o_ref.dtype)


def _final3_bn_relu(x_pad, w3, s3, b3, H, W, C):
    # VMEM budget (H=W=16, C=256, f32): weights 3*9*256*256*4B = 6.75MB (x2 buf),
    # in 2*324KB, out 2*256KB, scratch 324KB, im2col temp ~2.4MB  => ~20MB,
    # well under the 64MiB of a v7x TensorCore; limit set explicitly below.
    N = x_pad.shape[0]
    Hp, Wp = x_pad.shape[1], x_pad.shape[2]
    return pl.pallas_call(
        _final3_bn_relu_kernel,
        out_shape=jax.ShapeDtypeStruct((N, H, W, C), jnp.float32),
        grid=(N,),
        in_specs=[
            pl.BlockSpec((1, Hp, Wp, C), lambda n: (n, 0, 0, 0)),
            pl.BlockSpec((3, 9 * C, C), lambda n: (0, 0, 0)),
            pl.BlockSpec((3, 1, C), lambda n: (0, 0, 0)),
            pl.BlockSpec((3, 1, C), lambda n: (0, 0, 0)),
        ],
        out_specs=pl.BlockSpec((1, H, W, C), lambda n: (n, 0, 0, 0)),
        scratch_shapes=[pltpu.VMEM((Hp, Wp, C), jnp.float32)],
        compiler_params=pltpu.CompilerParams(
            dimension_semantics=("parallel",),
            vmem_limit_bytes=48 * 1024 * 1024),
    )(x_pad, w3, s3, b3)


# ----------------------------------------------------------------------------
# Hoisted weight preprocessing (done once, outside the forward hot path)
# ----------------------------------------------------------------------------
def _fold_bn(gamma, beta, mean, var, conv_bias=None):
    scale = gamma / jnp.sqrt(var + BN_EPS)
    bias = beta - mean * scale
    if conv_bias is not None:
        bias = bias + conv_bias * scale
    return scale, bias


def _prep_deconv_weight(w):
    # w: (Cin, Cout, 4, 4) PyTorch ConvTranspose2d layout ->
    # (2, 2, 4*Cin, Cout) per-phase weights with contraction order (dh, dw, ci):
    #   w_phase[rh, rw, (dh*2+dw)*Cin + ci, co] = w[ci, co, 3-rh-2*dh, 3-rw-2*dw]
    Cin, Cout = w.shape[0], w.shape[1]
    phases = []
    for rh in range(2):
        row = []
        for rw in range(2):
            taps = []
            for dh in range(2):
                for dw in range(2):
                    taps.append(w[:, :, 3 - rh - 2 * dh, 3 - rw - 2 * dw])  # (Cin, Cout)
            row.append(jnp.stack(taps, axis=0))          # (4, Cin, Cout)
        phases.append(jnp.stack(row, axis=0))            # (2, 4, Cin, Cout)
    return jnp.stack(phases, axis=0).reshape(2, 2, 4 * Cin, Cout)


def prepare_unet_params(params):
    prepped = {"deconv": [], "final": None}
    for p in params["deconv"]:
        Cout = p["w"].shape[1]
        scale, bias = _fold_bn(p["gamma"], p["beta"], p["mean"], p["var"])
        prepped["deconv"].append(dict(
            w=_prep_deconv_weight(p["w"]),
            scale=scale.reshape(1, Cout),
            bias=bias.reshape(1, Cout)))
    if params["final"]:
        ws, ss, bs = [], [], []
        for p in params["final"]:
            C = p["w"].shape[0]
            Cin = p["w"].shape[1]
            # OIHW -> (kh, kw, ci, co) -> (9*Cin, Cout) im2col weight.
            ws.append(jnp.transpose(p["w"], (2, 3, 1, 0)).reshape(9 * Cin, C))
            s, b = _fold_bn(p["gamma"], p["beta"], p["mean"], p["var"], conv_bias=p["b"])
            ss.append(s.reshape(1, C))
            bs.append(b.reshape(1, C))
        prepped["final"] = dict(w=jnp.stack(ws), s=jnp.stack(ss), b=jnp.stack(bs))
    return prepped


# ----------------------------------------------------------------------------
# Parameter init (matches the PyTorch module's structure) and forward pass
# ----------------------------------------------------------------------------
def init_unet_params(key, inplanes, outplanes, num_stages, use_final_layers):
    params = {"deconv": [], "final": []}
    cin = inplanes
    for _ in range(num_stages):
        key, k1, k2, k3, k4, k5 = jax.random.split(key, 6)
        params["deconv"].append(dict(
            w=0.1 * jax.random.normal(k1, (cin, outplanes, 4, 4), jnp.float32),  # IOHW
            gamma=1.0 + 0.1 * jax.random.normal(k2, (outplanes,), jnp.float32),
            beta=0.1 * jax.random.normal(k3, (outplanes,), jnp.float32),
            mean=0.1 * jax.random.normal(k4, (outplanes,), jnp.float32),
            var=0.5 + jax.random.uniform(k5, (outplanes,), jnp.float32),
        ))
        cin = outplanes
    if use_final_layers:
        # NOTE: the PyTorch module hardcodes 256 in/out channels for the final
        # convs, so this branch is only shape-consistent when outplanes == 256.
        for _ in range(3):
            key, k1, k2, k3, k4, k5, k6 = jax.random.split(key, 7)
            params["final"].append(dict(
                w=0.05 * jax.random.normal(k1, (256, 256, 3, 3), jnp.float32),   # OIHW
                b=0.05 * jax.random.normal(k2, (256,), jnp.float32),
                gamma=1.0 + 0.1 * jax.random.normal(k3, (outplanes,), jnp.float32),
                beta=0.1 * jax.random.normal(k4, (outplanes,), jnp.float32),
                mean=0.1 * jax.random.normal(k5, (outplanes,), jnp.float32),
                var=0.5 + jax.random.uniform(k6, (outplanes,), jnp.float32),
            ))
    return params


def unet_forward_pallas(prepped, x_nchw):
    # TODO(synk): BatchNorm is reproduced in eval mode (running stats folded into
    # scale/bias); training-mode batch statistics are not computed.
    x = jnp.transpose(x_nchw, (0, 2, 3, 1)).astype(jnp.float32)     # NCHW -> NHWC
    for st in prepped["deconv"]:
        N, H, W, _ = x.shape
        Cout = st["w"].shape[-1]
        x_pad = jnp.pad(x, ((0, 0), (1, 1), (1, 1), (0, 0)))        # un-dilated, pad 1
        x = _deconv_bn_relu(x_pad, st["w"], st["scale"], st["bias"], H, W, Cout)
    if prepped["final"] is not None:
        N, H, W, C = x.shape
        x_pad = jnp.pad(x, ((0, 0), (1, 1), (1, 1), (0, 0)))
        x = _final3_bn_relu(x_pad, prepped["final"]["w"], prepped["final"]["s"],
                            prepped["final"]["b"], H, W, C)
    return jnp.transpose(x, (0, 3, 1, 2))                           # NHWC -> NCHW


# Pure-JAX reference (XLA conv) used only for the correctness check.
def unet_forward_ref(params, x_nchw):
    x = x_nchw.astype(jnp.float32)
    for p in params["deconv"]:
        w_oihw = jnp.transpose(p["w"][:, :, ::-1, ::-1], (1, 0, 2, 3))
        y = lax.conv_general_dilated(
            x, w_oihw, window_strides=(1, 1), padding=((2, 2), (2, 2)),
            lhs_dilation=(2, 2), dimension_numbers=("NCHW", "OIHW", "NCHW"),
            precision=lax.Precision.HIGHEST)
        scale, bias = _fold_bn(p["gamma"], p["beta"], p["mean"], p["var"])
        x = jnp.maximum(y * scale[None, :, None, None] + bias[None, :, None, None], 0.0)
    for p in params["final"]:
        y = lax.conv_general_dilated(
            x, p["w"], window_strides=(1, 1), padding=((1, 1), (1, 1)),
            dimension_numbers=("NCHW", "OIHW", "NCHW"),
            precision=lax.Precision.HIGHEST)
        scale, bias = _fold_bn(p["gamma"], p["beta"], p["mean"], p["var"],
                               conv_bias=p["b"])
        x = jnp.maximum(y * scale[None, :, None, None] + bias[None, :, None, None], 0.0)
    return x


if __name__ == "__main__":
    key = jax.random.PRNGKey(0)
    kx1, kp1, kx2, kp2 = jax.random.split(key, 4)

    fwd = jax.jit(unet_forward_pallas)

    # Config 1: UNet(inplanes=4, outplanes=8, num_stages=2, use_final_layers=False)
    params1 = init_unet_params(kp1, inplanes=4, outplanes=8, num_stages=2,
                               use_final_layers=False)
    prep1 = prepare_unet_params(params1)          # weight prep hoisted out of the forward
    x1 = jax.random.normal(kx1, (2, 4, 8, 8), jnp.float32)          # NCHW
    out1 = jax.block_until_ready(fwd(prep1, x1))
    ref1 = unet_forward_ref(params1, x1)
    assert out1.shape == (2, 8, 32, 32), out1.shape
    assert jnp.allclose(out1, ref1, rtol=1e-2, atol=1e-2), \
        float(jnp.max(jnp.abs(out1 - ref1)))

    # Config 2: UNet(inplanes=4, outplanes=256, num_stages=1, use_final_layers=True)
    params2 = init_unet_params(kp2, inplanes=4, outplanes=256, num_stages=1,
                               use_final_layers=True)
    prep2 = prepare_unet_params(params2)
    x2 = jax.random.normal(kx2, (2, 4, 8, 8), jnp.float32)          # NCHW
    out2 = jax.block_until_ready(fwd(prep2, x2))
    ref2 = unet_forward_ref(params2, x2)
    assert out2.shape == (2, 256, 16, 16), out2.shape
    assert jnp.allclose(out2, ref2, rtol=1e-2, atol=1e-2), \
        float(jnp.max(jnp.abs(out2 - ref2)))

    print("KERNEL_OK")
</pallas_src>

<mosaic_0001>
module attributes {stable_mosaic.version = 11 : i64} {
  func.func @_deconv_bn_relu_kernel(%arg0: i32, %arg1: memref<1x10x10x4xf32, #tpu.memory_space<vmem>>, %arg2: memref<2x2x16x8xf32, #tpu.memory_space<vmem>>, %arg3: memref<1x8xf32, #tpu.memory_space<vmem>>, %arg4: memref<1x8xf32, #tpu.memory_space<vmem>>, %arg5: memref<1x16x8x16xf32, #tpu.memory_space<vmem>>) attributes {dimension_semantics = [#tpu.dimension_semantics<parallel>], iteration_bounds = array<i64: 2>, scalar_prefetch = 0 : i64, scratch_operands = 0 : i64, tpu.core_type = #tpu.core_type<tc>, window_params = [{transform_indices = @transform_0, window_bounds = array<i64: 1, 10, 10, 4>}, {pipeline_mode = #tpu.pipeline_mode<synchronous>, transform_indices = @transform_1, window_bounds = array<i64: 2, 2, 16, 8>}, {pipeline_mode = #tpu.pipeline_mode<synchronous>, transform_indices = @transform_2, window_bounds = array<i64: 1, 8>}, {pipeline_mode = #tpu.pipeline_mode<synchronous>, transform_indices = @transform_3, window_bounds = array<i64: 1, 8>}, {transform_indices = @transform_4, window_bounds = array<i64: 1, 16, 8, 16>}]} {
    %c0 = arith.constant 0 : index
    %c0_0 = arith.constant 0 : index
    %c0_1 = arith.constant 0 : index
    %c0_2 = arith.constant 0 : index
    %0 = vector.load %arg1[%c0, %c0_0, %c0_1, %c0_2] : memref<1x10x10x4xf32, #tpu.memory_space<vmem>>, vector<1x10x10x4xf32>
    %1 = vector.shape_cast %0 : vector<1x10x10x4xf32> to vector<10x10x4xf32>
    %c0_3 = arith.constant 0 : index
    %c0_4 = arith.constant 0 : index
    %2 = vector.load %arg3[%c0_3, %c0_4] : memref<1x8xf32, #tpu.memory_space<vmem>>, vector<1x8xf32>
    %c0_5 = arith.constant 0 : index
    %c0_6 = arith.constant 0 : index
    %3 = vector.load %arg4[%c0_5, %c0_6] : memref<1x8xf32, #tpu.memory_space<vmem>>, vector<1x8xf32>
    %4 = vector.extract_strided_slice %1 {offsets = [0, 0, 0], sizes = [10, 8, 4], strides = [1, 1, 1]} : vector<10x10x4xf32> to vector<10x8x4xf32>
    %5 = vector.extract_strided_slice %1 {offsets = [0, 1, 0], sizes = [10, 8, 4], strides = [1, 1, 1]} : vector<10x10x4xf32> to vector<10x8x4xf32>
    %6 = tpu.concatenate %4, %5 in 2 : vector<10x8x4xf32>, vector<10x8x4xf32> -> vector<10x8x8xf32>
    %7 = vector.extract_strided_slice %1 {offsets = [0, 1, 0], sizes = [10, 8, 4], strides = [1, 1, 1]} : vector<10x10x4xf32> to vector<10x8x4xf32>
    %8 = vector.extract_strided_slice %1 {offsets = [0, 2, 0], sizes = [10, 8, 4], strides = [1, 1, 1]} : vector<10x10x4xf32> to vector<10x8x4xf32>
    %9 = tpu.concatenate %7, %8 in 2 : vector<10x8x4xf32>, vector<10x8x4xf32> -> vector<10x8x8xf32>
    %10 = vector.extract_strided_slice %6 {offsets = [0, 0, 0], sizes = [8, 8, 8], strides = [1, 1, 1]} : vector<10x8x8xf32> to vector<8x8x8xf32>
    %11 = vector.extract_strided_slice %6 {offsets = [1, 0, 0], sizes = [8, 8, 8], strides = [1, 1, 1]} : vector<10x8x8xf32> to vector<8x8x8xf32>
    %12 = tpu.concatenate %10, %11 in 2 : vector<8x8x8xf32>, vector<8x8x8xf32> -> vector<8x8x16xf32>
    %13 = vector.shape_cast %12 : vector<8x8x16xf32> to vector<64x16xf32>
    %c0_7 = arith.constant 0 : index
    %c0_8 = arith.constant 0 : index
    %c0_9 = arith.constant 0 : index
    %c0_10 = arith.constant 0 : index
    %14 = vector.load %arg2[%c0_7, %c0_8, %c0_9, %c0_10] : memref<2x2x16x8xf32, #tpu.memory_space<vmem>>, vector<1x1x16x8xf32>
    %15 = vector.shape_cast %14 : vector<1x1x16x8xf32> to vector<16x8xf32>
    %cst = arith.constant dense<0.000000e+00> : vector<64x8xf32>
    %16 = tpu.matmul %13, %15, %cst {dimension_numbers = #tpu.dot_dimension_numbers<[1], [0], [0], [1], [0, 0, 1, 1], [], []>} : vector<64x16xf32>, vector<16x8xf32>, vector<64x8xf32> -> vector<64x8xf32>
    %17 = vector.broadcast %2 : vector<1x8xf32> to vector<64x8xf32>
    %18 = arith.mulf %16, %17 : vector<64x8xf32>
    %19 = vector.broadcast %3 : vector<1x8xf32> to vector<64x8xf32>
    %20 = arith.addf %18, %19 : vector<64x8xf32>
    %cst_11 = arith.constant 0.000000e+00 : f32
    %21 = vector.broadcast %cst_11 : f32 to vector<64x8xf32>
    %22 = arith.maximumf %20, %21 : vector<64x8xf32>
    %23 = vector.extract_strided_slice %9 {offsets = [0, 0, 0], sizes = [8, 8, 8], strides = [1, 1, 1]} : vector<10x8x8xf32> to vector<8x8x8xf32>
    %24 = vector.extract_strided_slice %9 {offsets = [1, 0, 0], sizes = [8, 8, 8], strides = [1, 1, 1]} : vector<10x8x8xf32> to vector<8x8x8xf32>
    %25 = tpu.concatenate %23, %24 in 2 : vector<8x8x8xf32>, vector<8x8x8xf32> -> vector<8x8x16xf32>
    %26 = vector.shape_cast %25 : vector<8x8x16xf32> to vector<64x16xf32>
    %c0_12 = arith.constant 0 : index
    %c1 = arith.constant 1 : index
    %c0_13 = arith.constant 0 : index
    %c0_14 = arith.constant 0 : index
    %27 = vector.load %arg2[%c0_12, %c1, %c0_13, %c0_14] : memref<2x2x16x8xf32, #tpu.memory_space<vmem>>, vector<1x1x16x8xf32>
    %28 = vector.shape_cast %27 : vector<1x1x16x8xf32> to vector<16x8xf32>
    %cst_15 = arith.constant dense<0.000000e+00> : vector<64x8xf32>
    %29 = tpu.matmul %26, %28, %cst_15 {dimension_numbers = #tpu.dot_dimension_numbers<[1], [0], [0], [1], [0, 0, 1, 1], [], []>} : vector<64x16xf32>, vector<16x8xf32>, vector<64x8xf32> -> vector<64x8xf32>
    %30 = vector.broadcast %2 : vector<1x8xf32> to vector<64x8xf32>
    %31 = arith.mulf %29, %30 : vector<64x8xf32>
    %32 = vector.broadcast %3 : vector<1x8xf32> to vector<64x8xf32>
    %33 = arith.addf %31, %32 : vector<64x8xf32>
    %cst_16 = arith.constant 0.000000e+00 : f32
    %34 = vector.broadcast %cst_16 : f32 to vector<64x8xf32>
    %35 = arith.maximumf %33, %34 : vector<64x8xf32>
    %36 = tpu.concatenate %22, %35 in 1 : vector<64x8xf32>, vector<64x8xf32> -> vector<64x16xf32>
    %37 = vector.shape_cast %36 : vector<64x16xf32> to vector<8x8x16xf32>
    %38 = vector.extract_strided_slice %6 {offsets = [1, 0, 0], sizes = [8, 8, 8], strides = [1, 1, 1]} : vector<10x8x8xf32> to vector<8x8x8xf32>
    %39 = vector.extract_strided_slice %6 {offsets = [2, 0, 0], sizes = [8, 8, 8], strides = [1, 1, 1]} : vector<10x8x8xf32> to vector<8x8x8xf32>
    %40 = tpu.concatenate %38, %39 in 2 : vector<8x8x8xf32>, vector<8x8x8xf32> -> vector<8x8x16xf32>
    %41 = vector.shape_cast %40 : vector<8x8x16xf32> to vector<64x16xf32>
    %c1_17 = arith.constant 1 : index
    %c0_18 = arith.constant 0 : index
    %c0_19 = arith.constant 0 : index
    %c0_20 = arith.constant 0 : index
    %42 = vector.load %arg2[%c1_17, %c0_18, %c0_19, %c0_20] : memref<2x2x16x8xf32, #tpu.memory_space<vmem>>, vector<1x1x16x8xf32>
    %43 = vector.shape_cast %42 : vector<1x1x16x8xf32> to vector<16x8xf32>
    %cst_21 = arith.constant dense<0.000000e+00> : vector<64x8xf32>
    %44 = tpu.matmul %41, %43, %cst_21 {dimension_numbers = #tpu.dot_dimension_numbers<[1], [0], [0], [1], [0, 0, 1, 1], [], []>} : vector<64x16xf32>, vector<16x8xf32>, vector<64x8xf32> -> vector<64x8xf32>
    %45 = vector.broadcast %2 : vector<1x8xf32> to vector<64x8xf32>
    %46 = arith.mulf %44, %45 : vector<64x8xf32>
    %47 = vector.broadcast %3 : vector<1x8xf32> to vector<64x8xf32>
    %48 = arith.addf %46, %47 : vector<64x8xf32>
    %cst_22 = arith.constant 0.000000e+00 : f32
    %49 = vector.broadcast %cst_22 : f32 to vector<64x8xf32>
    %50 = arith.maximumf %48, %49 : vector<64x8xf32>
    %51 = vector.extract_strided_slice %9 {offsets = [1, 0, 0], sizes = [8, 8, 8], strides = [1, 1, 1]} : vector<10x8x8xf32> to vector<8x8x8xf32>
    %52 = vector.extract_strided_slice %9 {offsets = [2, 0, 0], sizes = [8, 8, 8], strides = [1, 1, 1]} : vector<10x8x8xf32> to vector<8x8x8xf32>
    %53 = tpu.concatenate %51, %52 in 2 : vector<8x8x8xf32>, vector<8x8x8xf32> -> vector<8x8x16xf32>
    %54 = vector.shape_cast %53 : vector<8x8x16xf32> to vector<64x16xf32>
    %c1_23 = arith.constant 1 : index
    %c1_24 = arith.constant 1 : index
    %c0_25 = arith.constant 0 : index
    %c0_26 = arith.constant 0 : index
    %55 = vector.load %arg2[%c1_23, %c1_24, %c0_25, %c0_26] : memref<2x2x16x8xf32, #tpu.memory_space<vmem>>, vector<1x1x16x8xf32>
    %56 = vector.shape_cast %55 : vector<1x1x16x8xf32> to vector<16x8xf32>
    %cst_27 = arith.constant dense<0.000000e+00> : vector<64x8xf32>
    %57 = tpu.matmul %54, %56, %cst_27 {dimension_numbers = #tpu.dot_dimension_numbers<[1], [0], [0], [1], [0, 0, 1, 1], [], []>} : vector<64x16xf32>, vector<16x8xf32>, vector<64x8xf32> -> vector<64x8xf32>
    %58 = vector.broadcast %2 : vector<1x8xf32> to vector<64x8xf32>
    %59 = arith.mulf %57, %58 : vector<64x8xf32>
    %60 = vector.broadcast %3 : vector<1x8xf32> to vector<64x8xf32>
    %61 = arith.addf %59, %60 : vector<64x8xf32>
    %cst_28 = arith.constant 0.000000e+00 : f32
    %62 = vector.broadcast %cst_28 : f32 to vector<64x8xf32>
    %63 = arith.maximumf %61, %62 : vector<64x8xf32>
    %64 = tpu.concatenate %50, %63 in 1 : vector<64x8xf32>, vector<64x8xf32> -> vector<64x16xf32>
    %65 = vector.shape_cast %64 : vector<64x16xf32> to vector<8x8x16xf32>
    %66 = vector.shape_cast %37 : vector<8x8x16xf32> to vector<8x1x8x16xf32>
    %67 = vector.shape_cast %65 : vector<8x8x16xf32> to vector<8x1x8x16xf32>
    %68 = tpu.concatenate %66, %67 in 1 : vector<8x1x8x16xf32>, vector<8x1x8x16xf32> -> vector<8x2x8x16xf32>
    %69 = vector.shape_cast %68 : vector<8x2x8x16xf32> to vector<16x8x16xf32>
    %70 = vector.shape_cast %69 : vector<16x8x16xf32> to vector<1x16x8x16xf32>
    %c0_29 = arith.constant 0 : index
    %c0_30 = arith.constant 0 : index
    %c0_31 = arith.constant 0 : index
    %c0_32 = arith.constant 0 : index
    %71 = vector.load %arg5[%c0_29, %c0_30, %c0_31, %c0_32] : memref<1x16x8x16xf32, #tpu.memory_space<vmem>>, vector<1x16x8x16xf32>
    tpu.vector_store %arg5[%c0_29, %c0_30, %c0_31, %c0_32], %70 {strides = array<i32>} : memref<1x16x8x16xf32, #tpu.memory_space<vmem>>, vector<1x16x8x16xf32>,
    return
  }
  func.func @transform_0(%arg0: i32) -> (i32, i32, i32, i32) {
    %c0_i32 = arith.constant 0 : i32
    %c0_i32_0 = arith.constant 0 : i32
    %c0_i32_1 = arith.constant 0 : i32
    %c0_i32_2 = arith.constant 0 : i32
    return %arg0, %c0_i32, %c0_i32_0, %c0_i32_1 : i32, i32, i32, i32
  }
  func.func @transform_1(%arg0: i32) -> (i32, i32, i32, i32) {
    %c0_i32 = arith.constant 0 : i32
    %c0_i32_0 = arith.constant 0 : i32
    %c0_i32_1 = arith.constant 0 : i32
    %c0_i32_2 = arith.constant 0 : i32
    %c0_i32_3 = arith.constant 0 : i32
    return %c0_i32, %c0_i32_0, %c0_i32_1, %c0_i32_2 : i32, i32, i32, i32
  }
  func.func @transform_2(%arg0: i32) -> (i32, i32) {
    %c0_i32 = arith.constant 0 : i32
    %c0_i32_0 = arith.constant 0 : i32
    %c0_i32_1 = arith.constant 0 : i32
    return %c0_i32, %c0_i32_0 : i32, i32
  }
  func.func @transform_3(%arg0: i32) -> (i32, i32) {
    %c0_i32 = arith.constant 0 : i32
    %c0_i32_0 = arith.constant 0 : i32
    %c0_i32_1 = arith.constant 0 : i32
    return %c0_i32, %c0_i32_0 : i32, i32
  }
  func.func @transform_4(%arg0: i32) -> (i32, i32, i32, i32) {
    %c0_i32 = arith.constant 0 : i32
    %c0_i32_0 = arith.constant 0 : i32
    %c0_i32_1 = arith.constant 0 : i32
    %c0_i32_2 = arith.constant 0 : i32
    return %arg0, %c0_i32, %c0_i32_0, %c0_i32_1 : i32, i32, i32, i32
  }
}

module attributes {stable_mosaic.version = 11 : i64} {
  func.func @_deconv_bn_relu_kernel(%arg0: i32, %arg1: memref<1x18x18x8xf32, #tpu.memory_space<vmem>>, %arg2: memref<2x2x32x8xf32, #tpu.memory_space<vmem>>, %arg3: memref<1x8xf32, #tpu.memory_space<vmem>>, %arg4: memref<1x8xf32, #tpu.memory_space<vmem>>, %arg5: memref<1x32x16x16xf32, #tpu.memory_space<vmem>>) attributes {dimension_semantics = [#tpu.dimension_semantics<parallel>], iteration_bounds = array<i64: 2>, scalar_prefetch = 0 : i64, scratch_operands = 0 : i64, tpu.core_type = #tpu.core_type<tc>, window_params = [{transform_indices = @transform_0, window_bounds = array<i64: 1, 18, 18, 8>}, {pipeline_mode = #tpu.pipeline_mode<synchronous>, transform_indices = @transform_1, window_bounds = array<i64: 2, 2, 32, 8>}, {pipeline_mode = #tpu.pipeline_mode<synchronous>, transform_indices = @transform_2, window_bounds = array<i64: 1, 8>}, {pipeline_mode = #tpu.pipeline_mode<synchronous>, transform_indices = @transform_3, window_bounds = array<i64: 1, 8>}, {transform_indices = @transform_4, window_bounds = array<i64: 1, 32, 16, 16>}]} {
    %c0 = arith.constant 0 : index
    %c0_0 = arith.constant 0 : index
    %c0_1 = arith.constant 0 : index
    %c0_2 = arith.constant 0 : index
    %0 = vector.load %arg1[%c0, %c0_0, %c0_1, %c0_2] : memref<1x18x18x8xf32, #tpu.memory_space<vmem>>, vector<1x18x18x8xf32>
    %1 = vector.shape_cast %0 : vector<1x18x18x8xf32> to vector<18x18x8xf32>
    %c0_3 = arith.constant 0 : index
    %c0_4 = arith.constant 0 : index
    %2 = vector.load %arg3[%c0_3, %c0_4] : memref<1x8xf32, #tpu.memory_space<vmem>>, vector<1x8xf32>
    %c0_5 = arith.constant 0 : index
    %c0_6 = arith.constant 0 : index
    %3 = vector.load %arg4[%c0_5, %c0_6] : memref<1x8xf32, #tpu.memory_space<vmem>>, vector<1x8xf32>
    %4 = vector.extract_strided_slice %1 {offsets = [0, 0, 0], sizes = [18, 16, 8], strides = [1, 1, 1]} : vector<18x18x8xf32> to vector<18x16x8xf32>
    %5 = vector.extract_strided_slice %1 {offsets = [0, 1, 0], sizes = [18, 16, 8], strides = [1, 1, 1]} : vector<18x18x8xf32> to vector<18x16x8xf32>
    %6 = tpu.concatenate %4, %5 in 2 : vector<18x16x8xf32>, vector<18x16x8xf32> -> vector<18x16x16xf32>
    %7 = vector.extract_strided_slice %1 {offsets = [0, 1, 0], sizes = [18, 16, 8], strides = [1, 1, 1]} : vector<18x18x8xf32> to vector<18x16x8xf32>
    %8 = vector.extract_strided_slice %1 {offsets = [0, 2, 0], sizes = [18, 16, 8], strides = [1, 1, 1]} : vector<18x18x8xf32> to vector<18x16x8xf32>
    %9 = tpu.concatenate %7, %8 in 2 : vector<18x16x8xf32>, vector<18x16x8xf32> -> vector<18x16x16xf32>
    %10 = vector.extract_strided_slice %6 {offsets = [0, 0, 0], sizes = [16, 16, 16], strides = [1, 1, 1]} : vector<18x16x16xf32> to vector<16x16x16xf32>
    %11 = vector.extract_strided_slice %6 {offsets = [1, 0, 0], sizes = [16, 16, 16], strides = [1, 1, 1]} : vector<18x16x16xf32> to vector<16x16x16xf32>
    %12 = tpu.concatenate %10, %11 in 2 : vector<16x16x16xf32>, vector<16x16x16xf32> -> vector<16x16x32xf32>
    %13 = vector.shape_cast %12 : vector<16x16x32xf32> to vector<256x32xf32>
    %c0_7 = arith.constant 0 : index
    %c0_8 = arith.constant 0 : index
    %c0_9 = arith.constant 0 : index
    %c0_10 = arith.constant 0 : index
    %14 = vector.load %arg2[%c0_7, %c0_8, %c0_9, %c0_10] : memref<2x2x32x8xf32, #tpu.memory_space<vmem>>, vector<1x1x32x8xf32>
    %15 = vector.shape_cast %14 : vector<1x1x32x8xf32> to vector<32x8xf32>
    %cst = arith.constant dense<0.000000e+00> : vector<256x8xf32>
    %16 = tpu.matmul %13, %15, %cst {dimension_numbers = #tpu.dot_dimension_numbers<[1], [0], [0], [1], [0, 0, 1, 1], [], []>} : vector<256x32xf32>, vector<32x8xf32>, vector<256x8xf32> -> vector<256x8xf32>
    %17 = vector.broadcast %2 : vector<1x8xf32> to vector<256x8xf32>
    %18 = arith.mulf %16, %17 : vector<256x8xf32>
    %19 = vector.broadcast %3 : vector<1x8xf32> to vector<256x8xf32>
    %20 = arith.addf %18, %19 : vector<256x8xf32>
    %cst_11 = arith.constant 0.000000e+00 : f32
    %21 = vector.broadcast %cst_11 : f32 to vector<256x8xf32>
    %22 = arith.maximumf %20, %21 : vector<256x8xf32>
    %23 = vector.extract_strided_slice %9 {offsets = [0, 0, 0], sizes = [16, 16, 16], strides = [1, 1, 1]} : vector<18x16x16xf32> to vector<16x16x16xf32>
    %24 = vector.extract_strided_slice %9 {offsets = [1, 0, 0], sizes = [16, 16, 16], strides = [1, 1, 1]} : vector<18x16x16xf32> to vector<16x16x16xf32>
    %25 = tpu.concatenate %23, %24 in 2 : vector<16x16x16xf32>, vector<16x16x16xf32> -> vector<16x16x32xf32>
    %26 = vector.shape_cast %25 : vector<16x16x32xf32> to vector<256x32xf32>
    %c0_12 = arith.constant 0 : index
    %c1 = arith.constant 1 : index
    %c0_13 = arith.constant 0 : index
    %c0_14 = arith.constant 0 : index
    %27 = vector.load %arg2[%c0_12, %c1, %c0_13, %c0_14] : memref<2x2x32x8xf32, #tpu.memory_space<vmem>>, vector<1x1x32x8xf32>
    %28 = vector.shape_cast %27 : vector<1x1x32x8xf32> to vector<32x8xf32>
    %cst_15 = arith.constant dense<0.000000e+00> : vector<256x8xf32>
    %29 = tpu.matmul %26, %28, %cst_15 {dimension_numbers = #tpu.dot_dimension_numbers<[1], [0], [0], [1], [0, 0, 1, 1], [], []>} : vector<256x32xf32>, vector<32x8xf32>, vector<256x8xf32> -> vector<256x8xf32>
    %30 = vector.broadcast %2 : vector<1x8xf32> to vector<256x8xf32>
    %31 = arith.mulf %29, %30 : vector<256x8xf32>
    %32 = vector.broadcast %3 : vector<1x8xf32> to vector<256x8xf32>
    %33 = arith.addf %31, %32 : vector<256x8xf32>
    %cst_16 = arith.constant 0.000000e+00 : f32
    %34 = vector.broadcast %cst_16 : f32 to vector<256x8xf32>
    %35 = arith.maximumf %33, %34 : vector<256x8xf32>
    %36 = tpu.concatenate %22, %35 in 1 : vector<256x8xf32>, vector<256x8xf32> -> vector<256x16xf32>
    %37 = vector.shape_cast %36 : vector<256x16xf32> to vector<16x16x16xf32>
    %38 = vector.extract_strided_slice %6 {offsets = [1, 0, 0], sizes = [16, 16, 16], strides = [1, 1, 1]} : vector<18x16x16xf32> to vector<16x16x16xf32>
    %39 = vector.extract_strided_slice %6 {offsets = [2, 0, 0], sizes = [16, 16, 16], strides = [1, 1, 1]} : vector<18x16x16xf32> to vector<16x16x16xf32>
    %40 = tpu.concatenate %38, %39 in 2 : vector<16x16x16xf32>, vector<16x16x16xf32> -> vector<16x16x32xf32>
    %41 = vector.shape_cast %40 : vector<16x16x32xf32> to vector<256x32xf32>
    %c1_17 = arith.constant 1 : index
    %c0_18 = arith.constant 0 : index
    %c0_19 = arith.constant 0 : index
    %c0_20 = arith.constant 0 : index
    %42 = vector.load %arg2[%c1_17, %c0_18, %c0_19, %c0_20] : memref<2x2x32x8xf32, #tpu.memory_space<vmem>>, vector<1x1x32x8xf32>
    %43 = vector.shape_cast %42 : vector<1x1x32x8xf32> to vector<32x8xf32>
    %cst_21 = arith.constant dense<0.000000e+00> : vector<256x8xf32>
    %44 = tpu.matmul %41, %43, %cst_21 {dimension_numbers = #tpu.dot_dimension_numbers<[1], [0], [0], [1], [0, 0, 1, 1], [], []>} : vector<256x32xf32>, vector<32x8xf32>, vector<256x8xf32> -> vector<256x8xf32>
    %45 = vector.broadcast %2 : vector<1x8xf32> to vector<256x8xf32>
    %46 = arith.mulf %44, %45 : vector<256x8xf32>
    %47 = vector.broadcast %3 : vector<1x8xf32> to vector<256x8xf32>
    %48 = arith.addf %46, %47 : vector<256x8xf32>
    %cst_22 = arith.constant 0.000000e+00 : f32
    %49 = vector.broadcast %cst_22 : f32 to vector<256x8xf32>
    %50 = arith.maximumf %48, %49 : vector<256x8xf32>
    %51 = vector.extract_strided_slice %9 {offsets = [1, 0, 0], sizes = [16, 16, 16], strides = [1, 1, 1]} : vector<18x16x16xf32> to vector<16x16x16xf32>
    %52 = vector.extract_strided_slice %9 {offsets = [2, 0, 0], sizes = [16, 16, 16], strides = [1, 1, 1]} : vector<18x16x16xf32> to vector<16x16x16xf32>
    %53 = tpu.concatenate %51, %52 in 2 : vector<16x16x16xf32>, vector<16x16x16xf32> -> vector<16x16x32xf32>
    %54 = vector.shape_cast %53 : vector<16x16x32xf32> to vector<256x32xf32>
    %c1_23 = arith.constant 1 : index
    %c1_24 = arith.constant 1 : index
    %c0_25 = arith.constant 0 : index
    %c0_26 = arith.constant 0 : index
    %55 = vector.load %arg2[%c1_23, %c1_24, %c0_25, %c0_26] : memref<2x2x32x8xf32, #tpu.memory_space<vmem>>, vector<1x1x32x8xf32>
    %56 = vector.shape_cast %55 : vector<1x1x32x8xf32> to vector<32x8xf32>
    %cst_27 = arith.constant dense<0.000000e+00> : vector<256x8xf32>
    %57 = tpu.matmul %54, %56, %cst_27 {dimension_numbers = #tpu.dot_dimension_numbers<[1], [0], [0], [1], [0, 0, 1, 1], [], []>} : vector<256x32xf32>, vector<32x8xf32>, vector<256x8xf32> -> vector<256x8xf32>
    %58 = vector.broadcast %2 : vector<1x8xf32> to vector<256x8xf32>
    %59 = arith.mulf %57, %58 : vector<256x8xf32>
    %60 = vector.broadcast %3 : vector<1x8xf32> to vector<256x8xf32>
    %61 = arith.addf %59, %60 : vector<256x8xf32>
    %cst_28 = arith.constant 0.000000e+00 : f32
    %62 = vector.broadcast %cst_28 : f32 to vector<256x8xf32>
    %63 = arith.maximumf %61, %62 : vector<256x8xf32>
    %64 = tpu.concatenate %50, %63 in 1 : vector<256x8xf32>, vector<256x8xf32> -> vector<256x16xf32>
    %65 = vector.shape_cast %64 : vector<256x16xf32> to vector<16x16x16xf32>
    %66 = vector.shape_cast %37 : vector<16x16x16xf32> to vector<16x1x16x16xf32>
    %67 = vector.shape_cast %65 : vector<16x16x16xf32> to vector<16x1x16x16xf32>
    %68 = tpu.concatenate %66, %67 in 1 : vector<16x1x16x16xf32>, vector<16x1x16x16xf32> -> vector<16x2x16x16xf32>
    %69 = vector.shape_cast %68 : vector<16x2x16x16xf32> to vector<32x16x16xf32>
    %70 = vector.shape_cast %69 : vector<32x16x16xf32> to vector<1x32x16x16xf32>
    %c0_29 = arith.constant 0 : index
    %c0_30 = arith.constant 0 : index
    %c0_31 = arith.constant 0 : index
    %c0_32 = arith.constant 0 : index
    %71 = vector.load %arg5[%c0_29, %c0_30, %c0_31, %c0_32] : memref<1x32x16x16xf32, #tpu.memory_space<vmem>>, vector<1x32x16x16xf32>
    tpu.vector_store %arg5[%c0_29, %c0_30, %c0_31, %c0_32], %70 {strides = array<i32>} : memref<1x32x16x16xf32, #tpu.memory_space<vmem>>, vector<1x32x16x16xf32>,
    return
  }
  func.func @transform_0(%arg0: i32) -> (i32, i32, i32, i32) {
    %c0_i32 = arith.constant 0 : i32
    %c0_i32_0 = arith.constant 0 : i32
    %c0_i32_1 = arith.constant 0 : i32
    %c0_i32_2 = arith.constant 0 : i32
    return %arg0, %c0_i32, %c0_i32_0, %c0_i32_1 : i32, i32, i32, i32
  }
  func.func @transform_1(%arg0: i32) -> (i32, i32, i32, i32) {
    %c0_i32 = arith.constant 0 : i32
    %c0_i32_0 = arith.constant 0 : i32
    %c0_i32_1 = arith.constant 0 : i32
    %c0_i32_2 = arith.constant 0 : i32
    %c0_i32_3 = arith.constant 0 : i32
    return %c0_i32, %c0_i32_0, %c0_i32_1, %c0_i32_2 : i32, i32, i32, i32
  }
  func.func @transform_2(%arg0: i32) -> (i32, i32) {
    %c0_i32 = arith.constant 0 : i32
    %c0_i32_0 = arith.constant 0 : i32
    %c0_i32_1 = arith.constant 0 : i32
    return %c0_i32, %c0_i32_0 : i32, i32
  }
  func.func @transform_3(%arg0: i32) -> (i32, i32) {
    %c0_i32 = arith.constant 0 : i32
    %c0_i32_0 = arith.constant 0 : i32
    %c0_i32_1 = arith.constant 0 : i32
    return %c0_i32, %c0_i32_0 : i32, i32
  }
  func.func @transform_4(%arg0: i32) -> (i32, i32, i32, i32) {
    %c0_i32 = arith.constant 0 : i32
    %c0_i32_0 = arith.constant 0 : i32
    %c0_i32_1 = arith.constant 0 : i32
    %c0_i32_2 = arith.constant 0 : i32
    return %arg0, %c0_i32, %c0_i32_0, %c0_i32_1 : i32, i32, i32, i32
  }
}

</mosaic_0001>

<bundles_post_ra>
// kernel: unet_forward_pallas.2
= control target key start
LH: loop header
LB: loop body
LE: loop exit
PB: predicated region body
PF: predicated region fallthrough
CT: control target
= control target key end

     0   :  { %s1432_s15 = smov 0   ;;  %s1962_s0 = inlined_call_operand.vmem [shape: f32[2,10,10,4], index: 0, kind: input, shape index: {}]   ;;  %s1963_s1 = inlined_call_operand.vmem [shape: f32[2,2,16,8], index: 1, kind: input, shape index: {}]   ;;  %s1964_s2 = inlined_call_operand.vmem [shape: f32[1,8], index: 2, kind: input, shape index: {}]   ;;  %s1965_s3 = inlined_call_operand.vmem [shape: f32[1,8], index: 3, kind: input, shape index: {}]   ;;  %s1966_s4 = inlined_call_operand.vmem [shape: f32[2,16,8,16], index: 4, kind: output, shape index: {}]  }
   0x1 LB: > { %s1215_s16 = sadd.s32 4294967295, %s1403_s15   ;;  %p1219_p0 = scmp.ge.s32.totalorder %s1403_s15, 1  ;;  %s1403_s15 = sphi %s1432_s15, %s14_s15  }
   0x2   : > { %p162_p1 = scmp.lt.s32.totalorder %s1403_s15, 3 }
   0x4   : > { %p163_p2 = pnand %p1219_p0, %p162_p1 }
   0x5   : > { %p188_p3 = scmp.lt.s32.totalorder (!%p163_p2), %s1215_s16, 1  ;;  %vm240_vm0 = vcmask (!%p163_p2), 1046528   ;;  %s1405_s21 = smov (!%p163_p2), 4   ;;  %v393_v50 = vld [vmem:[%s1963_s1] sm:$0xff] (!%p163_p2)  ;;  %v394_v51 = vld [vmem:[%s1963_s1 + $0x8] sm:$0xff] (!%p163_p2)  ;;  %v1233_v53 = vld [vmem:[%s1963_s1 + $0x10] sm:$0xff] (!%p163_p2) }
   0x6   : > { %166 = sbr.rel (%p163_p2) target bundleno = 639 (0x27f), region = 36  ;;  %v1370_v52 = vpack.c.bf16 (!%p163_p2), %v394_v51, %v393_v50  ;;  %v1234_v54 = vld [vmem:[%s1963_s1 + $0x18] sm:$0xff] (!%p163_p2)  ;;  %vm301_vm1 = vcmask (!%p163_p2), 31744   ;;  %s1406_s30 = smov (!%p163_p2), 8   ;;  %vm384_vm2 = vcmask (!%p163_p2), 64512   ;;  %vm395_vm3 = vcmask (!%p163_p2), 130048  }
   0x7   : > { %v1374_v55 = vpack.c.bf16 (!%p163_p2), %v1234_v54, %v1233_v53 }
   0x8   : > { %1371 = vmatprep.subr.bf16.mxu0 (!%p163_p2), %v1370_v52 }
   0x9   : > { %1373 = vmatpush3.bf16.msra.mxu0 (!%p163_p2), %v1370_v52  ;;  %1375 = vmatprep.subr.bf16.mxu1 (!%p163_p2), %v1374_v55 }
   0xa   : > { %1377 = vmatpush3.bf16.msra.mxu1 (!%p163_p2), %v1374_v55 }
   0xd   : > { %s1968_s16 = smov (!%p188_p3, %s1215_s16), 1 }
   0xe   : > { %s1386_s17 = smul.u32 160, %s1968_s16  ;;  %s1265_s19 = sshll.u32 %s1968_s16, 7 }
   0xf   : > { %s1894_s22 = scalar_lea.vmem %s1966_s4, %s1265_s19 }
  0x10   : > { %s1446_s20 = scalar_lea.vmem %s1962_s0, %s1386_s17 }
  0x11   : > { %v1449_v0 = vld [vmem:[%s1446_s20 + $0x28] sm:$0x3]  ;;  %v1452_v1 = vld [vmem:[%s1446_s20 + $0x18] sm:$0x3]  ;;  %v1460_v5 = vld [vmem:[%s1446_s20 + $0x10] sm:$0xff] }
  0x12   : > { %v1455_v2 = vld [vmem:[%s1446_s20 + $0x38] sm:$0x3]  ;;  %v248_v3 = vrot.slane %v1449_v0, 1  ;;  %v245_v4 = vrot.slane %v1452_v1, 1  ;;  %v1463_v6 = vld [vmem:[%s1446_s20 + $0x20] sm:$0xff]  ;;  %v1466_v7 = vld [vmem:[%s1446_s20 + $0x30] sm:$0xff] }
  0x13   : > { %v244_v8 = vrot.slane %v1460_v5, 1  ;;  %v251_v9 = vrot.slane %v1455_v2, 1  ;;  %v247_v11 = vrot.slane %v1463_v6, 1  ;;  %v250_v12 = vrot.slane %v1466_v7, 1  ;;  %v1476_v13 = vld [vmem:[%s1446_s20 + $0x40] sm:$0xff]  ;;  %v1487_v18 = vld [vmem:[%s1446_s20 + $0x50] sm:$0xff] }
  0x14   : > { %316 = vrot.lane.b32.xlu1 %v248_v3, %s1405_s21  ;;  %314 = vrot.lane.b32.xlu0 %v245_v4, %s1405_s21  ;;  %v1481_v14 = vld [vmem:[%s1446_s20 + $0x48] sm:$0x3]  ;;  %v253_v17 = vrot.slane %v1476_v13, 1  ;;  %v1493_v20 = vld [vmem:[%s1446_s20 + $0x58] sm:$0x3]  ;;  %v256_v22 = vrot.slane %v1487_v18, 1 }
  0x15   : > { %v246_v10 = vsel %vm240_vm0, %v244_v8, %v245_v4  ;;  %v249_v15 = vsel %vm240_vm0, %v247_v11, %v248_v3  ;;  %v252_v16 = vsel %vm240_vm0, %v250_v12, %v251_v9  ;;  %v254_v19 = vrot.slane %v1481_v14, 1  ;;  %v1498_v23 = vld [vmem:[%s1446_s20 + $0x60] sm:$0xff]  ;;  %v1504_v25 = vld [vmem:[%s1446_s20 + $0x68] sm:$0x3]  ;;  %v1509_v28 = vld [vmem:[%s1446_s20 + $0x70] sm:$0xff] }
  0x16   : > { %v257_v24 = vrot.slane %v1493_v20, 1  ;;  %v259_v27 = vrot.slane %v1498_v23, 1  ;;  %v260_v29 = vrot.slane %v1504_v25, 1  ;;  %v1515_v30 = vld [vmem:[%s1446_s20 + $0x78] sm:$0x3]  ;;  %v262_v32 = vrot.slane %v1509_v28, 1 }
  0x17   : > { %v255_v21 = vsel %vm240_vm0, %v253_v17, %v254_v19  ;;  %v1520_v33 = vld [vmem:[%s1446_s20 + $0x80] sm:$0xff]  ;;  %v263_v34 = vrot.slane %v1515_v30, 1  ;;  %v1526_v35 = vld [vmem:[%s1446_s20 + $0x88] sm:$0x3]  ;;  %v1531_v38 = vld [vmem:[%s1446_s20 + $0x90] sm:$0xff] }
  0x18   : > { %318 = vrot.lane.b32.xlu1 %v251_v9, %s1405_s21  ;;  %273 = vrot.lane.b32.xlu0 %v246_v10, %s1405_s21  ;;  %v258_v26 = vsel %vm240_vm0, %v256_v22, %v257_v24  ;;  %v261_v31 = vsel %vm240_vm0, %v259_v27, %v260_v29  ;;  %v265_v37 = vrot.slane %v1520_v33, 1  ;;  %v266_v39 = vrot.slane %v1526_v35, 1  ;;  %v1537_v40 = vld [vmem:[%s1446_s20 + $0x98] sm:$0x3]  ;;  %v1542_v43 = vld [vmem:[%s1446_s20] sm:$0xff] }
  0x19   : > { %v264_v36 = vsel %vm240_vm0, %v262_v32, %v263_v34  ;;  %v268_v42 = vrot.slane %v1531_v38, 1  ;;  %v269_v44 = vrot.slane %v1537_v40, 1  ;;  %v1548_v45 = vld [vmem:[%s1446_s20 + $0x8] sm:$0x3]  ;;  %v241_v47 = vrot.slane %v1542_v43, 1  ;;  %v1253_v4 = vld [vmem:[%s1963_s1 + $0x30] sm:$0xff] }
  0x1a   : > { %v267_v41 = vsel %vm240_vm0, %v265_v37, %v266_v39  ;;  %v242_v48 = vrot.slane %v1548_v45, 1 }
  0x1b   : > { %v270_v46 = vsel %vm240_vm0, %v268_v42, %v269_v44 }
  0x1c   : > { %275 = vrot.lane.b32.xlu1 %v249_v15, %s1405_s21  ;;  %277 = vrot.lane.b32.xlu0 %v252_v16, %s1405_s21  ;;  %v243_v49 = vsel %vm240_vm0, %v241_v47, %v242_v48  ;;  %v1244_v16 = vld [vmem:[%s1963_s1 + $0x28] sm:$0xff] }
  0x20   : > { %320 = vrot.lane.b32.xlu1 %v254_v19, %s1405_s21  ;;  %279 = vrot.lane.b32.xlu0 %v255_v21, %s1405_s21 }
  0x24   : > { %322 = vrot.lane.b32.xlu1 %v257_v24, %s1405_s21  ;;  %281 = vrot.lane.b32.xlu0 %v258_v26, %s1405_s21 }
  0x28   : > { %324 = vrot.lane.b32.xlu1 %v260_v29, %s1405_s21  ;;  %283 = vrot.lane.b32.xlu0 %v261_v31, %s1405_s21 }
  0x2c   : > { %326 = vrot.lane.b32.xlu1 %v263_v34, %s1405_s21  ;;  %285 = vrot.lane.b32.xlu0 %v264_v36, %s1405_s21 }
  0x30   : > { %328 = vrot.lane.b32.xlu1 %v266_v39, %s1405_s21  ;;  %287 = vrot.lane.b32.xlu0 %v267_v41, %s1405_s21 }
  0x34   : > { %330 = vrot.lane.b32.xlu1 %v269_v44, %s1405_s21  ;;  %289 = vrot.lane.b32.xlu0 %v270_v46, %s1405_s21 }
  0x38   : > { %312 = vrot.lane.b32.xlu1 %v242_v48, %s1405_s21  ;;  %271 = vrot.lane.b32.xlu0 %v243_v49, %s1405_s21 }
  0x86   : > { %v317_v56 = vpop.permute.xlu1 %316  ;;  %v315_v57 = vpop.permute.xlu0 %314 }
  0x87   : > { %v1572_v58 = vsel %vm301_vm1, %v1452_v1, %v315_v57  ;;  %v1578_v61 = vsel %vm301_vm1, %v1449_v0, %v317_v56 }
  0x88   : > { %569 = vrot.lane.b32.xlu1 %v1572_v58, %s1406_s30 }
  0x8a   : > { %v319_v59 = vpop.permute.xlu1 %318  ;;  %v274_v60 = vpop.permute.xlu0 %273 }
  0x8b   : > { %v1582_v62 = vsel %vm301_vm1, %v1460_v5, %v274_v60  ;;  %v1590_v3 = vsel %vm301_vm1, %v1455_v2, %v319_v59  ;;  %v1254_v5 = vld [vmem:[%s1963_s1 + $0x38] sm:$0xff] }
  0x8c   : > { %571 = vrot.lane.b32.xlu1 %v1578_v61, %s1406_s30  ;;  %360 = vrot.lane.b32.xlu0 %v1582_v62, %s1406_s30 }
  0x8e   : > { %v276_v63 = vpop.permute.xlu1 %275  ;;  %v278_v1 = vpop.permute.xlu0 %277 }
  0x8f   : > { %v1594_v0 = vsel %vm301_vm1, %v1463_v6, %v276_v63  ;;  %v1608_v2 = vsel %vm301_vm1, %v1466_v7, %v278_v1  ;;  %v1610_v6 = vpack.c.bf16 %v1254_v5, %v1253_v4 }
  0x90   : > { %573 = vrot.lane.b32.xlu1 %v1590_v3, %s1406_s30  ;;  %362 = vrot.lane.b32.xlu0 %v1594_v0, %s1406_s30 }
  0x91   : > { %1383 = vmatprep.subr.bf16.mxu1 %v1610_v6 }
  0x92   : > { %v321_v8 = vpop.permute.xlu1 %320  ;;  %v280_v9 = vpop.permute.xlu0 %279 }
  0x93   : > { %v1614_v10 = vsel %vm301_vm1, %v1481_v14, %v321_v8  ;;  %v1623_v7 = vsel %vm301_vm1, %v1476_v13, %v280_v9  ;;  %v1243_v13 = vld [vmem:[%s1963_s1 + $0x20] sm:$0xff] }
  0x94   : > { %575 = vrot.lane.b32.xlu1 %v1614_v10, %s1406_s30  ;;  %364 = vrot.lane.b32.xlu0 %v1608_v2, %s1406_s30 }
  0x96   : > { %v323_v11 = vpop.permute.xlu1 %322  ;;  %v282_v12 = vpop.permute.xlu0 %281 }
  0x97   : > { %v1627_v15 = vsel %vm301_vm1, %v1493_v20, %v323_v11  ;;  %v1635_v14 = vsel %vm301_vm1, %v1487_v18, %v282_v12  ;;  %v1378_v20 = vpack.c.bf16 %v1244_v16, %v1243_v13 }
  0x98   : > { %577 = vrot.lane.b32.xlu1 %v1627_v15, %s1406_s30  ;;  %366 = vrot.lane.b32.xlu0 %v1623_v7, %s1406_s30 }
  0x99   : > { %1379 = vmatprep.subr.bf16.mxu0 %v1378_v20 }
  0x9a   : > { %v325_v17 = vpop.permute.xlu1 %324  ;;  %v284_v19 = vpop.permute.xlu0 %283 }
  0x9b   : > { %v1645_v21 = vsel %vm301_vm1, %v1504_v25, %v325_v17  ;;  %v1653_v18 = vsel %vm301_vm1, %v1498_v23, %v284_v19 }
  0x9c   : > { %579 = vrot.lane.b32.xlu1 %v1645_v21, %s1406_s30  ;;  %368 = vrot.lane.b32.xlu0 %v1635_v14, %s1406_s30 }
  0x9e   : > { %v327_v22 = vpop.permute.xlu1 %326  ;;  %v286_v24 = vpop.permute.xlu0 %285 }
  0x9f   : > { %v1657_v26 = vsel %vm301_vm1, %v1515_v30, %v327_v22  ;;  %v1665_v25 = vsel %vm301_vm1, %v1509_v28, %v286_v24 }
  0xa0   : > { %581 = vrot.lane.b32.xlu1 %v1657_v26, %s1406_s30  ;;  %370 = vrot.lane.b32.xlu0 %v1653_v18, %s1406_s30 }
  0xa2   : > { %v329_v27 = vpop.permute.xlu1 %328  ;;  %v288_v23 = vpop.permute.xlu0 %287 }
  0xa3   : > { %v1669_v29 = vsel %vm301_vm1, %v1526_v35, %v329_v27  ;;  %v1677_v30 = vsel %vm301_vm1, %v1520_v33, %v288_v23 }
  0xa4   : > { %583 = vrot.lane.b32.xlu1 %v1669_v29, %s1406_s30  ;;  %372 = vrot.lane.b32.xlu0 %v1665_v25, %s1406_s30 }
  0xa6   : > { %v331_v31 = vpop.permute.xlu1 %330  ;;  %v290_v32 = vpop.permute.xlu0 %289 }
  0xa7   : > { %v351_v28 = vsel %vm301_vm1, %v1537_v40, %v331_v31  ;;  %v311_v34 = vsel %vm301_vm1, %v1531_v38, %v290_v32 }
  0xa8   : > { %962 = vrot.lane.b32.xlu1 %v351_v28, %s1406_s30  ;;  %374 = vrot.lane.b32.xlu0 %v1677_v30, %s1406_s30 }
  0xaa   : > { %v313_v35 = vpop.permute.xlu1 %312  ;;  %v272_v36 = vpop.permute.xlu0 %271 }
  0xab   : > { %v342_v33 = vsel %vm301_vm1, %v1548_v45, %v313_v35  ;;  %v302_v40 = vsel %vm301_vm1, %v1542_v43, %v272_v36 }
  0xac   : > { %822 = vrot.lane.b32.xlu0 %v311_v34, %s1406_s30 }
  0xfa   : > { %v570_v37 = vpop.permute.xlu1 %569 }
  0xfb   : > { %v593_v39 = vsel %vm384_vm2, %v342_v33, %v570_v37 }
  0xfc   : > { %v610_v38 = vrot.slane %v593_v39, 1  ;;  %v1770_v39 = vld [vmem:[%s1964_s2] ss:$0 sm:$0xff] }
  0xfe   : > { %v572_v41 = vpop.permute.xlu1 %571  ;;  %v361_v42 = vpop.permute.xlu0 %360 }
  0xff   : > { %v385_v44 = vsel %vm384_vm2, %v302_v40, %v361_v42  ;;  %v594_v47 = vsel %vm384_vm2, %v1572_v58, %v572_v41 }
 0x100   : > { %1310 = vmatprep.mubr.msk.f32.mxu0 %vm395_vm3, %v385_v44  ;;  %v609_v46 = vrot.slane %v385_v44, 1  ;;  %v613_v43 = vrot.slane %v594_v47, 1 }
 0x102   : > { %v574_v45 = vpop.permute.xlu1 %573  ;;  %v363_v48 = vpop.permute.xlu0 %362  ;;  %v611_v49 = vsel %vm240_vm0, %v609_v46, %v610_v38 }
 0x103   : > { %v386_v50 = vsel %vm384_vm2, %v1582_v62, %v363_v48  ;;  %1326 = vmatprep.mubr.msk.f32.mxu1 %vm395_vm3, %v611_v49  ;;  %v595_v52 = vsel %vm384_vm2, %v1578_v61, %v574_v45 }
 0x104   : > { %v612_v51 = vrot.slane %v386_v50, 1  ;;  %1311 = vmatmul.mubr.msk.f32.vlgmr.msra.gmra.mrb[0].mxu0 %vm395_vm3, %v386_v50  ;;  %v616_v57 = vrot.slane %v595_v52, 1 }
 0x105   : > { %1381 = vmatpush3.bf16.msra.mxu0 %v1378_v20 }
 0x106   : > { %v576_v53 = vpop.permute.xlu1 %575  ;;  %v365_v54 = vpop.permute.xlu0 %364  ;;  %v614_v55 = vsel %vm240_vm0, %v612_v51, %v613_v43 }
 0x107   : > { %v387_v56 = vsel %vm384_vm2, %v1594_v0, %v365_v54  ;;  %1327 = vmatmul.mubr.msk.f32.vlgmr.msra.gmra.mrb[0].mxu1 %vm395_vm3, %v614_v55  ;;  %v596_v59 = vsel %vm384_vm2, %v1590_v3, %v576_v53 }
 0x108   : > { %v615_v58 = vrot.slane %v387_v56, 1  ;;  %1313 = vmatprep.mubr.msk.f32.mxu0 %vm395_vm3, %v387_v56  ;;  %1385 = vmatpush3.bf16.msra.mxu1 %v1610_v6  ;;  %v619_v1 = vrot.slane %v596_v59, 1 }
 0x10a   : > { %v578_v60 = vpop.permute.xlu1 %577  ;;  %v367_v61 = vpop.permute.xlu0 %366  ;;  %v617_v62 = vsel %vm240_vm0, %v615_v58, %v616_v57 }
 0x10b   : > { %v388_v63 = vsel %vm384_vm2, %v1608_v2, %v367_v61  ;;  %1329 = vmatprep.mubr.msk.f32.mxu1 %vm395_vm3, %v617_v62  ;;  %v597_v4 = vsel %vm384_vm2, %v1614_v10, %v578_v60 }
 0x10c   : > { %v618_v0 = vrot.slane %v388_v63, 1  ;;  %1314 = vmatmul.mubr.msk.f32.gmra.mrb[2].mxu0 %vm395_vm3, %v388_v63  ;;  %v622_v9 = vrot.slane %v597_v4, 1 }
 0x10e   : > { %v580_v5 = vpop.permute.xlu1 %579  ;;  %v369_v6 = vpop.permute.xlu0 %368  ;;  %v620_v3 = vsel %vm240_vm0, %v618_v0, %v619_v1 }
 0x10f   : > { %v389_v8 = vsel %vm384_vm2, %v1623_v7, %v369_v6  ;;  %1330 = vmatmul.mubr.msk.f32.gmra.mrb[2].mxu1 %vm395_vm3, %v620_v3  ;;  %v598_v11 = vsel %vm384_vm2, %v1627_v15, %v580_v5 }
 0x110   : > { %v621_v2 = vrot.slane %v389_v8, 1  ;;  %1316 = vmatprep.mubr.msk.f32.mxu0 %vm395_vm3, %v389_v8  ;;  %v625_v17 = vrot.slane %v598_v11, 1 }
 0x112   : > { %v582_v12 = vpop.permute.xlu1 %581  ;;  %v371_v13 = vpop.permute.xlu0 %370  ;;  %v623_v10 = vsel %vm240_vm0, %v621_v2, %v622_v9 }
 0x113   : > { %v390_v16 = vsel %vm384_vm2, %v1635_v14, %v371_v13  ;;  %1332 = vmatprep.mubr.msk.f32.mxu1 %vm395_vm3, %v623_v10  ;;  %v599_v19 = vsel %vm384_vm2, %v1645_v21, %v582_v12 }
 0x114   : > { %v624_v7 = vrot.slane %v390_v16, 1  ;;  %1317 = vmatmul.mubr.msk.f32.gmra.mrb[4].mxu0 %vm395_vm3, %v390_v16  ;;  %v628_v27 = vrot.slane %v599_v19, 1 }
 0x116   : > { %v584_v20 = vpop.permute.xlu1 %583  ;;  %v373_v22 = vpop.permute.xlu0 %372  ;;  %v626_v15 = vsel %vm240_vm0, %v624_v7, %v625_v17 }
 0x117   : > { %v391_v24 = vsel %vm384_vm2, %v1653_v18, %v373_v22  ;;  %1333 = vmatmul.mubr.msk.f32.gmra.mrb[4].mxu1 %vm395_vm3, %v626_v15  ;;  %v600_v23 = vsel %vm384_vm2, %v1657_v26, %v584_v20 }
 0x118   : > { %v627_v14 = vrot.slane %v391_v24, 1  ;;  %1319 = vmatprep.mubr.msk.f32.mxu0 %vm395_vm3, %v391_v24  ;;  %v631_v28 = vrot.slane %v600_v23, 1 }
 0x11a   : > { %v375_v31 = vpop.permute.xlu0 %374  ;;  %v629_v32 = vsel %vm240_vm0, %v627_v14, %v628_v27 }
 0x11b   : > { %v392_v21 = vsel %vm384_vm2, %v1665_v25, %v375_v31  ;;  %1335 = vmatprep.mubr.msk.f32.mxu1 %vm395_vm3, %v629_v32  ;;  %v963_v25 = vpop.permute.xlu1 %962 }
 0x11c   : > { %v630_v34 = vrot.slane %v392_v21, 1  ;;  %1320 = vmatmul.mubr.msk.f32.gmra.mrb[6].mxu0 %vm395_vm3, %v392_v21  ;;  %v965_v36 = vsel %vm384_vm2, %v1669_v29, %v963_v25  ;;  %v1775_v29 = vld [vmem:[%s1965_s3] ss:$0 sm:$0xff] }
 0x11d   : > { %1342 = vmatprep.mubr.msk.f32.mxu0 %vm395_vm3, %v386_v50  ;;  %v968_v37 = vrot.slane %v965_v36, 1 }
 0x11e   : > { %v632_v18 = vsel %vm240_vm0, %v630_v34, %v631_v28  ;;  %v823_v26 = vpop.permute.xlu0 %822 }
 0x11f   : > { %1336 = vmatmul.mubr.msk.f32.gmra.mrb[6].mxu1 %vm395_vm3, %v632_v18  ;;  %v825_v35 = vsel %vm384_vm2, %v1677_v30, %v823_v26 }
 0x120   : > { %1343 = vmatmul.mubr.msk.f32.vlgmr.msra.gmra.mrb[8].mxu0 %vm395_vm3, %v387_v56  ;;  %1358 = vmatprep.mubr.msk.f32.mxu1 %vm395_vm3, %v614_v55  ;;  %v967_v33 = vrot.slane %v825_v35, 1 }
 0x121   : > { %1345 = vmatprep.mubr.msk.f32.mxu0 %vm395_vm3, %v388_v63 }
 0x122   : > { %v969_v30 = vsel %vm240_vm0, %v967_v33, %v968_v37 }
 0x123   : > { %1359 = vmatmul.mubr.msk.f32.vlgmr.msra.gmra.mrb[8].mxu1 %vm395_vm3, %v617_v62 }
 0x124   : > { %1346 = vmatmul.mubr.msk.f32.gmra.mrb[10].mxu0 %vm395_vm3, %v389_v8  ;;  %1361 = vmatprep.mubr.msk.f32.mxu1 %vm395_vm3, %v620_v3 }
 0x125   : > { %1348 = vmatprep.mubr.msk.f32.mxu0 %vm395_vm3, %v390_v16 }
 0x127   : > { %1362 = vmatmul.mubr.msk.f32.gmra.mrb[10].mxu1 %vm395_vm3, %v623_v10 }
 0x128   : > { %1349 = vmatmul.mubr.msk.f32.gmra.mrb[12].mxu0 %vm395_vm3, %v391_v24  ;;  %1364 = vmatprep.mubr.msk.f32.mxu1 %vm395_vm3, %v626_v15 }
 0x129   : > { %1351 = vmatprep.mubr.msk.f32.mxu0 %vm395_vm3, %v392_v21 }
 0x12b   : > { %1365 = vmatmul.mubr.msk.f32.gmra.mrb[12].mxu1 %vm395_vm3, %v629_v32 }
 0x12c   : > { %1352 = vmatmul.mubr.msk.f32.gmra.mrb[14].mxu0 %vm395_vm3, %v825_v35  ;;  %1367 = vmatprep.mubr.msk.f32.mxu1 %vm395_vm3, %v632_v18 }
 0x12f   : > { %1368 = vmatmul.mubr.msk.f32.gmra.mrb[14].mxu1 %vm395_vm3, %v969_v30 }
 0x1d7   : > { %v1312_v40 = vpop.f32.mrb[0].mxu0 }
 0x1d8   : > { %v532_v41 = vmul.f32 %v1312_v40, %v1770_v39  ;;  %v486_v42 = vpop.f32.mrb[1].mxu0 }
 0x1d9   : > { %v531_v44 = vmul.f32 %v1770_v39, %v486_v42 }
 0x1da   : > { %v1780_v38 = vadd.f32 %v1775_v29, %v532_v41  ;;  %v1328_v46 = vpop.f32.mrb[0].mxu1 }
 0x1db   : > { %v1783_v47 = vadd.f32 %v1775_v29, %v531_v44  ;;  %v758_v45 = vmul.f32 %v1328_v46, %v1770_v39  ;;  %v718_v48 = vpop.f32.mrb[1].mxu1 }
 0x1dc   : > { %v757_v49 = vmul.f32 %v1770_v39, %v718_v48 }
 0x1dd   : > { %v766_v50 = vadd.f32 %v1775_v29, %v758_v45 }
 0x1de   : > { %v765_v43 = vadd.f32 %v1775_v29, %v757_v49 }
 0x1df   : > { %v774_v51 = vmax.f32 %v766_v50, 0.0  ;;  %v1315_v52 = vpop.f32.mrb[2].mxu0 }
 0x1e0   : > { %v773_v53 = vmax.f32 %v765_v43, 0.0  ;;  %v534_v54 = vmul.f32 %v1315_v52, %v1770_v39  ;;  %v496_v55 = vpop.f32.mrb[3].mxu0 }
 0x1e1   : > { %v533_v56 = vmul.f32 %v1770_v39, %v496_v55  ;;  %791 = vrot.lane.b32.xlu1 %v774_v51, %s1406_s30 }
 0x1e2   : > { %v1793_v57 = vadd.f32 %v1775_v29, %v534_v54  ;;  %789 = vrot.lane.b32.xlu0 %v773_v53, %s1406_s30  ;;  %v1331_v58 = vpop.f32.mrb[2].mxu1 }
 0x1e3   : > { %v1797_v59 = vadd.f32 %v1775_v29, %v533_v56  ;;  %v760_v60 = vmul.f32 %v1331_v58, %v1770_v39  ;;  %v728_v61 = vpop.f32.mrb[3].mxu1 }
 0x1e4   : > { %v759_v62 = vmul.f32 %v1770_v39, %v728_v61 }
 0x1e5   : > { %v768_v63 = vadd.f32 %v1775_v29, %v760_v60 }
 0x1e6   : > { %v767_v1 = vadd.f32 %v1775_v29, %v759_v62 }
 0x1e7   : > { %v776_v0 = vmax.f32 %v768_v63, 0.0  ;;  %v1318_v4 = vpop.f32.mrb[4].mxu0 }
 0x1e8   : > { %v775_v5 = vmax.f32 %v767_v1, 0.0  ;;  %v536_v6 = vmul.f32 %v1318_v4, %v1770_v39  ;;  %v506_v3 = vpop.f32.mrb[5].mxu0 }
 0x1e9   : > { %v535_v8 = vmul.f32 %v1770_v39, %v506_v3  ;;  %795 = vrot.lane.b32.xlu1 %v776_v0, %s1406_s30 }
 0x1ea   : > { %v1807_v9 = vadd.f32 %v1775_v29, %v536_v6  ;;  %793 = vrot.lane.b32.xlu0 %v775_v5, %s1406_s30  ;;  %v1334_v2 = vpop.f32.mrb[4].mxu1 }
 0x1eb   : > { %v1811_v11 = vadd.f32 %v1775_v29, %v535_v8  ;;  %v762_v12 = vmul.f32 %v1334_v2, %v1770_v39  ;;  %v738_v13 = vpop.f32.mrb[5].mxu1 }
 0x1ec   : > { %v761_v10 = vmul.f32 %v1770_v39, %v738_v13 }
 0x1ed   : > { %v770_v16 = vadd.f32 %v1775_v29, %v762_v12 }
 0x1ee   : > { %v769_v17 = vadd.f32 %v1775_v29, %v761_v10 }
 0x1ef   : > { %v778_v7 = vmax.f32 %v770_v16, 0.0  ;;  %v1321_v19 = vpop.f32.mrb[6].mxu0 }
 0x1f0   : > { %v777_v20 = vmax.f32 %v769_v17, 0.0  ;;  %v538_v22 = vmul.f32 %v1321_v19, %v1770_v39  ;;  %v516_v15 = vpop.f32.mrb[7].mxu0 }
 0x1f1   : > { %v537_v24 = vmul.f32 %v1770_v39, %v516_v15  ;;  %799 = vrot.lane.b32.xlu1 %v778_v7, %s1406_s30 }
 0x1f2   : > { %v1821_v27 = vadd.f32 %v1775_v29, %v538_v22  ;;  %797 = vrot.lane.b32.xlu0 %v777_v20, %s1406_s30  ;;  %v1337_v14 = vpop.f32.mrb[6].mxu1 }
 0x1f3   : > { %v1825_v23 = vadd.f32 %v1775_v29, %v537_v24  ;;  %v764_v31 = vmul.f32 %v1337_v14, %v1770_v39  ;;  %v748_v32 = vpop.f32.mrb[7].mxu1  ;;  %v1344_v21 = vpop.f32.mrb[8].mxu0 }
 0x1f4   : > { %v763_v28 = vmul.f32 %v1770_v39, %v748_v32  ;;  %v938_v34 = vmul.f32 %v1344_v21, %v1770_v39  ;;  %v898_v18 = vpop.f32.mrb[9].mxu0 }
 0x1f5   : > { %v772_v26 = vadd.f32 %v1775_v29, %v764_v31  ;;  %v937_v25 = vmul.f32 %v1770_v39, %v898_v18 }
 0x1f6   : > { %v771_v35 = vadd.f32 %v1775_v29, %v763_v28  ;;  %v1834_v36 = vadd.f32 %v1775_v29, %v938_v34  ;;  %v1360_v33 = vpop.f32.mrb[8].mxu1 }
 0x1f7   : > { %v780_v37 = vmax.f32 %v772_v26, 0.0  ;;  %v1837_v30 = vadd.f32 %v1775_v29, %v937_v25  ;;  %v1081_v40 = vmul.f32 %v1360_v33, %v1770_v39  ;;  %v1347_v41 = vpop.f32.mrb[10].mxu0  ;;  %v1041_v42 = vpop.f32.mrb[9].mxu1  ;;  %v554_v33 = vmax.f32 %v1780_v38, 0.0 }
 0x1f8   : > { %v779_v44 = vmax.f32 %v771_v35, 0.0  ;;  %v940_v46 = vmul.f32 %v1347_v41, %v1770_v39  ;;  %v1080_v45 = vmul.f32 %v1770_v39, %v1041_v42  ;;  %v908_v48 = vpop.f32.mrb[11].mxu0  ;;  %v556_v41 = vmax.f32 %v1793_v57, 0.0 }
 0x1f9   : > { %v1089_v49 = vadd.f32 %v1775_v29, %v1081_v40  ;;  %v939_v50 = vmul.f32 %v1770_v39, %v908_v48  ;;  %803 = vrot.lane.b32.xlu1 %v780_v37, %s1406_s30  ;;  %v555_v42 = vmax.f32 %v1797_v59, 0.0  ;;  %v558_v48 = vmax.f32 %v1807_v9, 0.0 }
 0x1fa   : > { %v1846_v43 = vadd.f32 %v1775_v29, %v940_v46  ;;  %v1088_v51 = vadd.f32 %v1775_v29, %v1080_v45  ;;  %v1363_v52 = vpop.f32.mrb[10].mxu1  ;;  %801 = vrot.lane.b32.xlu0 %v779_v44, %s1406_s30 }
 0x1fb   : > { %v1097_v53 = vmax.f32 %v1089_v49, 0.0  ;;  %v1851_v54 = vadd.f32 %v1775_v29, %v939_v50  ;;  %v1083_v55 = vmul.f32 %v1363_v52, %v1770_v39  ;;  %v1350_v56 = vpop.f32.mrb[12].mxu0  ;;  %v1051_v58 = vpop.f32.mrb[11].mxu1  ;;  %v557_v49 = vmax.f32 %v1811_v11, 0.0 }
 0x1fc   : > { %v1096_v60 = vmax.f32 %v1088_v51, 0.0  ;;  %v942_v61 = vmul.f32 %v1350_v56, %v1770_v39  ;;  %v1082_v62 = vmul.f32 %v1770_v39, %v1051_v58  ;;  %v918_v63 = vpop.f32.mrb[13].mxu0  ;;  %v560_v52 = vmax.f32 %v1821_v27, 0.0 }
 0x1fd   : > { %v1091_v1 = vadd.f32 %v1775_v29, %v1083_v55  ;;  %v941_v0 = vmul.f32 %v1770_v39, %v918_v63  ;;  %1114 = vrot.lane.b32.xlu1 %v1097_v53, %s1406_s30  ;;  %v559_v53 = vmax.f32 %v1825_v23, 0.0  ;;  %v954_v58 = vmax.f32 %v1834_v36, 0.0 }
 0x1fe   : > { %v1860_v4 = vadd.f32 %v1775_v29, %v942_v61  ;;  %v1090_v5 = vadd.f32 %v1775_v29, %v1082_v62  ;;  %v1366_v6 = vpop.f32.mrb[12].mxu1  ;;  %1112 = vrot.lane.b32.xlu0 %v1096_v60, %s1406_s30  ;;  %v953_v60 = vmax.f32 %v1837_v30, 0.0  ;;  %v956_v63 = vmax.f32 %v1846_v43, 0.0 }
 0x1ff   : > { %v1099_v3 = vmax.f32 %v1091_v1, 0.0  ;;  %v1865_v8 = vadd.f32 %v1775_v29, %v941_v0  ;;  %v1085_v2 = vmul.f32 %v1366_v6, %v1770_v39  ;;  %v1353_v12 = vpop.f32.mrb[14].mxu0  ;;  %v1061_v13 = vpop.f32.mrb[13].mxu1  ;;  %v955_v36 = vmax.f32 %v1851_v54, 0.0 }
 0x200   : > { %v1098_v10 = vmax.f32 %v1090_v5, 0.0  ;;  %v944_v16 = vmul.f32 %v1353_v12, %v1770_v39  ;;  %v1084_v17 = vmul.f32 %v1770_v39, %v1061_v13  ;;  %v928_v7 = vpop.f32.mrb[15].mxu0  ;;  %v958_v6 = vmax.f32 %v1860_v4, 0.0 }
 0x201   : > { %v1093_v19 = vadd.f32 %v1775_v29, %v1085_v2  ;;  %v943_v20 = vmul.f32 %v1770_v39, %v928_v7  ;;  %1118 = vrot.lane.b32.xlu1 %v1099_v3, %s1406_s30  ;;  %v957_v43 = vmax.f32 %v1865_v8, 0.0 }
 0x202   : > { %v1874_v22 = vadd.f32 %v1775_v29, %v944_v16  ;;  %v1092_v15 = vadd.f32 %v1775_v29, %v1084_v17  ;;  %1116 = vrot.lane.b32.xlu0 %v1098_v10, %s1406_s30  ;;  %v1369_v24 = vpop.f32.mrb[14].mxu1 }
 0x203   : > { %v1101_v14 = vmax.f32 %v1093_v19, 0.0  ;;  %v1879_v31 = vadd.f32 %v1775_v29, %v943_v20  ;;  %v1087_v32 = vmul.f32 %v1369_v24, %v1770_v39  ;;  %v1071_v21 = vpop.f32.mrb[15].mxu1 }
 0x204   : > { %v1100_v28 = vmax.f32 %v1092_v15, 0.0  ;;  %v1086_v34 = vmul.f32 %v1770_v39, %v1071_v21  ;;  %v553_v39 = vmax.f32 %v1783_v47, 0.0  ;;  %v960_v13 = vmax.f32 %v1874_v22, 0.0 }
 0x205   : > { %v1095_v18 = vadd.f32 %v1775_v29, %v1087_v32  ;;  %1122 = vrot.lane.b32.xlu1 %v1101_v14, %s1406_s30  ;;  %v959_v10 = vmax.f32 %v1879_v31, 0.0 }
 0x206   : > { %v1094_v26 = vadd.f32 %v1775_v29, %v1086_v34  ;;  %1120 = vrot.lane.b32.xlu0 %v1100_v28, %s1406_s30 }
 0x207   : > { %v1103_v25 = vmax.f32 %v1095_v18, 0.0 }
 0x208   : > { %v1102_v35 = vmax.f32 %v1094_v26, 0.0 }
 0x209   : > { %1126 = vrot.lane.b32.xlu1 %v1103_v25, %s1406_s30 }
 0x20a   : > { %1124 = vrot.lane.b32.xlu0 %v1102_v35, %s1406_s30 }
 0x253   : > { %v792_v29 = vpop.permute.xlu1 %791 }
 0x254   : > { %v814_v37 = vsel %vm384_vm2, %v554_v33, %v792_v29  ;;  %v790_v40 = vpop.permute.xlu0 %789 }
 0x255   : > { %1146 = vst.msk [vmem:[%s1894_s22 + $0x10] sm:$0xff] %vm395_vm3, %v814_v37  ;;  %v813_v38 = vsel %vm384_vm2, %v553_v39, %v790_v40 }
 0x256   : > { %1144 = vst.msk [vmem:[%s1894_s22] sm:$0xff] %vm395_vm3, %v813_v38 }
 0x25b   : > { %v796_v44 = vpop.permute.xlu1 %795 }
 0x25c   : > { %v816_v46 = vsel %vm384_vm2, %v556_v41, %v796_v44  ;;  %v794_v47 = vpop.permute.xlu0 %793 }
 0x25d   : > { %1150 = vst.msk [vmem:[%s1894_s22 + $0x30] sm:$0xff] %vm395_vm3, %v816_v46  ;;  %v815_v45 = vsel %vm384_vm2, %v555_v42, %v794_v47 }
 0x25e   : > { %1148 = vst.msk [vmem:[%s1894_s22 + $0x20] sm:$0xff] %vm395_vm3, %v815_v45 }
 0x263   : > { %v800_v50 = vpop.permute.xlu1 %799 }
 0x264   : > { %v818_v57 = vsel %vm384_vm2, %v558_v48, %v800_v50  ;;  %v798_v59 = vpop.permute.xlu0 %797 }
 0x265   : > { %1154 = vst.msk [vmem:[%s1894_s22 + $0x50] sm:$0xff] %vm395_vm3, %v818_v57  ;;  %v817_v51 = vsel %vm384_vm2, %v557_v49, %v798_v59 }
 0x266   : > { %1152 = vst.msk [vmem:[%s1894_s22 + $0x40] sm:$0xff] %vm395_vm3, %v817_v51 }
 0x26b   : > { %v804_v9 = vpop.permute.xlu1 %803 }
 0x26c   : > { %v820_v55 = vsel %vm384_vm2, %v560_v52, %v804_v9  ;;  %v802_v11 = vpop.permute.xlu0 %801 }
 0x26d   : > { %1158 = vst.msk [vmem:[%s1894_s22 + $0x70] sm:$0xff] %vm395_vm3, %v820_v55  ;;  %v819_v56 = vsel %vm384_vm2, %v559_v53, %v802_v11 }
 0x26e   : > { %1156 = vst.msk [vmem:[%s1894_s22 + $0x60] sm:$0xff] %vm395_vm3, %v819_v56 }
 0x26f   : > { %v1115_v27 = vpop.permute.xlu1 %1114 }
 0x270   : > { %v1137_v61 = vsel %vm384_vm2, %v954_v58, %v1115_v27  ;;  %v1113_v23 = vpop.permute.xlu0 %1112 }
 0x271   : > { %1147 = vst.msk [vmem:[%s1894_s22 + $0x18] sm:$0xff] %vm395_vm3, %v1137_v61  ;;  %v1136_v62 = vsel %vm384_vm2, %v953_v60, %v1113_v23 }
 0x272   : > { %1145 = vst.msk [vmem:[%s1894_s22 + $0x8] sm:$0xff] %vm395_vm3, %v1136_v62 }
 0x273   : > { %v1119_v1 = vpop.permute.xlu1 %1118 }
 0x274   : > { %v1139_v0 = vsel %vm384_vm2, %v956_v63, %v1119_v1  ;;  %v1117_v30 = vpop.permute.xlu0 %1116 }
 0x275   : > { %1151 = vst.msk [vmem:[%s1894_s22 + $0x38] sm:$0xff] %vm395_vm3, %v1139_v0  ;;  %v1138_v5 = vsel %vm384_vm2, %v955_v36, %v1117_v30 }
 0x276   : > { %1149 = vst.msk [vmem:[%s1894_s22 + $0x28] sm:$0xff] %vm395_vm3, %v1138_v5 }
 0x277   : > { %v1123_v3 = vpop.permute.xlu1 %1122 }
 0x278   : > { %v1141_v2 = vsel %vm384_vm2, %v958_v6, %v1123_v3  ;;  %v1121_v54 = vpop.permute.xlu0 %1120 }
 0x279   : > { %1155 = vst.msk [vmem:[%s1894_s22 + $0x58] sm:$0xff] %vm395_vm3, %v1141_v2  ;;  %v1140_v12 = vsel %vm384_vm2, %v957_v43, %v1121_v54 }
 0x27a   : > { %1153 = vst.msk [vmem:[%s1894_s22 + $0x48] sm:$0xff] %vm395_vm3, %v1140_v12 }
 0x27b   : > { %v1127_v4 = vpop.permute.xlu1 %1126 }
 0x27c   : > { %v1143_v16 = vsel %vm384_vm2, %v960_v13, %v1127_v4  ;;  %v1125_v17 = vpop.permute.xlu0 %1124 }
 0x27d   : > { %1159 = vst.msk [vmem:[%s1894_s22 + $0x78] sm:$0xff] %vm395_vm3, %v1143_v16  ;;  %v1142_v8 = vsel %vm384_vm2, %v959_v10, %v1125_v17 }
 0x27e   : > { %1157 = vst.msk [vmem:[%s1894_s22 + $0x68] sm:$0xff] %vm395_vm3, %v1142_v8 }
 0x27f PF: > { %s14_s15 = sadd.s32 1, %s1403_s15  }
 0x280   : > { %p11_p4 = scmp.ge.s32.totalorder %s14_s15, 4  }
 0x282   :  { %13 = sbr.rel (!%p11_p4) target bundleno = 1 (0x1), region = 69 }

// kernel: unet_forward_pallas.3
= control target key start
LH: loop header
LB: loop body
LE: loop exit
PB: predicated region body
PF: predicated region fallthrough
CT: control target
= control target key end

     0   :  { %s3500_s15 = smov 0   ;;  %s5445_s0 = inlined_call_operand.vmem [shape: f32[2,18,18,8], index: 0, kind: input, shape index: {}]   ;;  %s5446_s1 = inlined_call_operand.vmem [shape: f32[2,2,32,8], index: 1, kind: input, shape index: {}]   ;;  %s5447_s2 = inlined_call_operand.vmem [shape: f32[1,8], index: 2, kind: input, shape index: {}]   ;;  %s5448_s3 = inlined_call_operand.vmem [shape: f32[1,8], index: 3, kind: input, shape index: {}]   ;;  %s5449_s4 = inlined_call_operand.vmem [shape: f32[2,32,16,16], index: 4, kind: output, shape index: {}]  }
   0x1 LB: > { %s2899_s16 = sadd.s32 4294967295, %s3471_s15   ;;  %p2903_p0 = scmp.ge.s32.totalorder %s3471_s15, 1  ;;  %s3471_s15 = sphi %s3500_s15, %s14_s15  }
   0x2   : > { %p162_p1 = scmp.lt.s32.totalorder %s3471_s15, 3 }
   0x4   : > { %p163_p2 = pnand %p2903_p0, %p162_p1 }
   0x6   : > { %166 = sbr.rel (%p163_p2) target bundleno = 822 (0x336), region = 36 }
   0xd   : > { %p188_p3 = scmp.lt.s32.totalorder %s2899_s16, 1  ;;  %vm308_vm0 = vcmask 1046528   ;;  %s3473_s21 = smov 8   ;;  %vm507_vm1 = vcmask 64512   ;;  %vm744_vm2 = vcmask 130048   ;;  %vm781_vm3 = vcmask 261120  }
   0xe   : > { %s3474_s22 = smov 16  }
   0xf   : > { %s5508_s16 = smov (!%p188_p3, %s2899_s16), 1 }
  0x10   : > { %s3452_s17 = smul.u32 432, %s5508_s16  ;;  %s3051_s10 = sshll.u32 %s5508_s16, 9 }
  0x11   : > { %s4986_s12 = scalar_lea.vmem %s5449_s4, %s3051_s10 }
  0x12   : > { %s3514_s20 = scalar_lea.vmem %s5445_s0, %s3452_s17 }
  0x13   : > { %v3517_v0 = vld [vmem:[%s3514_s20 + $0x28] sm:$0x3]  ;;  %v3520_v1 = vld [vmem:[%s3514_s20 + $0x18] sm:$0xff]  ;;  %v3523_v2 = vld [vmem:[%s3514_s20 + $0x20] sm:$0xff] }
  0x14   : > { %v317_v3 = vrot.slane %v3517_v0, 1  ;;  %v314_v4 = vrot.slane %v3520_v1, 1  ;;  %v315_v5 = vrot.slane %v3523_v2, 1  ;;  %v3529_v6 = vld [vmem:[%s3514_s20 + $0x40] sm:$0x3]  ;;  %v3532_v7 = vld [vmem:[%s3514_s20 + $0x30] sm:$0xff] }
  0x15   : > { %v3535_v8 = vld [vmem:[%s3514_s20 + $0x38] sm:$0xff]  ;;  %v322_v10 = vrot.slane %v3529_v6, 1  ;;  %v319_v11 = vrot.slane %v3532_v7, 1  ;;  %v3545_v14 = vld [vmem:[%s3514_s20 + $0x50] sm:$0xff]  ;;  %v3551_v16 = vld [vmem:[%s3514_s20 + $0x48] sm:$0xff] }
  0x16   : > { %546 = vrot.lane.b32.xlu1 %v317_v3, %s3473_s21  ;;  %v316_v9 = vsel %vm308_vm0, %v314_v4, %v315_v5  ;;  %v320_v12 = vrot.slane %v3535_v8, 1  ;;  %v318_v13 = vsel %vm308_vm0, %v315_v5, %v317_v3  ;;  %v3548_v15 = vld [vmem:[%s3514_s20 + $0x58] sm:$0x3]  ;;  %v325_v18 = vrot.slane %v3545_v14, 1  ;;  %v3561_v22 = vld [vmem:[%s3514_s20 + $0x60] sm:$0xff]  ;;  %v3564_v23 = vld [vmem:[%s3514_s20 + $0x68] sm:$0xff] }
  0x17   : > { %403 = vrot.lane.b32.xlu0 %v316_v9, %s3473_s21  ;;  %v327_v19 = vrot.slane %v3548_v15, 1  ;;  %v324_v21 = vrot.slane %v3551_v16, 1  ;;  %v329_v25 = vrot.slane %v3561_v22, 1  ;;  %v330_v26 = vrot.slane %v3564_v23, 1  ;;  %v3576_v29 = vld [vmem:[%s3514_s20 + $0x70] sm:$0x3] }
  0x18   : > { %v321_v17 = vsel %vm308_vm0, %v319_v11, %v320_v12  ;;  %v323_v20 = vsel %vm308_vm0, %v320_v12, %v322_v10  ;;  %v3579_v30 = vld [vmem:[%s3514_s20 + $0x80] sm:$0xff]  ;;  %v3582_v31 = vld [vmem:[%s3514_s20 + $0x88] sm:$0x3]  ;;  %v3585_v32 = vld [vmem:[%s3514_s20 + $0x78] sm:$0xff]  ;;  %v332_v33 = vrot.slane %v3576_v29, 1 }
  0x19   : > { %v328_v24 = vsel %vm308_vm0, %v325_v18, %v327_v19  ;;  %v326_v27 = vsel %vm308_vm0, %v324_v21, %v325_v18  ;;  %v331_v28 = vsel %vm308_vm0, %v329_v25, %v330_v26  ;;  %v335_v34 = vrot.slane %v3579_v30, 1  ;;  %v3595_v38 = vld [vmem:[%s3514_s20 + $0x90] sm:$0xff]  ;;  %v3598_v39 = vld [vmem:[%s3514_s20 + $0x98] sm:$0xff]  ;;  %v3607_v44 = vld [vmem:[%s3514_s20 + $0xa0] sm:$0x3] }
  0x1a   : > { %548 = vrot.lane.b32.xlu1 %v322_v10, %s3473_s21  ;;  %v337_v35 = vrot.slane %v3582_v31, 1  ;;  %v333_v36 = vsel %vm308_vm0, %v330_v26, %v332_v33  ;;  %v334_v37 = vrot.slane %v3585_v32, 1  ;;  %v339_v41 = vrot.slane %v3595_v38, 1  ;;  %v3614_v47 = vld [vmem:[%s3514_s20 + $0xb0] sm:$0xff]  ;;  %v3617_v48 = vld [vmem:[%s3514_s20 + $0xb8] sm:$0x3] }
  0x1b   : > { %405 = vrot.lane.b32.xlu0 %v318_v13, %s3473_s21  ;;  %v340_v42 = vrot.slane %v3598_v39, 1  ;;  %v342_v46 = vrot.slane %v3607_v44, 1  ;;  %v3620_v49 = vld [vmem:[%s3514_s20 + $0xa8] sm:$0xff]  ;;  %v345_v50 = vrot.slane %v3614_v47, 1  ;;  %v347_v51 = vrot.slane %v3617_v48, 1  ;;  %v3629_v54 = vld [vmem:[%s3514_s20 + $0xc0] sm:$0xff] }
  0x1c   : > { %v338_v40 = vsel %vm308_vm0, %v335_v34, %v337_v35  ;;  %v336_v43 = vsel %vm308_vm0, %v334_v37, %v335_v34  ;;  %v344_v53 = vrot.slane %v3620_v49, 1  ;;  %v3632_v55 = vld [vmem:[%s3514_s20 + $0xc8] sm:$0xff]  ;;  %v349_v57 = vrot.slane %v3629_v54, 1  ;;  %v3641_v60 = vld [vmem:[%s3514_s20 + $0xd0] sm:$0x3]  ;;  %v3648_v63 = vld [vmem:[%s3514_s20 + $0xe0] sm:$0xff] }
  0x1d   : > { %v341_v45 = vsel %vm308_vm0, %v339_v41, %v340_v42  ;;  %v343_v52 = vsel %vm308_vm0, %v340_v42, %v342_v46  ;;  %v348_v56 = vsel %vm308_vm0, %v345_v50, %v347_v51  ;;  %v350_v58 = vrot.slane %v3632_v55, 1  ;;  %v3651_v3 = vld [vmem:[%s3514_s20 + $0xe8] sm:$0x3]  ;;  %v3654_v4 = vld [vmem:[%s3514_s20 + $0xd8] sm:$0xff]  ;;  %v3663_v12 = vld [vmem:[%s3514_s20 + $0xf0] sm:$0xff] }
  0x1e   : > { %407 = vrot.lane.b32.xlu1 %v321_v17, %s3473_s21  ;;  %v346_v59 = vsel %vm308_vm0, %v344_v53, %v345_v50  ;;  %v352_v62 = vrot.slane %v3641_v60, 1  ;;  %v355_v5 = vrot.slane %v3648_v63, 1  ;;  %v357_v9 = vrot.slane %v3651_v3, 1  ;;  %v3666_v13 = vld [vmem:[%s3514_s20 + $0xf8] sm:$0xff]  ;;  %v3675_v21 = vld [vmem:[%s3514_s20 + $0x100] sm:$0x3] }
  0x1f   : > { %409 = vrot.lane.b32.xlu0 %v323_v20, %s3473_s21  ;;  %v351_v61 = vsel %vm308_vm0, %v349_v57, %v350_v58  ;;  %v354_v11 = vrot.slane %v3654_v4, 1  ;;  %v359_v18 = vrot.slane %v3663_v12, 1  ;;  %v362_v25 = vrot.slane %v3675_v21, 1  ;;  %v3682_v26 = vld [vmem:[%s3514_s20 + $0x110] sm:$0xff]  ;;  %v3697_v37 = vld [vmem:[%s3514_s20 + $0x120] sm:$0xff] }
  0x20   : > { %v353_v10 = vsel %vm308_vm0, %v350_v58, %v352_v62  ;;  %v358_v17 = vsel %vm308_vm0, %v355_v5, %v357_v9  ;;  %v369_v42 = vrot.slane %v3697_v37, 1  ;;  %v3719_v53 = vld [vmem:[%s3514_s20 + $0x148] sm:$0x3] }
  0x21   : > { %v356_v20 = vsel %vm308_vm0, %v354_v11, %v355_v5  ;;  %v377_v58 = vrot.slane %v3719_v53, 1  ;;  %v3734_v5 = vld [vmem:[%s3514_s20 + $0x158] sm:$0xff] }
  0x22   : > { %413 = vrot.lane.b32.xlu1 %v328_v24, %s3473_s21  ;;  %v380_v11 = vrot.slane %v3734_v5, 1 }
  0x23   : > { %411 = vrot.lane.b32.xlu0 %v326_v27, %s3473_s21  ;;  %v3685_v27 = vld [vmem:[%s3514_s20 + $0x118] sm:$0x3] }
  0x24   : > { %v367_v34 = vrot.slane %v3685_v27, 1 }
  0x26   : > { %415 = vrot.lane.b32.xlu1 %v331_v28, %s3473_s21  ;;  %v3688_v28 = vld [vmem:[%s3514_s20 + $0x108] sm:$0xff] }
  0x27   : > { %550 = vrot.lane.b32.xlu0 %v327_v19, %s3473_s21  ;;  %v360_v19 = vrot.slane %v3666_v13, 1 }
  0x29   : > { %v361_v24 = vsel %vm308_vm0, %v359_v18, %v360_v19  ;;  %v3743_v18 = vld [vmem:[%s3514_s20 + $0x160] sm:$0x3] }
  0x2a   : > { %552 = vrot.lane.b32.xlu1 %v332_v33, %s3473_s21  ;;  %v365_v33 = vrot.slane %v3682_v26, 1 }
  0x2b   : > { %417 = vrot.lane.b32.xlu0 %v333_v36, %s3473_s21  ;;  %v364_v36 = vrot.slane %v3688_v28, 1 }
  0x2c   : > { %v368_v41 = vsel %vm308_vm0, %v365_v33, %v367_v34 }
  0x2e   : > { %421 = vrot.lane.b32.xlu1 %v338_v40, %s3473_s21  ;;  %v3700_v40 = vld [vmem:[%s3514_s20 + $0x128] sm:$0xff] }
  0x2f   : > { %419 = vrot.lane.b32.xlu0 %v336_v43, %s3473_s21  ;;  %v370_v43 = vrot.slane %v3700_v40, 1 }
  0x31   : > { %v371_v50 = vsel %vm308_vm0, %v369_v42, %v370_v43  ;;  %v3765_v42 = vld [vmem:[%s3514_s20] sm:$0xff] }
  0x32   : > { %423 = vrot.lane.b32.xlu1 %v341_v45, %s3473_s21  ;;  %v366_v45 = vsel %vm308_vm0, %v364_v36, %v365_v33  ;;  %v3756_v33 = vld [vmem:[%s3514_s20 + $0x168] sm:$0xff]  ;;  %5465 = vst [vmem:[#allocation2_spill] sm:$0xff] %v3765_v42 }
  0x33   : > { %554 = vrot.lane.b32.xlu0 %v337_v35, %s3473_s21  ;;  %v363_v35 = vsel %vm308_vm0, %v360_v19, %v362_v25 }
  0x36   : > { %556 = vrot.lane.b32.xlu1 %v342_v46, %s3473_s21  ;;  %v3709_v46 = vld [vmem:[%s3514_s20 + $0x130] sm:$0x3] }
  0x37   : > { %425 = vrot.lane.b32.xlu0 %v343_v52, %s3473_s21  ;;  %v3716_v52 = vld [vmem:[%s3514_s20 + $0x140] sm:$0xff] }
  0x38   : > { %v375_v57 = vrot.slane %v3716_v52, 1 }
  0x3a   : > { %429 = vrot.lane.b32.xlu1 %v348_v56, %s3473_s21  ;;  %v3722_v56 = vld [vmem:[%s3514_s20 + $0x138] sm:$0xff] }
  0x3b   : > { %427 = vrot.lane.b32.xlu0 %v346_v59, %s3473_s21 }
  0x3e   : > { %431 = vrot.lane.b32.xlu1 %v351_v61, %s3473_s21  ;;  %v374_v61 = vrot.slane %v3722_v56, 1 }
  0x3f   : > { %558 = vrot.lane.b32.xlu0 %v347_v51, %s3473_s21  ;;  %v372_v51 = vrot.slane %v3709_v46, 1 }
  0x41   : > { %v373_v59 = vsel %vm308_vm0, %v370_v43, %v372_v51  ;;  %v3768_v43 = vld [vmem:[%s3514_s20 + $0x8] sm:$0xff] }
  0x42   : > { %560 = vrot.lane.b32.xlu1 %v352_v62, %s3473_s21  ;;  %v3731_v62 = vld [vmem:[%s3514_s20 + $0x150] sm:$0xff] }
  0x43   : > { %433 = vrot.lane.b32.xlu0 %v353_v10, %s3473_s21  ;;  %v379_v10 = vrot.slane %v3731_v62, 1 }
  0x45   : > { %v381_v19 = vsel %vm308_vm0, %v379_v10, %v380_v11  ;;  %v3787_v10 = vld [vmem:[%s3514_s20 + $0x190] sm:$0x3] }
  0x46   : > { %437 = vrot.lane.b32.xlu1 %v358_v17, %s3473_s21  ;;  %v376_v17 = vsel %vm308_vm0, %v374_v61, %v375_v57 }
  0x47   : > { %435 = vrot.lane.b32.xlu0 %v356_v20, %s3473_s21  ;;  %v382_v20 = vrot.slane %v3743_v18, 1 }
  0x49   : > { %v383_v36 = vsel %vm308_vm0, %v380_v11, %v382_v20  ;;  %v3790_v11 = vld [vmem:[%s3514_s20 + $0x180] sm:$0xff] }
  0x4a   : > { %439 = vrot.lane.b32.xlu1 %v361_v24, %s3473_s21  ;;  %v3750_v24 = vld [vmem:[%s3514_s20 + $0x170] sm:$0xff] }
  0x4b   : > { %562 = vrot.lane.b32.xlu0 %v357_v9, %s3473_s21  ;;  %v378_v9 = vsel %vm308_vm0, %v375_v57, %v377_v58 }
  0x4e   : > { %564 = vrot.lane.b32.xlu1 %v362_v25, %s3473_s21  ;;  %v3753_v25 = vld [vmem:[%s3514_s20 + $0x178] sm:$0x3] }
  0x4f   : > { %441 = vrot.lane.b32.xlu0 %v363_v35, %s3473_s21  ;;  %v387_v35 = vrot.slane %v3753_v25, 1 }
  0x52   : > { %445 = vrot.lane.b32.xlu1 %v368_v41, %s3473_s21  ;;  %v384_v41 = vrot.slane %v3756_v33, 1 }
  0x53   : > { %443 = vrot.lane.b32.xlu0 %v366_v45, %s3473_s21 }
  0x56   : > { %447 = vrot.lane.b32.xlu1 %v371_v50, %s3473_s21  ;;  %v309_v50 = vrot.slane %v3765_v42, 1 }
  0x57   : > { %566 = vrot.lane.b32.xlu0 %v367_v34, %s3473_s21  ;;  %v385_v34 = vrot.slane %v3750_v24, 1 }
  0x59   : > { %v388_v45 = vsel %vm308_vm0, %v385_v34, %v387_v35  ;;  %v386_v57 = vsel %vm308_vm0, %v384_v41, %v385_v34  ;;  %v389_v34 = vrot.slane %v3790_v11, 1 }
  0x5a   : > { %568 = vrot.lane.b32.xlu1 %v372_v51, %s3473_s21  ;;  %v310_v51 = vrot.slane %v3768_v43, 1 }
  0x5b   : > { %449 = vrot.lane.b32.xlu0 %v373_v59, %s3473_s21 }
  0x5c   : > { %v311_v59 = vsel %vm308_vm0, %v309_v50, %v310_v51 }
  0x5e   : > { %453 = vrot.lane.b32.xlu1 %v378_v9, %s3473_s21  ;;  %v3784_v9 = vld [vmem:[%s3514_s20 + $0x188] sm:$0xff] }
  0x5f   : > { %451 = vrot.lane.b32.xlu0 %v376_v17, %s3473_s21  ;;  %v390_v17 = vrot.slane %v3784_v9, 1 }
  0x61   : > { %v391_v41 = vsel %vm308_vm0, %v389_v34, %v390_v17 }
  0x62   : > { %455 = vrot.lane.b32.xlu1 %v381_v19, %s3473_s21  ;;  %v392_v19 = vrot.slane %v3787_v10, 1 }
  0x63   : > { %570 = vrot.lane.b32.xlu0 %v377_v58, %s3473_s21  ;;  %v3777_v58 = vld [vmem:[%s3514_s20 + $0x10] sm:$0x3] }
  0x64   : > { %v312_v61 = vrot.slane %v3777_v58, 1 }
  0x66   : > { %572 = vrot.lane.b32.xlu1 %v382_v20, %s3473_s21  ;;  %v313_v20 = vsel %vm308_vm0, %v310_v51, %v312_v61 }
  0x67   : > { %457 = vrot.lane.b32.xlu0 %v383_v36, %s3473_s21  ;;  %v393_v36 = vsel %vm308_vm0, %v390_v17, %v392_v19 }
  0x6a   : > { %461 = vrot.lane.b32.xlu1 %v388_v45, %s3473_s21 }
  0x6b   : > { %459 = vrot.lane.b32.xlu0 %v386_v57, %s3473_s21  ;;  %v777_v57 = vld [vmem:[%s5446_s1] sm:$0xff] }
  0x6e   : > { %399 = vrot.lane.b32.xlu1 %v311_v59, %s3473_s21  ;;  %v778_v59 = vld [vmem:[%s5446_s1 + $0x8] sm:$0xff] }
  0x6f   : > { %574 = vrot.lane.b32.xlu0 %v387_v35, %s3473_s21 }
  0x72   : > { %544 = vrot.lane.b32.xlu1 %v312_v61, %s3473_s21 }
  0x73   : > { %401 = vrot.lane.b32.xlu0 %v313_v20, %s3473_s21  ;;  %v2942_v20 = vld [vmem:[%s5446_s1 + $0x28] sm:$0xff] }
  0x76   : > { %465 = vrot.lane.b32.xlu1 %v393_v36, %s3473_s21 }
  0x77   : > { %463 = vrot.lane.b32.xlu0 %v391_v41, %s3473_s21  ;;  %v780_v41 = vld [vmem:[%s5446_s1 + $0x18] sm:$0xff] }
  0x7a   : > { %576 = vrot.lane.b32.xlu1 %v392_v19, %s3473_s21  ;;  %v2941_v19 = vld [vmem:[%s5446_s1 + $0x20] sm:$0xff] }
  0x7b   : > { %v3428_v36 = vpack.c.bf16 %v2942_v20, %v2941_v19 }
  0x7d   : > { %3429 = vmatprep.subr.bf16.mxu1 %v3428_v36 }
  0x7e   : > { %3431 = vmatpush3.bf16.msra.mxu1 %v3428_v36 }
  0x88   : > { %v547_v35 = vpop.permute.xlu1 %546 }
  0x89   : > { %v404_v45 = vpop.permute.xlu0 %403  ;;  %v3807_v50 = vsel %vm507_vm1, %v3517_v0, %v547_v35  ;;  %v3420_v0 = vpack.c.bf16 %v778_v59, %v777_v57  ;;  %v2943_v57 = vld [vmem:[%s5446_s1 + $0x30] sm:$0xff]  ;;  %v2944_v59 = vld [vmem:[%s5446_s1 + $0x38] sm:$0xff] }
  0x8a   : > { %5466 = vst [vmem:[#allocation3_spill] sm:$0xff] %v3807_v50  ;;  %1227 = vrot.lane.b32.xlu0 %v3807_v50, %s3474_s22  ;;  %v3432_v19 = vpack.c.bf16 %v2944_v59, %v2943_v57 }
  0x8b   : > { %3421 = vmatprep.subr.bf16.mxu0 %v3420_v0 }
  0x8c   : > { %v549_v51 = vpop.permute.xlu1 %548  ;;  %3423 = vmatpush3.bf16.msra.mxu0 %v3420_v0  ;;  %3433 = vmatprep.subr.bf16.mxu1 %v3432_v19 }
  0x8d   : > { %v406_v61 = vpop.permute.xlu0 %405  ;;  %v3819_v17 = vsel %vm507_vm1, %v3529_v6, %v549_v51  ;;  %v779_v6 = vld [vmem:[%s5446_s1 + $0x10] sm:$0xff]  ;;  %3435 = vmatpush3.bf16.msra.mxu1 %v3432_v19 }
  0x8e   : > { %5467 = vst [vmem:[#allocation4_spill] sm:$0xff] %v3819_v17  ;;  %1229 = vrot.lane.b32.xlu0 %v3819_v17, %s3474_s22  ;;  %v3424_v51 = vpack.c.bf16 %v780_v41, %v779_v6 }
  0x90   : > { %v408_v34 = vpop.permute.xlu1 %407  ;;  %3425 = vmatprep.subr.bf16.mxu0 %v3424_v51 }
  0x91   : > { %v410_v35 = vpop.permute.xlu0 %409  ;;  %3427 = vmatpush3.bf16.msra.mxu0 %v3424_v51  ;;  %v3855_v51 = vsel %vm507_vm1, %v3523_v2, %v406_v61  ;;  %v3873_v61 = vsel %vm507_vm1, %v3532_v7, %v408_v34 }
  0x94   : > { %v414_v0 = vpop.permute.xlu1 %413 }
  0x95   : > { %v412_v20 = vpop.permute.xlu0 %411 }
  0x98   : > { %v416_v17 = vpop.permute.xlu1 %415 }
  0x99   : > { %v551_v50 = vpop.permute.xlu0 %550  ;;  %v3897_v34 = vsel %vm507_vm1, %v3561_v22, %v416_v17 }
  0x9a   : > { %v3843_v6 = vsel %vm507_vm1, %v3548_v15, %v551_v50  ;;  %v3861_v50 = vsel %vm507_vm1, %v3520_v1, %v404_v45  ;;  %v3879_v1 = vsel %vm507_vm1, %v3551_v16, %v412_v20  ;;  %v3885_v45 = vsel %vm507_vm1, %v3545_v14, %v414_v0 }
  0x9b   : > { %1231 = vrot.lane.b32.xlu1 %v3843_v6, %s3474_s22 }
  0x9c   : > { %v553_v36 = vpop.permute.xlu1 %552 }
  0x9d   : > { %v3849_v41 = vsel %vm507_vm1, %v3576_v29, %v553_v36  ;;  %v418_v42 = vpop.permute.xlu0 %417  ;;  %v3867_v29 = vsel %vm507_vm1, %v3535_v8, %v410_v35 }
  0x9e   : > { %1233 = vrot.lane.b32.xlu0 %v3849_v41, %s3474_s22  ;;  %v3891_v7 = vsel %vm507_vm1, %v3564_v23, %v418_v42 }
  0x9f   : > { %650 = vrot.lane.b32.xlu1 %v3855_v51, %s3474_s22 }
  0xa0   : > { %v422_v15 = vpop.permute.xlu1 %421 }
  0xa1   : > { %v420_v57 = vpop.permute.xlu0 %419  ;;  %v3909_v42 = vsel %vm507_vm1, %v3579_v30, %v422_v15 }
  0xa2   : > { %648 = vrot.lane.b32.xlu0 %v3861_v50, %s3474_s22  ;;  %v3903_v14 = vsel %vm507_vm1, %v3585_v32, %v420_v57 }
  0xa3   : > { %654 = vrot.lane.b32.xlu1 %v3867_v29, %s3474_s22 }
  0xa4   : > { %v424_v2 = vpop.permute.xlu1 %423 }
  0xa5   : > { %v555_v59 = vpop.permute.xlu0 %554  ;;  %v3921_v17 = vsel %vm507_vm1, %v3595_v38, %v424_v2 }
  0xa6   : > { %652 = vrot.lane.b32.xlu0 %v3873_v61, %s3474_s22  ;;  %v3915_v22 = vsel %vm507_vm1, %v3582_v31, %v555_v59 }
  0xa7   : > { %656 = vrot.lane.b32.xlu1 %v3879_v1, %s3474_s22 }
  0xa8   : > { %v557_v8 = vpop.permute.xlu1 %556 }
  0xa9   : > { %v426_v35 = vpop.permute.xlu0 %425  ;;  %v3933_v36 = vsel %vm507_vm1, %v3607_v44, %v557_v8 }
  0xaa   : > { %658 = vrot.lane.b32.xlu0 %v3885_v45, %s3474_s22  ;;  %v3927_v30 = vsel %vm507_vm1, %v3598_v39, %v426_v35 }
  0xab   : > { %662 = vrot.lane.b32.xlu1 %v3891_v7, %s3474_s22 }
  0xac   : > { %v430_v16 = vpop.permute.xlu1 %429 }
  0xad   : > { %v428_v19 = vpop.permute.xlu0 %427  ;;  %v3945_v57 = vsel %vm507_vm1, %v3614_v47, %v430_v16 }
  0xae   : > { %660 = vrot.lane.b32.xlu0 %v3897_v34, %s3474_s22  ;;  %v3939_v38 = vsel %vm507_vm1, %v3620_v49, %v428_v19 }
  0xaf   : > { %664 = vrot.lane.b32.xlu1 %v3903_v14, %s3474_s22 }
  0xb0   : > { %v432_v23 = vpop.permute.xlu1 %431 }
  0xb1   : > { %v559_v0 = vpop.permute.xlu0 %558  ;;  %v3957_v59 = vsel %vm507_vm1, %v3629_v54, %v432_v23 }
  0xb2   : > { %666 = vrot.lane.b32.xlu0 %v3909_v42, %s3474_s22  ;;  %v3951_v44 = vsel %vm507_vm1, %v3617_v48, %v559_v0 }
  0xb3   : > { %1235 = vrot.lane.b32.xlu1 %v3915_v22, %s3474_s22 }
  0xb4   : > { %v561_v32 = vpop.permute.xlu1 %560 }
  0xb5   : > { %v434_v20 = vpop.permute.xlu0 %433  ;;  %v3969_v35 = vsel %vm507_vm1, %v3641_v60, %v561_v32 }
  0xb6   : > { %668 = vrot.lane.b32.xlu0 %v3921_v17, %s3474_s22  ;;  %v3963_v47 = vsel %vm507_vm1, %v3632_v55, %v434_v20 }
  0xb7   : > { %670 = vrot.lane.b32.xlu1 %v3927_v30, %s3474_s22 }
  0xb8   : > { %v438_v31 = vpop.permute.xlu1 %437 }
  0xb9   : > { %v436_v15 = vpop.permute.xlu0 %435  ;;  %v3981_v19 = vsel %vm507_vm1, %v3648_v63, %v438_v31 }
  0xba   : > { %1237 = vrot.lane.b32.xlu0 %v3933_v36, %s3474_s22  ;;  %v3975_v54 = vsel %vm507_vm1, %v3654_v4, %v436_v15 }
  0xbb   : > { %672 = vrot.lane.b32.xlu1 %v3939_v38, %s3474_s22 }
  0xbc   : > { %v440_v39 = vpop.permute.xlu1 %439 }
  0xbd   : > { %v563_v2 = vpop.permute.xlu0 %562  ;;  %v3993_v0 = vsel %vm507_vm1, %v3663_v12, %v440_v39 }
  0xbe   : > { %674 = vrot.lane.b32.xlu0 %v3945_v57, %s3474_s22  ;;  %v3987_v60 = vsel %vm507_vm1, %v3651_v3, %v563_v2 }
  0xbf   : > { %1239 = vrot.lane.b32.xlu1 %v3951_v44, %s3474_s22 }
  0xc0   : > { %v565_v49 = vpop.permute.xlu1 %564 }
  0xc1   : > { %v442_v8 = vpop.permute.xlu0 %441  ;;  %v4005_v20 = vsel %vm507_vm1, %v3675_v21, %v565_v49 }
  0xc2   : > { %676 = vrot.lane.b32.xlu0 %v3957_v59, %s3474_s22  ;;  %v3999_v63 = vsel %vm507_vm1, %v3666_v13, %v442_v8 }
  0xc3   : > { %678 = vrot.lane.b32.xlu1 %v3963_v47, %s3474_s22 }
  0xc4   : > { %v446_v48 = vpop.permute.xlu1 %445 }
  0xc5   : > { %v444_v16 = vpop.permute.xlu0 %443  ;;  %v4017_v15 = vsel %vm507_vm1, %v3682_v26, %v446_v48 }
  0xc6   : > { %1241 = vrot.lane.b32.xlu0 %v3969_v35, %s3474_s22  ;;  %v4011_v12 = vsel %vm507_vm1, %v3688_v28, %v444_v16  ;;  %v2977_v16 = vld [vmem:[%s5446_s1 + $0x40] sm:$0xff] }
  0xc7   : > { %680 = vrot.lane.b32.xlu1 %v3975_v54, %s3474_s22 }
  0xc8   : > { %v448_v55 = vpop.permute.xlu1 %447 }
  0xc9   : > { %v567_v23 = vpop.permute.xlu0 %566  ;;  %v4029_v2 = vsel %vm507_vm1, %v3697_v37, %v448_v55 }
  0xca   : > { %682 = vrot.lane.b32.xlu0 %v3981_v19, %s3474_s22  ;;  %v4023_v21 = vsel %vm507_vm1, %v3685_v27, %v567_v23 }
  0xcb   : > { %1243 = vrot.lane.b32.xlu1 %v3987_v60, %s3474_s22 }
  0xcc   : > { %v569_v4 = vpop.permute.xlu1 %568 }
  0xcd   : > { %v450_v32 = vpop.permute.xlu0 %449  ;;  %v4041_v8 = vsel %vm507_vm1, %v3709_v46, %v569_v4  ;;  %v2978_v46 = vld [vmem:[%s5446_s1 + $0x48] sm:$0xff] }
  0xce   : > { %684 = vrot.lane.b32.xlu0 %v3993_v0, %s3474_s22  ;;  %v4035_v26 = vsel %vm507_vm1, %v3700_v40, %v450_v32  ;;  %v4061_v4 = vpack.c.bf16 %v2978_v46, %v2977_v16 }
  0xcf   : > { %686 = vrot.lane.b32.xlu1 %v3999_v63, %s3474_s22 }
  0xd0   : > { %v454_v3 = vpop.permute.xlu1 %453  ;;  %3437 = vmatprep.subr.bf16.mxu0 %v4061_v4 }
  0xd1   : > { %v452_v31 = vpop.permute.xlu0 %451  ;;  %v4059_v55 = vsel %vm507_vm1, %v3716_v52, %v454_v3 }
  0xd2   : > { %1245 = vrot.lane.b32.xlu0 %v4005_v20, %s3474_s22  ;;  %v4047_v37 = vsel %vm507_vm1, %v3722_v56, %v452_v31  ;;  %v3013_v31 = vld [vmem:[%s5446_s1 + $0x60] sm:$0xff] }
  0xd3   : > { %688 = vrot.lane.b32.xlu1 %v4011_v12, %s3474_s22 }
  0xd4   : > { %v456_v13 = vpop.permute.xlu1 %455 }
  0xd5   : > { %v571_v39 = vpop.permute.xlu0 %570  ;;  %v4074_v52 = vsel %vm507_vm1, %v3731_v62, %v456_v13 }
  0xd6   : > { %690 = vrot.lane.b32.xlu0 %v4017_v15, %s3474_s22  ;;  %v4067_v56 = vsel %vm507_vm1, %v3719_v53, %v571_v39  ;;  %v3014_v39 = vld [vmem:[%s5446_s1 + $0x68] sm:$0xff] }
  0xd7   : > { %1247 = vrot.lane.b32.xlu1 %v4023_v21, %s3474_s22  ;;  %v4090_v62 = vpack.c.bf16 %v3014_v39, %v3013_v31 }
  0xd8   : > { %v573_v28 = vpop.permute.xlu1 %572 }
  0xd9   : > { %v458_v49 = vpop.permute.xlu0 %457  ;;  %v4094_v13 = vsel %vm507_vm1, %v3743_v18, %v573_v28  ;;  %3445 = vmatprep.subr.bf16.mxu1 %v4090_v62  ;;  %v4110_v18 = vld [vmem:[%s3514_s20 + $0x198] sm:$0xff]  ;;  %v4113_v28 = vld [vmem:[%s3514_s20 + $0x1a0] sm:$0xff] }
  0xda   : > { %692 = vrot.lane.b32.xlu0 %v4029_v2, %s3474_s22  ;;  %v4080_v3 = vsel %vm507_vm1, %v3734_v5, %v458_v49  ;;  %5469 = vst [vmem:[#allocation6_spill] sm:$0xff] %v4110_v18  ;;  %5470 = vst [vmem:[#allocation7_spill] sm:$0xff] %v4113_v28  ;;  %v394_v31 = vrot.slane %v4110_v18, 1  ;;  %v395_v39 = vrot.slane %v4113_v28, 1 }
  0xdb   : > { %694 = vrot.lane.b32.xlu1 %v4035_v26, %s3474_s22 }
  0xdc   : > { %v462_v27 = vpop.permute.xlu1 %461 }
  0xdd   : > { %v460_v48 = vpop.permute.xlu0 %459  ;;  %v4107_v46 = vsel %vm507_vm1, %v3750_v24, %v462_v27 }
  0xde   : > { %1249 = vrot.lane.b32.xlu0 %v4041_v8, %s3474_s22  ;;  %v4101_v5 = vsel %vm507_vm1, %v3756_v33, %v460_v48  ;;  %5468 = vst [vmem:[#allocation5_spill] sm:$0xff] %v4107_v46 }
  0xdf   : > { %696 = vrot.lane.b32.xlu1 %v4047_v37, %s3474_s22 }
  0xe0   : > { %v400_v40 = vpop.permute.xlu1 %399 }
  0xe1   : > { %v575_v23 = vpop.permute.xlu0 %574 }
  0xe2   : > { %698 = vrot.lane.b32.xlu0 %v4059_v55, %s3474_s22  ;;  %v4119_v33 = vsel %vm507_vm1, %v3753_v25, %v575_v23 }
  0xe3   : > { %1251 = vrot.lane.b32.xlu1 %v4067_v56, %s3474_s22  ;;  %5471 = vst [vmem:[#allocation8_spill] sm:$0xff] %v4119_v33 }
  0xe4   : > { %v545_v32 = vpop.permute.xlu1 %544 }
  0xe5   : > { %v402_v53 = vpop.permute.xlu0 %401 }
  0xe6   : > { %700 = vrot.lane.b32.xlu0 %v4074_v52, %s3474_s22 }
  0xe7   : > { %702 = vrot.lane.b32.xlu1 %v4080_v3, %s3474_s22 }
  0xe8   : > { %v466_v49 = vpop.permute.xlu1 %465 }
  0xe9   : > { %v464_v16 = vpop.permute.xlu0 %463  ;;  %v4129_v24 = vsel %vm507_vm1, %v3784_v9, %v466_v49 }
  0xea   : > { %1253 = vrot.lane.b32.xlu0 %v4094_v13, %s3474_s22  ;;  %v4125_v48 = vsel %vm507_vm1, %v3790_v11, %v464_v16  ;;  %5473 = vst [vmem:[#allocation10_spill] sm:$0xff] %v4129_v24  ;;  %v396_v11 = vsel %vm308_vm0, %v394_v31, %v395_v39 }
  0xeb   : > { %704 = vrot.lane.b32.xlu1 %v4101_v5, %s3474_s22  ;;  %5472 = vst [vmem:[#allocation9_spill] sm:$0xff] %v4125_v48 }
  0xec   : > { %v577_v27 = vpop.permute.xlu1 %576 }
  0xed   : > { %v4142_v25 = vsel %vm507_vm1, %v3787_v10, %v577_v27  ;;  %v509_v27 = vsel %vm507_vm1, %v3768_v43, %v402_v53 }
  0xee   : > { %706 = vrot.lane.b32.xlu0 %v4107_v46, %s3474_s22  ;;  %v4134_v46 = vld [vmem:[%s3514_s20 + $0x1a8] sm:$0x3]  ;;  %5475 = vst [vmem:[#allocation12_spill] sm:$0xff] %v4142_v25 }
  0xef   : > { %1255 = vrot.lane.b32.xlu1 %v4119_v33, %s3474_s22  ;;  %5474 = vst [vmem:[#allocation11_spill] sm:$0xff] %v4134_v46  ;;  %v397_v9 = vrot.slane %v4134_v46, 1 }
  0xf1   : > { %v398_v23 = vsel %vm308_vm0, %v395_v39, %v397_v9  ;;  %v2980_v39 = vld [vmem:[%s5446_s1 + $0x58] sm:$0xff] }
  0xf2   : > { %708 = vrot.lane.b32.xlu0 %v4125_v48, %s3474_s22 }
  0xf3   : > { %710 = vrot.lane.b32.xlu1 %v4129_v24, %s3474_s22 }
  0xf6   : > { %1257 = vrot.lane.b32.xlu0 %v4142_v25, %s3474_s22 }
  0xf7   : > { %467 = vrot.lane.b32.xlu1 %v396_v11, %s3473_s21  ;;  %v2979_v11 = vld [vmem:[%s5446_s1 + $0x50] sm:$0xff] }
  0xf8   : > { %v3440_v28 = vpack.c.bf16 %v2980_v39, %v2979_v11 }
  0xfa   : > { %469 = vrot.lane.b32.xlu0 %v398_v23, %s3473_s21  ;;  %v5476_v23 = vld [vmem:[#allocation2_spill] sm:$0xff] }
  0xfb   : > { %578 = vrot.lane.b32.xlu1 %v397_v9, %s3473_s21  ;;  %v598_v9 = vsel %vm507_vm1, %v3777_v58, %v545_v32  ;;  %v508_v25 = vsel %vm507_vm1, %v5476_v23, %v400_v40  ;;  %v3015_v58 = vld [vmem:[%s5446_s1 + $0x70] sm:$0xff]  ;;  %v3016_v40 = vld [vmem:[%s5446_s1 + $0x78] sm:$0xff] }
  0xfc   : > { %v1228_v49 = vpop.permute.xlu0 %1227 }
  0xfd   : > { %v1275_v43 = vsel %vm744_vm2, %v598_v9, %v1228_v49 }
  0xfe   : > { %v1310_v32 = vrot.slane %v1275_v43, 1 }
 0x100   : > { %v1230_v16 = vpop.permute.xlu0 %1229 }
 0x10d   : > { %v1232_v24 = vpop.permute.xlu1 %1231 }
 0x110   : > { %v1234_v10 = vpop.permute.xlu0 %1233 }
 0x111   : > { %v651_v31 = vpop.permute.xlu1 %650 }
 0x112   : > { %v746_v48 = vsel %vm744_vm2, %v509_v27, %v651_v31 }
 0x113   : > { %v1308_v46 = vrot.slane %v746_v48, 1 }
 0x114   : > { %v649_v53 = vpop.permute.xlu0 %648 }
 0x115   : > { %v655_v27 = vpop.permute.xlu1 %654  ;;  %v745_v31 = vsel %vm744_vm2, %v508_v25, %v649_v53  ;;  %v5477_v25 = vld [vmem:[#allocation3_spill] sm:$0xff]  ;;  %v1311_v43 = vsel %vm308_vm0, %v1308_v46, %v1310_v32 }
 0x116   : > { %v4169_v18 = vsel %vm744_vm2, %v3855_v51, %v655_v27  ;;  %3204 = vmatprep.mubr.msk.f32.mxu0 %vm781_vm3, %v745_v31  ;;  %v1307_v33 = vrot.slane %v745_v31, 1  ;;  %v1276_v49 = vsel %vm744_vm2, %v5477_v25, %v1230_v16 }
 0x117   : > { %3205 = vmatmul.mubr.msk.f32.vlgmr.msra.gmra.mrb[0].mxu0 %vm781_vm3, %v746_v48  ;;  %v1313_v39 = vrot.slane %v4169_v18, 1  ;;  %v3448_v48 = vpack.c.bf16 %v3016_v40, %v3015_v58 }
 0x118   : > { %v653_v11 = vpop.permute.xlu0 %652  ;;  %v1309_v51 = vsel %vm308_vm0, %v1307_v33, %v1308_v46  ;;  %3439 = vmatpush3.bf16.msra.mxu0 %v4061_v4  ;;  %v5478_v4 = vld [vmem:[#allocation4_spill] sm:$0xff] }
 0x119   : > { %v4186_v9 = vsel %vm744_vm2, %v3861_v50, %v653_v11  ;;  %3260 = vmatprep.mubr.msk.f32.mxu1 %vm781_vm3, %v1309_v51  ;;  %v657_v23 = vpop.permute.xlu1 %656  ;;  %3441 = vmatprep.subr.bf16.mxu0 %v3440_v28  ;;  %v1315_v50 = vrot.slane %v1276_v49, 1  ;;  %v1277_v53 = vsel %vm744_vm2, %v5478_v4, %v1232_v24 }
 0x11a   : > { %v1312_v16 = vrot.slane %v4186_v9, 1  ;;  %v4193_v33 = vsel %vm744_vm2, %v3873_v61, %v657_v23  ;;  %3207 = vmatprep.mubr.msk.f32.mxu0 %vm781_vm3, %v4186_v9  ;;  %3261 = vmatmul.mubr.msk.f32.vlgmr.msra.gmra.mrb[0].mxu1 %vm781_vm3, %v1311_v43 }
 0x11b   : > { %3208 = vmatmul.mubr.msk.f32.gmra.mrb[2].mxu0 %vm781_vm3, %v4169_v18  ;;  %3447 = vmatpush3.bf16.msra.mxu1 %v4090_v62  ;;  %v4215_v31 = vsel %vm308_vm0, %v1313_v39, %v1315_v50  ;;  %v1320_v62 = vrot.slane %v1277_v53, 1  ;;  %v1317_v58 = vrot.slane %v4193_v33, 1 }
 0x11c   : > { %v659_v46 = vpop.permute.xlu0 %658  ;;  %3210 = vmatprep.mubr.msk.f32.mxu0 %vm781_vm3, %v4193_v33  ;;  %v4206_v61 = vsel %vm308_vm0, %v1312_v16, %v1313_v39  ;;  %3443 = vmatpush3.bf16.msra.mxu0 %v3440_v28 }
 0x11d   : > { %v4210_v27 = vsel %vm744_vm2, %v3867_v29, %v659_v46  ;;  %3263 = vmatprep.mubr.msk.f32.mxu1 %vm781_vm3, %v4206_v61  ;;  %v663_v24 = vpop.permute.xlu1 %662  ;;  %3449 = vmatprep.subr.bf16.mxu1 %v3448_v48  ;;  %v1278_v29 = vsel %vm744_vm2, %v3843_v6, %v1234_v10 }
 0x11e   : > { %v1318_v40 = vrot.slane %v4210_v27, 1  ;;  %v4221_v28 = vsel %vm744_vm2, %v3885_v45, %v663_v24  ;;  %3264 = vmatmul.mubr.msk.f32.gmra.mrb[2].mxu1 %vm781_vm3, %v4215_v31  ;;  %v1325_v10 = vrot.slane %v1278_v29, 1 }
 0x11f   : > { %3211 = vmatmul.mubr.msk.f32.gmra.mrb[4].mxu0 %vm781_vm3, %v4210_v27  ;;  %3451 = vmatpush3.bf16.msra.mxu1 %v3448_v48  ;;  %v1323_v45 = vrot.slane %v4221_v28, 1 }
 0x120   : > { %v661_v32 = vpop.permute.xlu0 %660  ;;  %v4230_v25 = vsel %vm308_vm0, %v1317_v58, %v1318_v40  ;;  %v4233_v49 = vsel %vm308_vm0, %v1318_v40, %v1320_v62 }
 0x121   : > { %v4238_v11 = vsel %vm744_vm2, %v3879_v1, %v661_v32  ;;  %3266 = vmatprep.mubr.msk.f32.mxu1 %vm781_vm3, %v4230_v25  ;;  %v665_v51 = vpop.permute.xlu1 %664  ;;  %v4265_v48 = vsel %vm308_vm0, %v1323_v45, %v1325_v10 }
 0x122   : > { %v1322_v39 = vrot.slane %v4238_v11, 1  ;;  %v4245_v6 = vsel %vm744_vm2, %v3897_v34, %v665_v51  ;;  %3213 = vmatprep.mubr.msk.f32.mxu0 %vm781_vm3, %v4238_v11  ;;  %3267 = vmatmul.mubr.msk.f32.gmra.mrb[4].mxu1 %vm781_vm3, %v4233_v49 }
 0x123   : > { %3214 = vmatmul.mubr.msk.f32.gmra.mrb[6].mxu0 %vm781_vm3, %v4221_v28  ;;  %v1327_v16 = vrot.slane %v4245_v6, 1 }
 0x124   : > { %v667_v1 = vpop.permute.xlu0 %666  ;;  %3216 = vmatprep.mubr.msk.f32.mxu0 %vm781_vm3, %v4245_v6  ;;  %v4256_v23 = vsel %vm308_vm0, %v1322_v39, %v1323_v45 }
 0x125   : > { %v4260_v34 = vsel %vm744_vm2, %v3891_v7, %v667_v1  ;;  %3269 = vmatprep.mubr.msk.f32.mxu1 %vm781_vm3, %v4256_v23  ;;  %v1236_v43 = vpop.permute.xlu1 %1235 }
 0x126   : > { %v1328_v50 = vrot.slane %v4260_v34, 1  ;;  %v1279_v4 = vsel %vm744_vm2, %v3849_v41, %v1236_v43  ;;  %3270 = vmatmul.mubr.msk.f32.gmra.mrb[6].mxu1 %vm781_vm3, %v4265_v48 }
 0x127   : > { %v1330_v53 = vrot.slane %v1279_v4, 1  ;;  %3217 = vmatmul.mubr.msk.f32.gmra.mrb[8].mxu0 %vm781_vm3, %v4260_v34 }
 0x128   : > { %v669_v7 = vpop.permute.xlu0 %668  ;;  %v4276_v46 = vsel %vm308_vm0, %v1327_v16, %v1328_v50 }
 0x129   : > { %v4280_v24 = vsel %vm744_vm2, %v3903_v14, %v669_v7  ;;  %3272 = vmatprep.mubr.msk.f32.mxu1 %vm781_vm3, %v4276_v46  ;;  %v671_v62 = vpop.permute.xlu1 %670  ;;  %v4285_v41 = vsel %vm308_vm0, %v1328_v50, %v1330_v53 }
 0x12a   : > { %v1332_v58 = vrot.slane %v4280_v24, 1  ;;  %v4290_v40 = vsel %vm744_vm2, %v3909_v42, %v671_v62  ;;  %3219 = vmatprep.mubr.msk.f32.mxu0 %vm781_vm3, %v4280_v24  ;;  %3273 = vmatmul.mubr.msk.f32.gmra.mrb[8].mxu1 %vm781_vm3, %v4285_v41 }
 0x12b   : > { %v1333_v14 = vrot.slane %v4290_v40, 1  ;;  %3220 = vmatmul.mubr.msk.f32.gmra.mrb[10].mxu0 %vm781_vm3, %v4290_v40 }
 0x12c   : > { %v1238_v29 = vpop.permute.xlu0 %1237 }
 0x12d   : > { %v1280_v32 = vsel %vm744_vm2, %v3915_v22, %v1238_v29  ;;  %v673_v45 = vpop.permute.xlu1 %672  ;;  %v4302_v51 = vsel %vm308_vm0, %v1332_v58, %v1333_v14 }
 0x12e   : > { %v1335_v42 = vrot.slane %v1280_v32, 1  ;;  %v4306_v39 = vsel %vm744_vm2, %v3921_v17, %v673_v45  ;;  %3275 = vmatprep.mubr.msk.f32.mxu1 %vm781_vm3, %v4302_v51 }
 0x12f   : > { %3222 = vmatprep.mubr.msk.f32.mxu0 %vm781_vm3, %v4306_v39  ;;  %v1337_v17 = vrot.slane %v4306_v39, 1 }
 0x130   : > { %v675_v10 = vpop.permute.xlu0 %674  ;;  %v4313_v1 = vsel %vm308_vm0, %v1333_v14, %v1335_v42 }
 0x131   : > { %v4317_v22 = vsel %vm744_vm2, %v3927_v30, %v675_v10  ;;  %3276 = vmatmul.mubr.msk.f32.gmra.mrb[10].mxu1 %vm781_vm3, %v4313_v1  ;;  %v1240_v43 = vpop.permute.xlu1 %1239 }
 0x132   : > { %v1338_v16 = vrot.slane %v4317_v22, 1  ;;  %v1281_v50 = vsel %vm744_vm2, %v3933_v36, %v1240_v43  ;;  %3223 = vmatmul.mubr.msk.f32.gmra.mrb[12].mxu0 %vm781_vm3, %v4317_v22 }
 0x133   : > { %v1340_v4 = vrot.slane %v1281_v50, 1 }
 0x134   : > { %v677_v53 = vpop.permute.xlu0 %676  ;;  %v4328_v7 = vsel %vm308_vm0, %v1337_v17, %v1338_v16 }
 0x135   : > { %v4332_v30 = vsel %vm744_vm2, %v3939_v38, %v677_v53  ;;  %3278 = vmatprep.mubr.msk.f32.mxu1 %vm781_vm3, %v4328_v7  ;;  %v679_v62 = vpop.permute.xlu1 %678  ;;  %v4337_v58 = vsel %vm308_vm0, %v1338_v16, %v1340_v4 }
 0x136   : > { %v1342_v36 = vrot.slane %v4332_v30, 1  ;;  %v4342_v14 = vsel %vm744_vm2, %v3945_v57, %v679_v62  ;;  %3225 = vmatprep.mubr.msk.f32.mxu0 %vm781_vm3, %v4332_v30  ;;  %3279 = vmatmul.mubr.msk.f32.gmra.mrb[12].mxu1 %vm781_vm3, %v4337_v58 }
 0x137   : > { %v1343_v38 = vrot.slane %v4342_v14, 1  ;;  %3226 = vmatmul.mubr.msk.f32.gmra.mrb[14].mxu0 %vm781_vm3, %v4342_v14 }
 0x138   : > { %v1242_v29 = vpop.permute.xlu0 %1241 }
 0x139   : > { %v1282_v32 = vsel %vm744_vm2, %v3951_v44, %v1242_v29  ;;  %v681_v45 = vpop.permute.xlu1 %680  ;;  %v4354_v42 = vsel %vm308_vm0, %v1342_v36, %v1343_v38 }
 0x13a   : > { %v1345_v57 = vrot.slane %v1282_v32, 1  ;;  %v4358_v10 = vsel %vm744_vm2, %v3957_v59, %v681_v45  ;;  %3281 = vmatprep.mubr.msk.f32.mxu1 %vm781_vm3, %v4354_v42 }
 0x13b   : > { %3228 = vmatprep.mubr.msk.f32.mxu0 %vm781_vm3, %v4358_v10  ;;  %v1347_v59 = vrot.slane %v4358_v10, 1 }
 0x13c   : > { %v683_v43 = vpop.permute.xlu0 %682  ;;  %v4365_v17 = vsel %vm308_vm0, %v1343_v38, %v1345_v57 }
 0x13d   : > { %v4369_v44 = vsel %vm744_vm2, %v3963_v47, %v683_v43  ;;  %3282 = vmatmul.mubr.msk.f32.gmra.mrb[14].mxu1 %vm781_vm3, %v4365_v17  ;;  %v1244_v16 = vpop.permute.xlu1 %1243 }
 0x13e   : > { %v1348_v50 = vrot.slane %v4369_v44, 1  ;;  %v1283_v4 = vsel %vm744_vm2, %v3969_v35, %v1244_v16  ;;  %3229 = vmatmul.mubr.msk.f32.gmra.mrb[16].mxu0 %vm781_vm3, %v4369_v44 }
 0x13f   : > { %v1350_v53 = vrot.slane %v1283_v4, 1 }
 0x140   : > { %v685_v62 = vpop.permute.xlu0 %684  ;;  %v4380_v36 = vsel %vm308_vm0, %v1347_v59, %v1348_v50 }
 0x141   : > { %v4384_v47 = vsel %vm744_vm2, %v3975_v54, %v685_v62  ;;  %3284 = vmatprep.mubr.msk.f32.mxu1 %vm781_vm3, %v4380_v36  ;;  %v687_v38 = vpop.permute.xlu1 %686  ;;  %v4389_v29 = vsel %vm308_vm0, %v1348_v50, %v1350_v53 }
 0x142   : > { %v1352_v35 = vrot.slane %v4384_v47, 1  ;;  %v4394_v32 = vsel %vm744_vm2, %v3981_v19, %v687_v38  ;;  %3231 = vmatprep.mubr.msk.f32.mxu0 %vm781_vm3, %v4384_v47  ;;  %3285 = vmatmul.mubr.msk.f32.gmra.mrb[16].mxu1 %vm781_vm3, %v4389_v29 }
 0x143   : > { %v1353_v54 = vrot.slane %v4394_v32, 1  ;;  %3232 = vmatmul.mubr.msk.f32.gmra.mrb[18].mxu0 %vm781_vm3, %v4394_v32 }
 0x144   : > { %v1246_v45 = vpop.permute.xlu0 %1245 }
 0x145   : > { %v1284_v57 = vsel %vm744_vm2, %v3987_v60, %v1246_v45  ;;  %v689_v43 = vpop.permute.xlu1 %688  ;;  %v4406_v16 = vsel %vm308_vm0, %v1352_v35, %v1353_v54 }
 0x146   : > { %v1355_v19 = vrot.slane %v1284_v57, 1  ;;  %v4410_v59 = vsel %vm744_vm2, %v3993_v0, %v689_v43  ;;  %3287 = vmatprep.mubr.msk.f32.mxu1 %vm781_vm3, %v4406_v16 }
 0x147   : > { %3234 = vmatprep.mubr.msk.f32.mxu0 %vm781_vm3, %v4410_v59  ;;  %v1357_v0 = vrot.slane %v4410_v59, 1 }
 0x148   : > { %v691_v50 = vpop.permute.xlu0 %690  ;;  %v4417_v4 = vsel %vm308_vm0, %v1353_v54, %v1355_v19 }
 0x149   : > { %v4421_v60 = vsel %vm744_vm2, %v3999_v63, %v691_v50  ;;  %3288 = vmatmul.mubr.msk.f32.gmra.mrb[18].mxu1 %vm781_vm3, %v4417_v4  ;;  %v1248_v53 = vpop.permute.xlu1 %1247 }
 0x14a   : > { %v1358_v62 = vrot.slane %v4421_v60, 1  ;;  %v1285_v38 = vsel %vm744_vm2, %v4005_v20, %v1248_v53  ;;  %3235 = vmatmul.mubr.msk.f32.gmra.mrb[20].mxu0 %vm781_vm3, %v4421_v60 }
 0x14b   : > { %v1360_v35 = vrot.slane %v1285_v38, 1 }
 0x14c   : > { %v693_v54 = vpop.permute.xlu0 %692  ;;  %v4432_v45 = vsel %vm308_vm0, %v1357_v0, %v1358_v62 }
 0x14d   : > { %v4436_v63 = vsel %vm744_vm2, %v4011_v12, %v693_v54  ;;  %3290 = vmatprep.mubr.msk.f32.mxu1 %vm781_vm3, %v4432_v45  ;;  %v695_v57 = vpop.permute.xlu1 %694  ;;  %v4441_v43 = vsel %vm308_vm0, %v1358_v62, %v1360_v35 }
 0x14e   : > { %v1362_v20 = vrot.slane %v4436_v63, 1  ;;  %v4446_v19 = vsel %vm744_vm2, %v4017_v15, %v695_v57  ;;  %3237 = vmatprep.mubr.msk.f32.mxu0 %vm781_vm3, %v4436_v63  ;;  %3291 = vmatmul.mubr.msk.f32.gmra.mrb[20].mxu1 %vm781_vm3, %v4441_v43 }
 0x14f   : > { %v1363_v12 = vrot.slane %v4446_v19, 1  ;;  %3238 = vmatmul.mubr.msk.f32.gmra.mrb[22].mxu0 %vm781_vm3, %v4446_v19 }
 0x150   : > { %v1250_v50 = vpop.permute.xlu0 %1249 }
 0x151   : > { %v1286_v53 = vsel %vm744_vm2, %v4023_v21, %v1250_v50  ;;  %v697_v0 = vpop.permute.xlu1 %696  ;;  %v4458_v62 = vsel %vm308_vm0, %v1362_v20, %v1363_v12 }
 0x152   : > { %v1365_v15 = vrot.slane %v1286_v53, 1  ;;  %v4462_v38 = vsel %vm744_vm2, %v4029_v2, %v697_v0  ;;  %3293 = vmatprep.mubr.msk.f32.mxu1 %vm781_vm3, %v4458_v62 }
 0x153   : > { %3240 = vmatprep.mubr.msk.f32.mxu0 %vm781_vm3, %v4462_v38  ;;  %v1367_v2 = vrot.slane %v4462_v38, 1 }
 0x154   : > { %v699_v35 = vpop.permute.xlu0 %698  ;;  %v4469_v54 = vsel %vm308_vm0, %v1363_v12, %v1365_v15 }
 0x155   : > { %v4473_v21 = vsel %vm744_vm2, %v4035_v26, %v699_v35  ;;  %3294 = vmatmul.mubr.msk.f32.gmra.mrb[22].mxu1 %vm781_vm3, %v4469_v54  ;;  %v1252_v57 = vpop.permute.xlu1 %1251 }
 0x156   : > { %v1368_v20 = vrot.slane %v4473_v21, 1  ;;  %v1287_v50 = vsel %vm744_vm2, %v4041_v8, %v1252_v57  ;;  %3241 = vmatmul.mubr.msk.f32.gmra.mrb[24].mxu0 %vm781_vm3, %v4473_v21 }
 0x157   : > { %v1370_v12 = vrot.slane %v1287_v50, 1 }
 0x158   : > { %v701_v53 = vpop.permute.xlu0 %700  ;;  %v4484_v0 = vsel %vm308_vm0, %v1367_v2, %v1368_v20 }
 0x159   : > { %v4488_v26 = vsel %vm744_vm2, %v4047_v37, %v701_v53  ;;  %3296 = vmatprep.mubr.msk.f32.mxu1 %vm781_vm3, %v4484_v0  ;;  %v703_v15 = vpop.permute.xlu1 %702  ;;  %v4493_v35 = vsel %vm308_vm0, %v1368_v20, %v1370_v12 }
 0x15a   : > { %5479 = vst [vmem:[#allocation2_spill] sm:$0xff] %v4493_v35  ;;  %v1372_v8 = vrot.slane %v4488_v26, 1  ;;  %v4498_v57 = vsel %vm744_vm2, %v4059_v55, %v703_v15  ;;  %3243 = vmatprep.mubr.msk.f32.mxu0 %vm781_vm3, %v4488_v26  ;;  %3297 = vmatmul.mubr.msk.f32.gmra.mrb[24].mxu1 %vm781_vm3, %v4493_v35 }
 0x15b   : > { %v1373_v37 = vrot.slane %v4498_v57, 1  ;;  %3244 = vmatmul.mubr.msk.f32.gmra.mrb[26].mxu0 %vm781_vm3, %v4498_v57 }
 0x15c   : > { %v1254_v2 = vpop.permute.xlu0 %1253 }
 0x15d   : > { %v1288_v20 = vsel %vm744_vm2, %v4067_v56, %v1254_v2  ;;  %v705_v50 = vpop.permute.xlu1 %704  ;;  %v4510_v12 = vsel %vm308_vm0, %v1372_v8, %v1373_v37 }
 0x15e   : > { %v1375_v55 = vrot.slane %v1288_v20, 1  ;;  %v4514_v53 = vsel %vm744_vm2, %v4074_v52, %v705_v50  ;;  %3299 = vmatprep.mubr.msk.f32.mxu1 %vm781_vm3, %v4510_v12 }
 0x15f   : > { %3246 = vmatprep.mubr.msk.f32.mxu0 %vm781_vm3, %v4514_v53  ;;  %v1377_v52 = vrot.slane %v4514_v53, 1 }
 0x160   : > { %v707_v15 = vpop.permute.xlu0 %706  ;;  %v4521_v35 = vsel %vm308_vm0, %v1373_v37, %v1375_v55 }
 0x161   : > { %5480 = vst [vmem:[#allocation3_spill] sm:$0xff] %v4521_v35  ;;  %v4525_v56 = vsel %vm744_vm2, %v4080_v3, %v707_v15  ;;  %3300 = vmatmul.mubr.msk.f32.gmra.mrb[26].mxu1 %vm781_vm3, %v4521_v35  ;;  %v1256_v8 = vpop.permute.xlu1 %1255 }
 0x162   : > { %v1378_v2 = vrot.slane %v4525_v56, 1  ;;  %v1289_v20 = vsel %vm744_vm2, %v4094_v13, %v1256_v8  ;;  %3247 = vmatmul.mubr.msk.f32.gmra.mrb[28].mxu0 %vm781_vm3, %v4525_v56  ;;  %v5483_v8 = vld [vmem:[#allocation5_spill] sm:$0xff] }
 0x163   : > { %v1380_v37 = vrot.slane %v1289_v20, 1 }
 0x164   : > { %v709_v50 = vpop.permute.xlu0 %708  ;;  %v4536_v55 = vsel %vm308_vm0, %v1377_v52, %v1378_v2 }
 0x165   : > { %5481 = vst [vmem:[#allocation4_spill] sm:$0xff] %v4536_v55  ;;  %v4540_v3 = vsel %vm744_vm2, %v4101_v5, %v709_v50  ;;  %3302 = vmatprep.mubr.msk.f32.mxu1 %vm781_vm3, %v4536_v55  ;;  %v711_v15 = vpop.permute.xlu1 %710  ;;  %v4545_v35 = vsel %vm308_vm0, %v1378_v2, %v1380_v37  ;;  %v5484_v2 = vld [vmem:[#allocation8_spill] sm:$0xff]  ;;  %v5485_v55 = vld [vmem:[#allocation6_spill] sm:$0xff] }
 0x166   : > { %5482 = vst [vmem:[#allocation13_spill] sm:$0xff] %v4545_v35  ;;  %v1382_v13 = vrot.slane %v4540_v3, 1  ;;  %v4550_v20 = vsel %vm744_vm2, %v5483_v8, %v711_v15  ;;  %3249 = vmatprep.mubr.msk.f32.mxu0 %vm781_vm3, %v4540_v3  ;;  %3303 = vmatmul.mubr.msk.f32.gmra.mrb[28].mxu1 %vm781_vm3, %v4545_v35 }
 0x167   : > { %v1383_v5 = vrot.slane %v4550_v20, 1  ;;  %3250 = vmatmul.mubr.msk.f32.gmra.mrb[30].mxu0 %vm781_vm3, %v4550_v20 }
 0x168   : > { %v1258_v52 = vpop.permute.xlu0 %1257  ;;  %3316 = vmatprep.mubr.msk.f32.mxu0 %vm781_vm3, %v4186_v9 }
 0x169   : > { %v1290_v37 = vsel %vm744_vm2, %v5484_v2, %v1258_v52  ;;  %v468_v50 = vpop.permute.xlu1 %467  ;;  %v4564_v15 = vsel %vm308_vm0, %v1382_v13, %v1383_v5  ;;  %v5486_v13 = vld [vmem:[#allocation7_spill] sm:$0xff] }
 0x16a   : > { %v1385_v8 = vrot.slane %v1290_v37, 1  ;;  %v542_v35 = vsel %vm507_vm1, %v5485_v55, %v468_v50  ;;  %3305 = vmatprep.mubr.msk.f32.mxu1 %vm781_vm3, %v4564_v15  ;;  %v5487_v37 = vld [vmem:[#allocation11_spill] sm:$0xff] }
 0x16b   : > { %3317 = vmatmul.mubr.msk.f32.vlgmr.msra.gmra.mrb[32].mxu0 %vm781_vm3, %v4169_v18  ;;  %1939 = vrot.lane.b32.xlu0 %v542_v35, %s3474_s22  ;;  %v5488_v18 = vld [vmem:[#allocation2_spill] sm:$0xff] }
 0x16c   : > { %v470_v9 = vpop.permute.xlu0 %469  ;;  %3319 = vmatprep.mubr.msk.f32.mxu0 %vm781_vm3, %v4193_v33  ;;  %v4576_v52 = vsel %vm308_vm0, %v1383_v5, %v1385_v8  ;;  %v5489_v33 = vld [vmem:[#allocation3_spill] sm:$0xff] }
 0x16d   : > { %v543_v2 = vsel %vm507_vm1, %v5486_v13, %v470_v9  ;;  %3306 = vmatmul.mubr.msk.f32.gmra.mrb[30].mxu1 %vm781_vm3, %v4576_v52  ;;  %v579_v55 = vpop.permute.xlu1 %578 }
 0x16e   : > { %v615_v50 = vsel %vm507_vm1, %v5487_v37, %v579_v55  ;;  %1941 = vrot.lane.b32.xlu1 %v543_v2, %s3474_s22  ;;  %3372 = vmatprep.mubr.msk.f32.mxu1 %vm781_vm3, %v4206_v61  ;;  %v5490_v61 = vld [vmem:[#allocation4_spill] sm:$0xff] }
 0x16f   : > { %3320 = vmatmul.mubr.msk.f32.gmra.mrb[34].mxu0 %vm781_vm3, %v4210_v27  ;;  %2280 = vrot.lane.b32.xlu0 %v615_v50, %s3474_s22  ;;  %v5491_v27 = vld [vmem:[#allocation13_spill] sm:$0xff] }
 0x170   : > { %3322 = vmatprep.mubr.msk.f32.mxu0 %vm781_vm3, %v4238_v11  ;;  %v5493_v11 = vld [vmem:[#allocation10_spill] sm:$0xff] }
 0x171   : > { %3373 = vmatmul.mubr.msk.f32.vlgmr.msra.gmra.mrb[32].mxu1 %vm781_vm3, %v4215_v31 }
 0x172   : > { %3375 = vmatprep.mubr.msk.f32.mxu1 %vm781_vm3, %v4230_v25 }
 0x173   : > { %3323 = vmatmul.mubr.msk.f32.gmra.mrb[36].mxu0 %vm781_vm3, %v4221_v28  ;;  %v5492_v28 = vld [vmem:[#allocation9_spill] sm:$0xff] }
 0x174   : > { %3325 = vmatprep.mubr.msk.f32.mxu0 %vm781_vm3, %v4245_v6 }
 0x175   : > { %3376 = vmatmul.mubr.msk.f32.gmra.mrb[34].mxu1 %vm781_vm3, %v4233_v49 }
 0x176   : > { %3378 = vmatprep.mubr.msk.f32.mxu1 %vm781_vm3, %v4256_v23 }
 0x177   : > { %3326 = vmatmul.mubr.msk.f32.gmra.mrb[38].mxu0 %vm781_vm3, %v4260_v34 }
 0x178   : > { %3328 = vmatprep.mubr.msk.f32.mxu0 %vm781_vm3, %v4280_v24 }
 0x179   : > { %3379 = vmatmul.mubr.msk.f32.gmra.mrb[36].mxu1 %vm781_vm3, %v4265_v48 }
 0x17a   : > { %3381 = vmatprep.mubr.msk.f32.mxu1 %vm781_vm3, %v4276_v46  ;;  %v5494_v46 = vld [vmem:[#allocation12_spill] sm:$0xff] }
 0x17b   : > { %3329 = vmatmul.mubr.msk.f32.gmra.mrb[40].mxu0 %vm781_vm3, %v4290_v40 }
 0x17c   : > { %3331 = vmatprep.mubr.msk.f32.mxu0 %vm781_vm3, %v4306_v39 }
 0x17d   : > { %3382 = vmatmul.mubr.msk.f32.gmra.mrb[38].mxu1 %vm781_vm3, %v4285_v41 }
 0x17e   : > { %3384 = vmatprep.mubr.msk.f32.mxu1 %vm781_vm3, %v4302_v51 }
 0x17f   : > { %3332 = vmatmul.mubr.msk.f32.gmra.mrb[42].mxu0 %vm781_vm3, %v4317_v22  ;;  %v4719_v22 = vld [vmem:[%s5447_s2] ss:$0 sm:$0xff] }
 0x180   : > { %3334 = vmatprep.mubr.msk.f32.mxu0 %vm781_vm3, %v4332_v30 }
 0x181   : > { %3385 = vmatmul.mubr.msk.f32.gmra.mrb[40].mxu1 %vm781_vm3, %v4313_v1 }
 0x182   : > { %3387 = vmatprep.mubr.msk.f32.mxu1 %vm781_vm3, %v4328_v7 }
 0x183   : > { %3335 = vmatmul.mubr.msk.f32.gmra.mrb[44].mxu0 %vm781_vm3, %v4342_v14 }
 0x184   : > { %3337 = vmatprep.mubr.msk.f32.mxu0 %vm781_vm3, %v4358_v10 }
 0x185   : > { %3388 = vmatmul.mubr.msk.f32.gmra.mrb[42].mxu1 %vm781_vm3, %v4337_v58 }
 0x186   : > { %3390 = vmatprep.mubr.msk.f32.mxu1 %vm781_vm3, %v4354_v42  ;;  %v4727_v42 = vld [vmem:[%s5448_s3] ss:$0 sm:$0xff] }
 0x187   : > { %3338 = vmatmul.mubr.msk.f32.gmra.mrb[46].mxu0 %vm781_vm3, %v4369_v44 }
 0x188   : > { %3340 = vmatprep.mubr.msk.f32.mxu0 %vm781_vm3, %v4384_v47 }
 0x189   : > { %3391 = vmatmul.mubr.msk.f32.gmra.mrb[44].mxu1 %vm781_vm3, %v4365_v17 }
 0x18a   : > { %3393 = vmatprep.mubr.msk.f32.mxu1 %vm781_vm3, %v4380_v36 }
 0x18b   : > { %3341 = vmatmul.mubr.msk.f32.gmra.mrb[48].mxu0 %vm781_vm3, %v4394_v32 }
 0x18c   : > { %3343 = vmatprep.mubr.msk.f32.mxu0 %vm781_vm3, %v4410_v59 }
 0x18d   : > { %3394 = vmatmul.mubr.msk.f32.gmra.mrb[46].mxu1 %vm781_vm3, %v4389_v29 }
 0x18e   : > { %3396 = vmatprep.mubr.msk.f32.mxu1 %vm781_vm3, %v4406_v16 }
 0x18f   : > { %3344 = vmatmul.mubr.msk.f32.gmra.mrb[50].mxu0 %vm781_vm3, %v4421_v60 }
 0x190   : > { %3346 = vmatprep.mubr.msk.f32.mxu0 %vm781_vm3, %v4436_v63 }
 0x191   : > { %3397 = vmatmul.mubr.msk.f32.gmra.mrb[48].mxu1 %vm781_vm3, %v4417_v4 }
 0x192   : > { %3399 = vmatprep.mubr.msk.f32.mxu1 %vm781_vm3, %v4432_v45 }
 0x193   : > { %3347 = vmatmul.mubr.msk.f32.gmra.mrb[52].mxu0 %vm781_vm3, %v4446_v19 }
 0x194   : > { %3349 = vmatprep.mubr.msk.f32.mxu0 %vm781_vm3, %v4462_v38 }
 0x195   : > { %3400 = vmatmul.mubr.msk.f32.gmra.mrb[50].mxu1 %vm781_vm3, %v4441_v43 }
 0x196   : > { %3402 = vmatprep.mubr.msk.f32.mxu1 %vm781_vm3, %v4458_v62 }
 0x197   : > { %3350 = vmatmul.mubr.msk.f32.gmra.mrb[54].mxu0 %vm781_vm3, %v4473_v21 }
 0x198   : > { %3352 = vmatprep.mubr.msk.f32.mxu0 %vm781_vm3, %v4488_v26 }
 0x199   : > { %3403 = vmatmul.mubr.msk.f32.gmra.mrb[52].mxu1 %vm781_vm3, %v4469_v54 }
 0x19a   : > { %3405 = vmatprep.mubr.msk.f32.mxu1 %vm781_vm3, %v4484_v0 }
 0x19b   : > { %3353 = vmatmul.mubr.msk.f32.gmra.mrb[56].mxu0 %vm781_vm3, %v4498_v57 }
 0x19c   : > { %3355 = vmatprep.mubr.msk.f32.mxu0 %vm781_vm3, %v4514_v53 }
 0x19d   : > { %3406 = vmatmul.mubr.msk.f32.gmra.mrb[54].mxu1 %vm781_vm3, %v5488_v18 }
 0x19e   : > { %3408 = vmatprep.mubr.msk.f32.mxu1 %vm781_vm3, %v4510_v12 }
 0x19f   : > { %3356 = vmatmul.mubr.msk.f32.gmra.mrb[58].mxu0 %vm781_vm3, %v4525_v56 }
 0x1a0   : > { %3358 = vmatprep.mubr.msk.f32.mxu0 %vm781_vm3, %v4540_v3 }
 0x1a1   : > { %3409 = vmatmul.mubr.msk.f32.gmra.mrb[56].mxu1 %vm781_vm3, %v5489_v33 }
 0x1a2   : > { %3411 = vmatprep.mubr.msk.f32.mxu1 %vm781_vm3, %v5490_v61 }
 0x1a3   : > { %3359 = vmatmul.mubr.msk.f32.gmra.mrb[60].mxu0 %vm781_vm3, %v4550_v20 }
 0x1a5   : > { %3412 = vmatmul.mubr.msk.f32.gmra.mrb[58].mxu1 %vm781_vm3, %v5491_v27 }
 0x1a6   : > { %3414 = vmatprep.mubr.msk.f32.mxu1 %vm781_vm3, %v4564_v15 }
 0x1a9   : > { %3415 = vmatmul.mubr.msk.f32.gmra.mrb[60].mxu1 %vm781_vm3, %v4576_v52 }
 0x1dd   : > { %v1940_v31 = vpop.permute.xlu0 %1939 }
 0x1de   : > { %v1945_v25 = vsel %vm744_vm2, %v5492_v28, %v1940_v31 }
 0x1df   : > { %3361 = vmatprep.mubr.msk.f32.mxu0 %vm781_vm3, %v1945_v25  ;;  %v2285_v34 = vrot.slane %v1945_v25, 1 }
 0x1e0   : > { %v1942_v49 = vpop.permute.xlu1 %1941 }
 0x1e1   : > { %v1946_v6 = vsel %vm744_vm2, %v5493_v11, %v1942_v49  ;;  %v2281_v23 = vpop.permute.xlu0 %2280 }
 0x1e2   : > { %v2286_v48 = vrot.slane %v1946_v6, 1  ;;  %v2283_v24 = vsel %vm744_vm2, %v5494_v46, %v2281_v23  ;;  %3362 = vmatmul.mubr.msk.f32.gmra.mrb[62].mxu0 %vm781_vm3, %v1946_v6 }
 0x1e3   : > { %v2288_v41 = vrot.slane %v2283_v24, 1 }
 0x1e4   : > { %v2287_v40 = vsel %vm308_vm0, %v2285_v34, %v2286_v48 }
 0x1e5   : > { %3417 = vmatprep.mubr.msk.f32.mxu1 %vm781_vm3, %v2287_v40  ;;  %v2289_v51 = vsel %vm308_vm0, %v2286_v48, %v2288_v41 }
 0x1e6   : > { %3418 = vmatmul.mubr.msk.f32.gmra.mrb[62].mxu1 %vm781_vm3, %v2289_v51 }
 0x1ea   : > { %v4712_v39 = vpop.f32.mrb[0].mxu0 }
 0x1eb   : > { %v4714_v1 = vpop.f32.mrb[1].mxu0 }
 0x1ed   : > { %v3262_v7 = vpop.f32.mrb[0].mxu1 }
 0x1ee   : > { %v1682_v30 = vmul.f32 %v3262_v7, %v4719_v22  ;;  %v4722_v58 = vpop.f32.mrb[2].mxu0  ;;  %v1522_v14 = vpop.f32.mrb[1].mxu1 }
 0x1ef   : > { %v1681_v10 = vmul.f32 %v4719_v22, %v1522_v14  ;;  %v4730_v17 = vpop.f32.mrb[3].mxu0 }
 0x1f0   : > { %v1714_v44 = vadd.f32 %v4727_v42, %v1682_v30 }
 0x1f1   : > { %v1713_v36 = vadd.f32 %v4727_v42, %v1681_v10  ;;  %v3265_v47 = vpop.f32.mrb[2].mxu1 }
 0x1f2   : > { %v1746_v29 = vmax.f32 %v1714_v44, 0.0  ;;  %v1684_v32 = vmul.f32 %v3265_v47, %v4719_v22  ;;  %v4735_v16 = vpop.f32.mrb[4].mxu0  ;;  %v1532_v59 = vpop.f32.mrb[3].mxu1 }
 0x1f3   : > { %v1745_v4 = vmax.f32 %v1713_v36, 0.0  ;;  %v1683_v60 = vmul.f32 %v4719_v22, %v1532_v59  ;;  %v4738_v45 = vpop.f32.mrb[5].mxu0 }
 0x1f4   : > { %v1716_v63 = vadd.f32 %v4727_v42, %v1684_v32  ;;  %1811 = vrot.lane.b32.xlu0 %v1746_v29, %s3473_s21 }
 0x1f5   : > { %v1715_v43 = vadd.f32 %v4727_v42, %v1683_v60  ;;  %1809 = vrot.lane.b32.xlu1 %v1745_v4, %s3473_s21  ;;  %v3268_v19 = vpop.f32.mrb[4].mxu1 }
 0x1f6   : > { %v1748_v62 = vmax.f32 %v1716_v63, 0.0  ;;  %v1686_v38 = vmul.f32 %v3268_v19, %v4719_v22  ;;  %v4745_v54 = vpop.f32.mrb[6].mxu0  ;;  %v1542_v21 = vpop.f32.mrb[5].mxu1 }
 0x1f7   : > { %v1747_v0 = vmax.f32 %v1715_v43, 0.0  ;;  %v1685_v26 = vmul.f32 %v4719_v22, %v1542_v21  ;;  %v4748_v35 = vpop.f32.mrb[7].mxu0 }
 0x1f8   : > { %v1718_v57 = vadd.f32 %v4727_v42, %v1686_v38  ;;  %1815 = vrot.lane.b32.xlu0 %v1748_v62, %s3473_s21 }
 0x1f9   : > { %v1717_v12 = vadd.f32 %v4727_v42, %v1685_v26  ;;  %1813 = vrot.lane.b32.xlu1 %v1747_v0, %s3473_s21  ;;  %v3271_v53 = vpop.f32.mrb[6].mxu1 }
 0x1fa   : > { %v1750_v56 = vmax.f32 %v1718_v57, 0.0  ;;  %v1688_v3 = vmul.f32 %v3271_v53, %v4719_v22  ;;  %v4755_v20 = vpop.f32.mrb[8].mxu0  ;;  %v1552_v5 = vpop.f32.mrb[7].mxu1 }
 0x1fb   : > { %v1749_v15 = vmax.f32 %v1717_v12, 0.0  ;;  %v1687_v8 = vmul.f32 %v4719_v22, %v1552_v5  ;;  %v4758_v9 = vpop.f32.mrb[9].mxu0 }
 0x1fc   : > { %v1720_v52 = vadd.f32 %v4727_v42, %v1688_v3  ;;  %1819 = vrot.lane.b32.xlu0 %v1750_v56, %s3473_s21 }
 0x1fd   : > { %v1719_v13 = vadd.f32 %v4727_v42, %v1687_v8  ;;  %1817 = vrot.lane.b32.xlu1 %v1749_v15, %s3473_s21  ;;  %v3274_v2 = vpop.f32.mrb[8].mxu1 }
 0x1fe   : > { %v1752_v55 = vmax.f32 %v1720_v52, 0.0  ;;  %v1690_v37 = vmul.f32 %v3274_v2, %v4719_v22  ;;  %v4765_v50 = vpop.f32.mrb[10].mxu0  ;;  %v1562_v18 = vpop.f32.mrb[9].mxu1 }
 0x1ff   : > { %v1751_v33 = vmax.f32 %v1719_v13, 0.0  ;;  %v1689_v61 = vmul.f32 %v4719_v22, %v1562_v18  ;;  %v4768_v27 = vpop.f32.mrb[11].mxu0 }
 0x200   : > { %v1722_v31 = vadd.f32 %v4727_v42, %v1690_v37  ;;  %1823 = vrot.lane.b32.xlu0 %v1752_v55, %s3473_s21 }
 0x201   : > { %v1721_v28 = vadd.f32 %v4727_v42, %v1689_v61  ;;  %1821 = vrot.lane.b32.xlu1 %v1751_v33, %s3473_s21 }
 0x202   : > { %v1754_v25 = vmax.f32 %v1722_v31, 0.0 }
 0x203   : > { %v1753_v49 = vmax.f32 %v1721_v28, 0.0 }
 0x204   : > { %v3277_v11 = vpop.f32.mrb[10].mxu1  ;;  %1827 = vrot.lane.b32.xlu0 %v1754_v25, %s3473_s21 }
 0x205   : > { %v1692_v6 = vmul.f32 %v3277_v11, %v4719_v22  ;;  %1825 = vrot.lane.b32.xlu1 %v1753_v49, %s3473_s21  ;;  %v4777_v23 = vpop.f32.mrb[12].mxu0  ;;  %v1572_v34 = vpop.f32.mrb[11].mxu1 }
 0x206   : > { %v1691_v48 = vmul.f32 %v4719_v22, %v1572_v34  ;;  %v4780_v46 = vpop.f32.mrb[13].mxu0 }
 0x207   : > { %v1724_v24 = vadd.f32 %v4727_v42, %v1692_v6 }
 0x208   : > { %v1723_v41 = vadd.f32 %v4727_v42, %v1691_v48 }
 0x209   : > { %v1756_v40 = vmax.f32 %v1724_v24, 0.0  ;;  %v3280_v51 = vpop.f32.mrb[12].mxu1 }
 0x20a   : > { %v1755_v7 = vmax.f32 %v1723_v41, 0.0  ;;  %v1694_v30 = vmul.f32 %v3280_v51, %v4719_v22  ;;  %v4785_v14 = vpop.f32.mrb[14].mxu0  ;;  %v1582_v10 = vpop.f32.mrb[13].mxu1 }
 0x20b   : > { %v1693_v44 = vmul.f32 %v4719_v22, %v1582_v10  ;;  %v4788_v36 = vpop.f32.mrb[15].mxu0  ;;  %1831 = vrot.lane.b32.xlu0 %v1756_v40, %s3473_s21 }
 0x20c   : > { %v1726_v47 = vadd.f32 %v4727_v42, %v1694_v30  ;;  %1829 = vrot.lane.b32.xlu1 %v1755_v7, %s3473_s21 }
 0x20d   : > { %v1725_v29 = vadd.f32 %v4727_v42, %v1693_v44 }
 0x20e   : > { %v1758_v32 = vmax.f32 %v1726_v47, 0.0 }
 0x20f   : > { %v1757_v59 = vmax.f32 %v1725_v29, 0.0 }
 0x210   : > { %v3283_v4 = vpop.f32.mrb[14].mxu1  ;;  %1835 = vrot.lane.b32.xlu0 %v1758_v32, %s3473_s21 }
 0x211   : > { %v1696_v60 = vmul.f32 %v3283_v4, %v4719_v22  ;;  %1833 = vrot.lane.b32.xlu1 %v1757_v59, %s3473_s21  ;;  %v4797_v63 = vpop.f32.mrb[16].mxu0  ;;  %v1592_v43 = vpop.f32.mrb[15].mxu1 }
 0x212   : > { %v1695_v19 = vmul.f32 %v4719_v22, %v1592_v43  ;;  %v4800_v62 = vpop.f32.mrb[17].mxu0 }
 0x213   : > { %v1728_v38 = vadd.f32 %v4727_v42, %v1696_v60 }
 0x214   : > { %v1727_v21 = vadd.f32 %v4727_v42, %v1695_v19 }
 0x215   : > { %v1760_v0 = vmax.f32 %v1728_v38, 0.0  ;;  %v3286_v26 = vpop.f32.mrb[16].mxu1 }
 0x216   : > { %v1759_v57 = vmax.f32 %v1727_v21, 0.0  ;;  %v1698_v12 = vmul.f32 %v3286_v26, %v4719_v22  ;;  %v4805_v53 = vpop.f32.mrb[18].mxu0  ;;  %v1602_v56 = vpop.f32.mrb[17].mxu1 }
 0x217   : > { %v1697_v3 = vmul.f32 %v4719_v22, %v1602_v56  ;;  %v4808_v5 = vpop.f32.mrb[19].mxu0  ;;  %1839 = vrot.lane.b32.xlu0 %v1760_v0, %s3473_s21 }
 0x218   : > { %v1730_v15 = vadd.f32 %v4727_v42, %v1698_v12  ;;  %1837 = vrot.lane.b32.xlu1 %v1759_v57, %s3473_s21 }
 0x219   : > { %v1729_v8 = vadd.f32 %v4727_v42, %v1697_v3 }
 0x21a   : > { %v1762_v52 = vmax.f32 %v1730_v15, 0.0 }
 0x21b   : > { %v1761_v13 = vmax.f32 %v1729_v8, 0.0 }
 0x21c   : > { %v3289_v2 = vpop.f32.mrb[18].mxu1  ;;  %1843 = vrot.lane.b32.xlu0 %v1762_v52, %s3473_s21 }
 0x21d   : > { %v1700_v55 = vmul.f32 %v3289_v2, %v4719_v22  ;;  %1841 = vrot.lane.b32.xlu1 %v1761_v13, %s3473_s21  ;;  %v4817_v37 = vpop.f32.mrb[20].mxu0  ;;  %v1612_v18 = vpop.f32.mrb[19].mxu1 }
 0x21e   : > { %v1699_v33 = vmul.f32 %v4719_v22, %v1612_v18  ;;  %v4820_v61 = vpop.f32.mrb[21].mxu0 }
 0x21f   : > { %v1732_v31 = vadd.f32 %v4727_v42, %v1700_v55 }
 0x220   : > { %v1731_v28 = vadd.f32 %v4727_v42, %v1699_v33 }
 0x221   : > { %v1764_v25 = vmax.f32 %v1732_v31, 0.0  ;;  %v3292_v49 = vpop.f32.mrb[20].mxu1 }
 0x222   : > { %v1763_v11 = vmax.f32 %v1731_v28, 0.0  ;;  %v1702_v6 = vmul.f32 %v3292_v49, %v4719_v22  ;;  %v4825_v34 = vpop.f32.mrb[22].mxu0  ;;  %v1622_v48 = vpop.f32.mrb[21].mxu1 }
 0x223   : > { %v1701_v24 = vmul.f32 %v4719_v22, %v1622_v48  ;;  %v4828_v41 = vpop.f32.mrb[23].mxu0  ;;  %1847 = vrot.lane.b32.xlu0 %v1764_v25, %s3473_s21 }
 0x224   : > { %v1734_v40 = vadd.f32 %v4727_v42, %v1702_v6  ;;  %1845 = vrot.lane.b32.xlu1 %v1763_v11, %s3473_s21 }
 0x225   : > { %v1733_v51 = vadd.f32 %v4727_v42, %v1701_v24 }
 0x226   : > { %v1766_v7 = vmax.f32 %v1734_v40, 0.0 }
 0x227   : > { %v1765_v30 = vmax.f32 %v1733_v51, 0.0 }
 0x228   : > { %v3295_v10 = vpop.f32.mrb[22].mxu1  ;;  %1851 = vrot.lane.b32.xlu0 %v1766_v7, %s3473_s21 }
 0x229   : > { %v1704_v44 = vmul.f32 %v3295_v10, %v4719_v22  ;;  %1849 = vrot.lane.b32.xlu1 %v1765_v30, %s3473_s21  ;;  %v4837_v47 = vpop.f32.mrb[24].mxu0  ;;  %v1632_v29 = vpop.f32.mrb[23].mxu1 }
 0x22a   : > { %v1703_v32 = vmul.f32 %v4719_v22, %v1632_v29  ;;  %v4840_v59 = vpop.f32.mrb[25].mxu0 }
 0x22b   : > { %v1736_v4 = vadd.f32 %v4727_v42, %v1704_v44 }
 0x22c   : > { %v1735_v60 = vadd.f32 %v4727_v42, %v1703_v32 }
 0x22d   : > { %v1768_v43 = vmax.f32 %v1736_v4, 0.0  ;;  %v3298_v19 = vpop.f32.mrb[24].mxu1 }
 0x22e   : > { %v1767_v38 = vmax.f32 %v1735_v60, 0.0  ;;  %v1706_v21 = vmul.f32 %v3298_v19, %v4719_v22  ;;  %v4845_v0 = vpop.f32.mrb[26].mxu0  ;;  %v1642_v26 = vpop.f32.mrb[25].mxu1 }
 0x22f   : > { %v1705_v57 = vmul.f32 %v4719_v22, %v1642_v26  ;;  %v4848_v12 = vpop.f32.mrb[27].mxu0  ;;  %1855 = vrot.lane.b32.xlu0 %v1768_v43, %s3473_s21 }
 0x230   : > { %v1738_v56 = vadd.f32 %v4727_v42, %v1706_v21  ;;  %1853 = vrot.lane.b32.xlu1 %v1767_v38, %s3473_s21 }
 0x231   : > { %v1737_v3 = vadd.f32 %v4727_v42, %v1705_v57 }
 0x232   : > { %v1770_v15 = vmax.f32 %v1738_v56, 0.0 }
 0x233   : > { %v1769_v8 = vmax.f32 %v1737_v3, 0.0 }
 0x234   : > { %v3301_v52 = vpop.f32.mrb[26].mxu1  ;;  %1859 = vrot.lane.b32.xlu0 %v1770_v15, %s3473_s21 }
 0x235   : > { %v1708_v13 = vmul.f32 %v3301_v52, %v4719_v22  ;;  %1857 = vrot.lane.b32.xlu1 %v1769_v8, %s3473_s21  ;;  %v4857_v2 = vpop.f32.mrb[28].mxu0  ;;  %v1652_v55 = vpop.f32.mrb[27].mxu1 }
 0x236   : > { %v1707_v18 = vmul.f32 %v4719_v22, %v1652_v55  ;;  %v4860_v33 = vpop.f32.mrb[29].mxu0 }
 0x237   : > { %v1740_v31 = vadd.f32 %v4727_v42, %v1708_v13 }
 0x238   : > { %v1739_v28 = vadd.f32 %v4727_v42, %v1707_v18 }
 0x239   : > { %v1772_v25 = vmax.f32 %v1740_v31, 0.0  ;;  %v3304_v49 = vpop.f32.mrb[28].mxu1 }
 0x23a   : > { %v1771_v11 = vmax.f32 %v1739_v28, 0.0  ;;  %v1710_v6 = vmul.f32 %v3304_v49, %v4719_v22  ;;  %v4865_v48 = vpop.f32.mrb[30].mxu0  ;;  %v1662_v24 = vpop.f32.mrb[29].mxu1 }
 0x23b   : > { %v1709_v40 = vmul.f32 %v4719_v22, %v1662_v24  ;;  %v4868_v51 = vpop.f32.mrb[31].mxu0  ;;  %1863 = vrot.lane.b32.xlu0 %v1772_v25, %s3473_s21 }
 0x23c   : > { %v1742_v7 = vadd.f32 %v4727_v42, %v1710_v6  ;;  %1861 = vrot.lane.b32.xlu1 %v1771_v11, %s3473_s21 }
 0x23d   : > { %v1741_v30 = vadd.f32 %v4727_v42, %v1709_v40 }
 0x23e   : > { %v1774_v10 = vmax.f32 %v1742_v7, 0.0  ;;  %v4874_v44 = vpop.f32.mrb[32].mxu0 }
 0x23f   : > { %v1773_v29 = vmax.f32 %v1741_v30, 0.0  ;;  %v4876_v32 = vpop.f32.mrb[33].mxu0 }
 0x240   : > { %v3307_v4 = vpop.f32.mrb[30].mxu1  ;;  %1867 = vrot.lane.b32.xlu0 %v1774_v10, %s3473_s21 }
 0x241   : > { %v1712_v60 = vmul.f32 %v3307_v4, %v4719_v22  ;;  %1865 = vrot.lane.b32.xlu1 %v1773_v29, %s3473_s21  ;;  %v1672_v43 = vpop.f32.mrb[31].mxu1 }
 0x242   : > { %v1711_v19 = vmul.f32 %v4719_v22, %v1672_v43  ;;  %v4882_v38 = vpop.f32.mrb[34].mxu0 }
 0x243   : > { %v1744_v21 = vadd.f32 %v4727_v42, %v1712_v60  ;;  %v4885_v26 = vpop.f32.mrb[35].mxu0 }
 0x244   : > { %v1743_v57 = vadd.f32 %v4727_v42, %v1711_v19  ;;  %v3374_v56 = vpop.f32.mrb[32].mxu1 }
 0x245   : > { %v1776_v3 = vmax.f32 %v1744_v21, 0.0  ;;  %v2525_v15 = vmul.f32 %v3374_v56, %v4719_v22  ;;  %v2365_v8 = vpop.f32.mrb[33].mxu1 }
 0x246   : > { %v1775_v52 = vmax.f32 %v1743_v57, 0.0  ;;  %v2524_v13 = vmul.f32 %v4719_v22, %v2365_v8  ;;  %v4890_v55 = vpop.f32.mrb[36].mxu0 }
 0x247   : > { %v2557_v18 = vadd.f32 %v4727_v42, %v2525_v15  ;;  %v4893_v31 = vpop.f32.mrb[37].mxu0  ;;  %1871 = vrot.lane.b32.xlu0 %v1776_v3, %s3473_s21 }
 0x248   : > { %v2556_v28 = vadd.f32 %v4727_v42, %v2524_v13  ;;  %v3377_v25 = vpop.f32.mrb[34].mxu1  ;;  %1869 = vrot.lane.b32.xlu1 %v1775_v52, %s3473_s21 }
 0x249   : > { %v2589_v49 = vmax.f32 %v2557_v18, 0.0  ;;  %v2527_v11 = vmul.f32 %v3377_v25, %v4719_v22  ;;  %v2375_v6 = vpop.f32.mrb[35].mxu1 }
 0x24a   : > { %v2588_v24 = vmax.f32 %v2556_v28, 0.0  ;;  %v2526_v40 = vmul.f32 %v4719_v22, %v2375_v6  ;;  %v4900_v7 = vpop.f32.mrb[38].mxu0 }
 0x24b   : > { %v2559_v30 = vadd.f32 %v4727_v42, %v2527_v11  ;;  %v4903_v10 = vpop.f32.mrb[39].mxu0  ;;  %2654 = vrot.lane.b32.xlu0 %v2589_v49, %s3473_s21 }
 0x24c   : > { %v2558_v29 = vadd.f32 %v4727_v42, %v2526_v40  ;;  %v3380_v4 = vpop.f32.mrb[36].mxu1  ;;  %2652 = vrot.lane.b32.xlu1 %v2588_v24, %s3473_s21 }
 0x24d   : > { %v2591_v60 = vmax.f32 %v2559_v30, 0.0  ;;  %v2529_v43 = vmul.f32 %v3380_v4, %v4719_v22  ;;  %v2385_v19 = vpop.f32.mrb[37].mxu1 }
 0x24e   : > { %v2590_v21 = vmax.f32 %v2558_v29, 0.0  ;;  %v2528_v57 = vmul.f32 %v4719_v22, %v2385_v19  ;;  %v4910_v56 = vpop.f32.mrb[40].mxu0 }
 0x24f   : > { %v2561_v3 = vadd.f32 %v4727_v42, %v2529_v43  ;;  %v4913_v15 = vpop.f32.mrb[41].mxu0  ;;  %2658 = vrot.lane.b32.xlu0 %v2591_v60, %s3473_s21 }
 0x250   : > { %v2560_v8 = vadd.f32 %v4727_v42, %v2528_v57  ;;  %v3383_v52 = vpop.f32.mrb[38].mxu1  ;;  %2656 = vrot.lane.b32.xlu1 %v2590_v21, %s3473_s21 }
 0x251   : > { %v2593_v13 = vmax.f32 %v2561_v3, 0.0  ;;  %v2531_v18 = vmul.f32 %v3383_v52, %v4719_v22  ;;  %v2395_v28 = vpop.f32.mrb[39].mxu1 }
 0x252   : > { %v2592_v25 = vmax.f32 %v2560_v8, 0.0  ;;  %v2530_v49 = vmul.f32 %v4719_v22, %v2395_v28  ;;  %v4920_v11 = vpop.f32.mrb[42].mxu0 }
 0x253   : > { %v2563_v6 = vadd.f32 %v4727_v42, %v2531_v18  ;;  %v4923_v24 = vpop.f32.mrb[43].mxu0  ;;  %2662 = vrot.lane.b32.xlu0 %v2593_v13, %s3473_s21 }
 0x254   : > { %v2562_v40 = vadd.f32 %v4727_v42, %v2530_v49  ;;  %v3386_v30 = vpop.f32.mrb[40].mxu1  ;;  %2660 = vrot.lane.b32.xlu1 %v2592_v25, %s3473_s21 }
 0x255   : > { %v2595_v29 = vmax.f32 %v2563_v6, 0.0  ;;  %v2533_v4 = vmul.f32 %v3386_v30, %v4719_v22  ;;  %v2405_v60 = vpop.f32.mrb[41].mxu1 }
 0x256   : > { %v2594_v43 = vmax.f32 %v2562_v40, 0.0  ;;  %v2532_v19 = vmul.f32 %v4719_v22, %v2405_v60  ;;  %v4930_v21 = vpop.f32.mrb[44].mxu0  ;;  %v1110_v60 = vmul.f32 %v4712_v39, %v4719_v22 }
 0x257   : > { %v2565_v57 = vadd.f32 %v4727_v42, %v2533_v4  ;;  %v4933_v3 = vpop.f32.mrb[45].mxu0  ;;  %2666 = vrot.lane.b32.xlu0 %v2595_v29, %s3473_s21 }
 0x258   : > { %v2564_v8 = vadd.f32 %v4727_v42, %v2532_v19  ;;  %v3389_v52 = vpop.f32.mrb[42].mxu1  ;;  %2664 = vrot.lane.b32.xlu1 %v2594_v43, %s3473_s21 }
 0x259   : > { %v2597_v13 = vmax.f32 %v2565_v57, 0.0  ;;  %v2535_v18 = vmul.f32 %v3389_v52, %v4719_v22  ;;  %v2415_v28 = vpop.f32.mrb[43].mxu1 }
 0x25a   : > { %v2596_v25 = vmax.f32 %v2564_v8, 0.0  ;;  %v2534_v49 = vmul.f32 %v4719_v22, %v2415_v28  ;;  %v4940_v6 = vpop.f32.mrb[46].mxu0  ;;  %v1109_v8 = vmul.f32 %v4719_v22, %v4714_v1  ;;  %v1112_v1 = vmul.f32 %v4722_v58, %v4719_v22 }
 0x25b   : > { %v2567_v40 = vadd.f32 %v4727_v42, %v2535_v18  ;;  %v4943_v30 = vpop.f32.mrb[47].mxu0  ;;  %2670 = vrot.lane.b32.xlu0 %v2597_v13, %s3473_s21  ;;  %v1114_v58 = vmul.f32 %v4735_v16, %v4719_v22 }
 0x25c   : > { %5495 = vst [vmem:[#allocation5_spill] sm:$0xff] %v4943_v30  ;;  %v2566_v29 = vadd.f32 %v4727_v42, %v2534_v49  ;;  %v3392_v4 = vpop.f32.mrb[44].mxu1  ;;  %2668 = vrot.lane.b32.xlu1 %v2596_v25, %s3473_s21 }
 0x25d   : > { %v2599_v43 = vmax.f32 %v2567_v40, 0.0  ;;  %v2537_v19 = vmul.f32 %v3392_v4, %v4719_v22  ;;  %v2425_v57 = vpop.f32.mrb[45].mxu1  ;;  %v1148_v40 = vadd.f32 %v4727_v42, %v1110_v60 }
 0x25e   : > { %v2598_v52 = vmax.f32 %v2566_v29, 0.0  ;;  %v2536_v18 = vmul.f32 %v4719_v22, %v2425_v57  ;;  %v4954_v13 = vpop.f32.mrb[48].mxu0 }
 0x25f   : > { %5496 = vst [vmem:[#allocation8_spill] sm:$0xff] %v4954_v13  ;;  %v2569_v28 = vadd.f32 %v4727_v42, %v2537_v19  ;;  %v4957_v49 = vpop.f32.mrb[49].mxu0  ;;  %2674 = vrot.lane.b32.xlu0 %v2599_v43, %s3473_s21  ;;  %v1147_v19 = vadd.f32 %v4727_v42, %v1109_v8  ;;  %v1111_v43 = vmul.f32 %v4719_v22, %v4730_v17 }
 0x260   : > { %5497 = vst [vmem:[#allocation6_spill] sm:$0xff] %v4957_v49  ;;  %v2568_v39 = vadd.f32 %v4727_v42, %v2536_v18  ;;  %v3395_v25 = vpop.f32.mrb[46].mxu1  ;;  %2672 = vrot.lane.b32.xlu1 %v2598_v52, %s3473_s21  ;;  %v1113_v8 = vmul.f32 %v4719_v22, %v4738_v45 }
 0x261   : > { %v2601_v29 = vmax.f32 %v2569_v28, 0.0  ;;  %v2539_v4 = vmul.f32 %v3395_v25, %v4719_v22  ;;  %v2435_v57 = vpop.f32.mrb[47].mxu1  ;;  %v1150_v25 = vadd.f32 %v4727_v42, %v1112_v1  ;;  %v1149_v45 = vadd.f32 %v4727_v42, %v1111_v43 }
 0x262   : > { %v2600_v49 = vmax.f32 %v2568_v39, 0.0  ;;  %v2538_v18 = vmul.f32 %v4719_v22, %v2435_v57  ;;  %v4971_v13 = vpop.f32.mrb[50].mxu0  ;;  %v1180_v39 = vmax.f32 %v1148_v40, 0.0  ;;  %v1179_v57 = vmax.f32 %v1147_v19, 0.0 }
 0x263   : > { %5498 = vst [vmem:[#allocation7_spill] sm:$0xff] %v4971_v13  ;;  %v2571_v60 = vadd.f32 %v4727_v42, %v2539_v4  ;;  %v4974_v52 = vpop.f32.mrb[51].mxu0  ;;  %2678 = vrot.lane.b32.xlu0 %v2601_v29, %s3473_s21  ;;  %v1152_v19 = vadd.f32 %v4727_v42, %v1114_v58  ;;  %v1151_v43 = vadd.f32 %v4727_v42, %v1113_v8 }
 0x264   : > { %5499 = vst [vmem:[#allocation11_spill] sm:$0xff] %v4974_v52  ;;  %v2570_v28 = vadd.f32 %v4727_v42, %v2538_v18  ;;  %v3398_v17 = vpop.f32.mrb[48].mxu1  ;;  %2676 = vrot.lane.b32.xlu1 %v2600_v49, %s3473_s21 }
 0x265   : > { %v2603_v29 = vmax.f32 %v2571_v60, 0.0  ;;  %v2541_v4 = vmul.f32 %v3398_v17, %v4719_v22  ;;  %v2445_v16 = vpop.f32.mrb[49].mxu1 }
 0x266   : > { %v2602_v18 = vmax.f32 %v2570_v28, 0.0  ;;  %v2540_v52 = vmul.f32 %v4719_v22, %v2445_v16  ;;  %v4992_v49 = vpop.f32.mrb[52].mxu0  ;;  %v1812_v13 = vpop.permute.xlu0 %1811 }
 0x267   : > { %v2573_v30 = vadd.f32 %v4727_v42, %v2541_v4  ;;  %v1906_v40 = vsel %vm507_vm1, %v1180_v39, %v1812_v13  ;;  %v4996_v1 = vpop.f32.mrb[53].mxu0  ;;  %2682 = vrot.lane.b32.xlu0 %v2603_v29, %s3473_s21  ;;  %v1810_v60 = vpop.permute.xlu1 %1809  ;;  %v1182_v4 = vmax.f32 %v1150_v25, 0.0  ;;  %v1116_v13 = vmul.f32 %v4745_v54, %v4719_v22 }
 0x268   : > { %v2572_v28 = vadd.f32 %v4727_v42, %v2540_v52  ;;  %2781 = vst.msk [vmem:[%s4986_s12 + $0x8] sm:$0xff] %vm744_vm2, %v1906_v40  ;;  %v1905_v17 = vsel %vm507_vm1, %v1179_v57, %v1810_v60  ;;  %v3401_v16 = vpop.f32.mrb[50].mxu1  ;;  %2680 = vrot.lane.b32.xlu1 %v2602_v18, %s3473_s21  ;;  %v1181_v29 = vmax.f32 %v1149_v45, 0.0  ;;  %v1115_v52 = vmul.f32 %v4719_v22, %v4748_v35 }
 0x269   : > { %v2605_v39 = vmax.f32 %v2573_v30, 0.0  ;;  %2780 = vst.msk [vmem:[%s4986_s12] sm:$0xff] %vm744_vm2, %v1905_v17  ;;  %v2543_v58 = vmul.f32 %v3401_v16, %v4719_v22  ;;  %v2455_v8 = vpop.f32.mrb[51].mxu1  ;;  %v1184_v45 = vmax.f32 %v1152_v19, 0.0  ;;  %v1183_v16 = vmax.f32 %v1151_v43, 0.0 }
 0x26a   : > { %v2604_v40 = vmax.f32 %v2572_v28, 0.0  ;;  %v2542_v57 = vmul.f32 %v4719_v22, %v2455_v8  ;;  %v5014_v60 = vpop.f32.mrb[54].mxu0  ;;  %v1816_v25 = vpop.permute.xlu0 %1815 }
 0x26b   : > { %v2575_v54 = vadd.f32 %v4727_v42, %v2543_v58  ;;  %v1908_v30 = vsel %vm507_vm1, %v1182_v4, %v1816_v25  ;;  %v5018_v18 = vpop.f32.mrb[55].mxu0  ;;  %2686 = vrot.lane.b32.xlu0 %v2605_v39, %s3473_s21  ;;  %v1814_v17 = vpop.permute.xlu1 %1813  ;;  %v1154_v58 = vadd.f32 %v4727_v42, %v1116_v13  ;;  %v1118_v4 = vmul.f32 %v4755_v20, %v4719_v22 }
 0x26c   : > { %v2574_v35 = vadd.f32 %v4727_v42, %v2542_v57  ;;  %2785 = vst.msk [vmem:[%s4986_s12 + $0x28] sm:$0xff] %vm744_vm2, %v1908_v30  ;;  %v1907_v28 = vsel %vm507_vm1, %v1181_v29, %v1814_v17  ;;  %v3404_v8 = vpop.f32.mrb[52].mxu1  ;;  %2684 = vrot.lane.b32.xlu1 %v2604_v40, %s3473_s21  ;;  %v1153_v39 = vadd.f32 %v4727_v42, %v1115_v52 }
 0x26d   : > { %v2607_v25 = vmax.f32 %v2575_v54, 0.0  ;;  %2784 = vst.msk [vmem:[%s4986_s12 + $0x20] sm:$0xff] %vm744_vm2, %v1907_v28  ;;  %v2545_v19 = vmul.f32 %v3404_v8, %v4719_v22  ;;  %v2465_v43 = vpop.f32.mrb[53].mxu1  ;;  %v1117_v29 = vmul.f32 %v4719_v22, %v4758_v9  ;;  %v1186_v8 = vmax.f32 %v1154_v58, 0.0 }
 0x26e   : > { %v2606_v57 = vmax.f32 %v2574_v35, 0.0  ;;  %v2544_v40 = vmul.f32 %v4719_v22, %v2465_v43  ;;  %v5036_v13 = vpop.f32.mrb[56].mxu0  ;;  %v1820_v30 = vpop.permute.xlu0 %1819  ;;  %v1156_v43 = vadd.f32 %v4727_v42, %v1118_v4 }
 0x26f   : > { %v2577_v20 = vadd.f32 %v4727_v42, %v2545_v19  ;;  %v1910_v54 = vsel %vm507_vm1, %v1184_v45, %v1820_v30  ;;  %v5040_v17 = vpop.f32.mrb[57].mxu0  ;;  %2690 = vrot.lane.b32.xlu0 %v2607_v25, %s3473_s21  ;;  %v1818_v28 = vpop.permute.xlu1 %1817  ;;  %v1185_v30 = vmax.f32 %v1153_v39, 0.0  ;;  %v1120_v39 = vmul.f32 %v4765_v50, %v4719_v22 }
 0x270   : > { %5500 = vst [vmem:[#allocation2_spill] sm:$0xff] %v5040_v17  ;;  %v2576_v52 = vadd.f32 %v4727_v42, %v2544_v40  ;;  %2789 = vst.msk [vmem:[%s4986_s12 + $0x48] sm:$0xff] %vm744_vm2, %v1910_v54  ;;  %v1909_v9 = vsel %vm507_vm1, %v1183_v16, %v1818_v28  ;;  %v3407_v35 = vpop.f32.mrb[54].mxu1  ;;  %2688 = vrot.lane.b32.xlu1 %v2606_v57, %s3473_s21  ;;  %v1155_v40 = vadd.f32 %v4727_v42, %v1117_v29 }
 0x271   : > { %v2609_v19 = vmax.f32 %v2577_v20, 0.0  ;;  %2788 = vst.msk [vmem:[%s4986_s12 + $0x40] sm:$0xff] %vm744_vm2, %v1909_v9  ;;  %v2547_v45 = vmul.f32 %v3407_v35, %v4719_v22  ;;  %v2475_v25 = vpop.f32.mrb[55].mxu1  ;;  %v1188_v35 = vmax.f32 %v1156_v43, 0.0 }
 0x272   : > { %v2608_v17 = vmax.f32 %v2576_v52, 0.0  ;;  %v2546_v54 = vmul.f32 %v4719_v22, %v2475_v25  ;;  %v5054_v16 = vpop.f32.mrb[58].mxu0  ;;  %v1824_v57 = vpop.permute.xlu0 %1823  ;;  %v1187_v25 = vmax.f32 %v1155_v40, 0.0 }
 0x273   : > { %v2579_v58 = vadd.f32 %v4727_v42, %v2547_v45  ;;  %v1912_v4 = vsel %vm507_vm1, %v1186_v8, %v1824_v57  ;;  %v5058_v20 = vpop.f32.mrb[59].mxu0  ;;  %2694 = vrot.lane.b32.xlu0 %v2609_v19, %s3473_s21  ;;  %v1822_v28 = vpop.permute.xlu1 %1821  ;;  %v1119_v8 = vmul.f32 %v4719_v22, %v4768_v27 }
 0x274   : > { %v2578_v29 = vadd.f32 %v4727_v42, %v2546_v54  ;;  %2793 = vst.msk [vmem:[%s4986_s12 + $0x68] sm:$0xff] %vm744_vm2, %v1912_v4  ;;  %v1911_v52 = vsel %vm507_vm1, %v1185_v30, %v1822_v28  ;;  %v3410_v9 = vpop.f32.mrb[56].mxu1  ;;  %2692 = vrot.lane.b32.xlu1 %v2608_v17, %s3473_s21  ;;  %v1158_v28 = vadd.f32 %v4727_v42, %v1120_v39 }
 0x275   : > { %v2611_v45 = vmax.f32 %v2579_v58, 0.0  ;;  %2792 = vst.msk [vmem:[%s4986_s12 + $0x60] sm:$0xff] %vm744_vm2, %v1911_v52  ;;  %v2549_v19 = vmul.f32 %v3410_v9, %v4719_v22  ;;  %v2485_v50 = vpop.f32.mrb[57].mxu1  ;;  %v1157_v9 = vadd.f32 %v4727_v42, %v1119_v8 }
 0x276   : > { %v2610_v54 = vmax.f32 %v2578_v29, 0.0  ;;  %v2548_v57 = vmul.f32 %v4719_v22, %v2485_v50  ;;  %v5074_v4 = vpop.f32.mrb[60].mxu0  ;;  %v1828_v30 = vpop.permute.xlu0 %1827  ;;  %v1121_v50 = vmul.f32 %v4719_v22, %v4780_v46  ;;  %v1190_v8 = vmax.f32 %v1158_v28, 0.0 }
 0x277   : > { %v2581_v17 = vadd.f32 %v4727_v42, %v2549_v19  ;;  %v1914_v43 = vsel %vm507_vm1, %v1188_v35, %v1828_v30  ;;  %v5078_v27 = vpop.f32.mrb[61].mxu0  ;;  %2698 = vrot.lane.b32.xlu0 %v2611_v45, %s3473_s21  ;;  %v1826_v58 = vpop.permute.xlu1 %1825  ;;  %v1122_v35 = vmul.f32 %v4777_v23, %v4719_v22 }
 0x278   : > { %v2580_v40 = vadd.f32 %v4727_v42, %v2548_v57  ;;  %2797 = vst.msk [vmem:[%s4986_s12 + $0x88] sm:$0xff] %vm744_vm2, %v1914_v43  ;;  %v1913_v29 = vsel %vm507_vm1, %v1187_v25, %v1826_v58  ;;  %v3413_v52 = vpop.f32.mrb[58].mxu1  ;;  %2696 = vrot.lane.b32.xlu1 %v2610_v54, %s3473_s21 }
 0x279   : > { %v2613_v19 = vmax.f32 %v2581_v17, 0.0  ;;  %2796 = vst.msk [vmem:[%s4986_s12 + $0x80] sm:$0xff] %vm744_vm2, %v1913_v29  ;;  %v2551_v45 = vmul.f32 %v3413_v52, %v4719_v22  ;;  %v2495_v39 = vpop.f32.mrb[59].mxu1  ;;  %v1189_v17 = vmax.f32 %v1157_v9, 0.0  ;;  %v1160_v43 = vadd.f32 %v4727_v42, %v1122_v35 }
 0x27a   : > { %v2612_v57 = vmax.f32 %v2580_v40, 0.0  ;;  %v2550_v25 = vmul.f32 %v4719_v22, %v2495_v39  ;;  %v1159_v52 = vadd.f32 %v4727_v42, %v1121_v50  ;;  %v1124_v35 = vmul.f32 %v4785_v14, %v4719_v22 }
 0x27b   : > { %v2583_v30 = vadd.f32 %v4727_v42, %v2551_v45  ;;  %2702 = vrot.lane.b32.xlu0 %v2613_v19, %s3473_s21 }
 0x27c   : > { %v2582_v23 = vadd.f32 %v4727_v42, %v2550_v25  ;;  %v3416_v54 = vpop.f32.mrb[60].mxu1  ;;  %2700 = vrot.lane.b32.xlu1 %v2612_v57, %s3473_s21  ;;  %v1192_v57 = vmax.f32 %v1160_v43, 0.0  ;;  %v1126_v43 = vmul.f32 %v4797_v63, %v4719_v22 }
 0x27d   : > { %v2615_v58 = vmax.f32 %v2583_v30, 0.0  ;;  %v2553_v46 = vmul.f32 %v3416_v54, %v4719_v22  ;;  %v2505_v40 = vpop.f32.mrb[61].mxu1  ;;  %v1832_v29 = vpop.permute.xlu0 %1831  ;;  %v1123_v30 = vmul.f32 %v4719_v22, %v4788_v36 }
 0x27e   : > { %v2614_v45 = vmax.f32 %v2582_v23, 0.0  ;;  %v2552_v28 = vmul.f32 %v4719_v22, %v2505_v40  ;;  %v1916_v19 = vsel %vm507_vm1, %v1190_v8, %v1832_v29  ;;  %v1830_v39 = vpop.permute.xlu1 %1829  ;;  %v1191_v23 = vmax.f32 %v1159_v52, 0.0 }
 0x27f   : > { %v2585_v25 = vadd.f32 %v4727_v42, %v2553_v46  ;;  %2801 = vst.msk [vmem:[%s4986_s12 + $0xa8] sm:$0xff] %vm744_vm2, %v1916_v19  ;;  %v1915_v9 = vsel %vm507_vm1, %v1189_v17, %v1830_v39  ;;  %2706 = vrot.lane.b32.xlu0 %v2615_v58, %s3473_s21  ;;  %v1162_v46 = vadd.f32 %v4727_v42, %v1124_v35 }
 0x280   : > { %v2584_v50 = vadd.f32 %v4727_v42, %v2552_v28  ;;  %2800 = vst.msk [vmem:[%s4986_s12 + $0xa0] sm:$0xff] %vm744_vm2, %v1915_v9  ;;  %2704 = vrot.lane.b32.xlu1 %v2614_v45, %s3473_s21  ;;  %v1161_v36 = vadd.f32 %v4727_v42, %v1123_v30  ;;  %v1125_v29 = vmul.f32 %v4719_v22, %v4800_v62 }
 0x281   : > { %v2617_v8 = vmax.f32 %v2585_v25, 0.0  ;;  %v1194_v52 = vmax.f32 %v1162_v46, 0.0  ;;  %v1164_v28 = vadd.f32 %v4727_v42, %v1126_v43  ;;  %v1128_v35 = vmul.f32 %v4805_v53, %v4719_v22 }
 0x282   : > { %v2616_v54 = vmax.f32 %v2584_v50, 0.0  ;;  %v1836_v17 = vpop.permute.xlu0 %1835  ;;  %v1193_v45 = vmax.f32 %v1161_v36, 0.0  ;;  %v1163_v39 = vadd.f32 %v4727_v42, %v1125_v29  ;;  %v1127_v50 = vmul.f32 %v4719_v22, %v4808_v5 }
 0x283   : > { %v1918_v58 = vsel %vm507_vm1, %v1192_v57, %v1836_v17  ;;  %2710 = vrot.lane.b32.xlu0 %v2617_v8, %s3473_s21  ;;  %v1834_v14 = vpop.permute.xlu1 %1833  ;;  %v1196_v62 = vmax.f32 %v1164_v28, 0.0  ;;  %v1129_v5 = vmul.f32 %v4719_v22, %v4820_v61  ;;  %v1131_v28 = vmul.f32 %v4719_v22, %v4828_v41 }
 0x284   : > { %2805 = vst.msk [vmem:[%s4986_s12 + $0xc8] sm:$0xff] %vm744_vm2, %v1918_v58  ;;  %v1917_v40 = vsel %vm507_vm1, %v1191_v23, %v1834_v14  ;;  %2708 = vrot.lane.b32.xlu1 %v2616_v54, %s3473_s21  ;;  %v1195_v57 = vmax.f32 %v1163_v39, 0.0  ;;  %v1166_v54 = vadd.f32 %v4727_v42, %v1128_v35  ;;  %v1165_v53 = vadd.f32 %v4727_v42, %v1127_v50 }
 0x285   : > { %2804 = vst.msk [vmem:[%s4986_s12 + $0xc0] sm:$0xff] %vm744_vm2, %v1917_v40  ;;  %v1130_v58 = vmul.f32 %v4817_v37, %v4719_v22  ;;  %v1167_v43 = vadd.f32 %v4727_v42, %v1129_v5  ;;  %v1133_v41 = vmul.f32 %v4719_v22, %v4840_v59 }
 0x286   : > { %v1198_v14 = vmax.f32 %v1166_v54, 0.0  ;;  %v1197_v46 = vmax.f32 %v1165_v53, 0.0 }
 0x287   : > { %v1168_v40 = vadd.f32 %v4727_v42, %v1130_v58 }
 0x289   : > { %v1840_v19 = vpop.permute.xlu0 %1839  ;;  %v1200_v61 = vmax.f32 %v1168_v40, 0.0  ;;  %v5201_v40 = vld [vmem:[%s5448_s3] ss:$0 sm:$0xff] }
 0x28a   : > { %v1920_v25 = vsel %vm507_vm1, %v1194_v52, %v1840_v19  ;;  %v1838_v9 = vpop.permute.xlu1 %1837  ;;  %v1199_v19 = vmax.f32 %v1167_v43, 0.0 }
 0x28b   : > { %2809 = vst.msk [vmem:[%s4986_s12 + $0xe8] sm:$0xff] %vm744_vm2, %v1920_v25  ;;  %v1919_v63 = vsel %vm507_vm1, %v1193_v45, %v1838_v9  ;;  %v1132_v45 = vmul.f32 %v4825_v34, %v4719_v22  ;;  %v1169_v34 = vadd.f32 %v4727_v42, %v1131_v28 }
 0x28c   : > { %2808 = vst.msk [vmem:[%s4986_s12 + $0xe0] sm:$0xff] %vm744_vm2, %v1919_v63 }
 0x28d   : > { %v1170_v63 = vadd.f32 %v4727_v42, %v1132_v45 }
 0x28e   : > { %v1844_v30 = vpop.permute.xlu0 %1843 }
 0x28f   : > { %v1922_v8 = vsel %vm507_vm1, %v1196_v62, %v1844_v30  ;;  %v1842_v23 = vpop.permute.xlu1 %1841  ;;  %v1134_v62 = vmul.f32 %v4837_v47, %v4719_v22  ;;  %v1202_v50 = vmax.f32 %v1170_v63, 0.0  ;;  %v5189_v22 = vld [vmem:[%s5447_s2] ss:$0 sm:$0xff] }
 0x290   : > { %2813 = vst.msk [vmem:[%s4986_s12 + $0x108] sm:$0xff] %vm744_vm2, %v1922_v8  ;;  %v1921_v17 = vsel %vm507_vm1, %v1195_v57, %v1842_v23  ;;  %v1201_v57 = vmax.f32 %v1169_v34, 0.0  ;;  %v1171_v23 = vadd.f32 %v4727_v42, %v1133_v41  ;;  %v1136_v59 = vmul.f32 %v5189_v22, %v4845_v0 }
 0x291   : > { %2812 = vst.msk [vmem:[%s4986_s12 + $0x100] sm:$0xff] %vm744_vm2, %v1921_v17  ;;  %v1172_v30 = vadd.f32 %v4727_v42, %v1134_v62  ;;  %v1135_v53 = vmul.f32 %v5189_v22, %v4848_v12  ;;  %v1138_v43 = vmul.f32 %v5189_v22, %v4857_v2 }
 0x292   : > { %v1203_v58 = vmax.f32 %v1171_v23, 0.0 }
 0x293   : > { %v1204_v42 = vmax.f32 %v1172_v30, 0.0  ;;  %v1173_v12 = vadd.f32 %v5201_v40, %v1135_v53  ;;  %v1176_v45 = vadd.f32 %v5201_v40, %v1138_v43  ;;  %v2183_v30 = vmul.f32 %v5189_v22, %v4876_v32 }
 0x294   : > { %v2185_v32 = vmul.f32 %v5189_v22, %v4885_v26  ;;  %v2188_v26 = vmul.f32 %v5189_v22, %v4890_v55 }
 0x295   : > { %v1848_v36 = vpop.permute.xlu0 %1847 }
 0x296   : > { %v1924_v29 = vsel %vm507_vm1, %v1198_v14, %v1848_v36  ;;  %v1846_v52 = vpop.permute.xlu1 %1845  ;;  %v1174_v36 = vadd.f32 %v5201_v40, %v1136_v59 }
 0x297   : > { %2817 = vst.msk [vmem:[%s4986_s12 + $0x128] sm:$0xff] %vm744_vm2, %v1924_v29  ;;  %v1923_v37 = vsel %vm507_vm1, %v1197_v46, %v1846_v52  ;;  %v1137_v29 = vmul.f32 %v5189_v22, %v4860_v33  ;;  %v1208_v33 = vmax.f32 %v1176_v45, 0.0 }
 0x298   : > { %2816 = vst.msk [vmem:[%s4986_s12 + $0x120] sm:$0xff] %vm744_vm2, %v1923_v37  ;;  %v1206_v52 = vmax.f32 %v1174_v36, 0.0  ;;  %v1205_v37 = vmax.f32 %v1173_v12, 0.0 }
 0x299   : > { %v1175_v28 = vadd.f32 %v5201_v40, %v1137_v29  ;;  %v2217_v29 = vadd.f32 %v5201_v40, %v2185_v32  ;;  %v2194_v32 = vmul.f32 %v5189_v22, %v4920_v11 }
 0x29a   : > { %v1852_v39 = vpop.permute.xlu0 %1851 }
 0x29b   : > { %v1926_v25 = vsel %vm507_vm1, %v1200_v61, %v1852_v39  ;;  %v1850_v9 = vpop.permute.xlu1 %1849  ;;  %v1207_v63 = vmax.f32 %v1175_v28, 0.0  ;;  %v2226_v11 = vadd.f32 %v5201_v40, %v2194_v32 }
 0x29c   : > { %2821 = vst.msk [vmem:[%s4986_s12 + $0x148] sm:$0xff] %vm744_vm2, %v1926_v25  ;;  %v1925_v35 = vsel %vm507_vm1, %v1199_v19, %v1850_v9  ;;  %v1140_v25 = vmul.f32 %v5189_v22, %v4865_v48  ;;  %v1139_v9 = vmul.f32 %v5189_v22, %v4868_v51 }
 0x29d   : > { %2820 = vst.msk [vmem:[%s4986_s12 + $0x140] sm:$0xff] %vm744_vm2, %v1925_v35 }
 0x29e   : > { %v1178_v41 = vadd.f32 %v5201_v40, %v1140_v25  ;;  %v2220_v25 = vadd.f32 %v5201_v40, %v2188_v26 }
 0x2a0   : > { %v1210_v23 = vmax.f32 %v1178_v41, 0.0  ;;  %v2252_v41 = vmax.f32 %v2220_v25, 0.0 }
 0x2a1   : > { %v1856_v8 = vpop.permute.xlu0 %1855 }
 0x2a2   : > { %v1928_v54 = vsel %vm507_vm1, %v1202_v50, %v1856_v8  ;;  %v1854_v17 = vpop.permute.xlu1 %1853  ;;  %v2184_v50 = vmul.f32 %v5189_v22, %v4874_v44  ;;  %v2186_v44 = vmul.f32 %v5189_v22, %v4882_v38 }
 0x2a3   : > { %2825 = vst.msk [vmem:[%s4986_s12 + $0x168] sm:$0xff] %vm744_vm2, %v1928_v54  ;;  %v1927_v47 = vsel %vm507_vm1, %v1201_v57, %v1854_v17  ;;  %v1177_v57 = vadd.f32 %v5201_v40, %v1139_v9 }
 0x2a4   : > { %2824 = vst.msk [vmem:[%s4986_s12 + $0x160] sm:$0xff] %vm744_vm2, %v1927_v47  ;;  %v2216_v54 = vadd.f32 %v5201_v40, %v2184_v50  ;;  %v2215_v47 = vadd.f32 %v5201_v40, %v2183_v30  ;;  %v2191_v30 = vmul.f32 %v5189_v22, %v4913_v15 }
 0x2a5   : > { %v1209_v17 = vmax.f32 %v1177_v57, 0.0 }
 0x2a6   : > { %v1860_v5 = vpop.permute.xlu0 %1859  ;;  %v2248_v36 = vmax.f32 %v2216_v54, 0.0  ;;  %v2247_v43 = vmax.f32 %v2215_v47, 0.0  ;;  %v2223_v15 = vadd.f32 %v5201_v40, %v2191_v30 }
 0x2a7   : > { %v1930_v14 = vsel %vm507_vm1, %v1204_v42, %v1860_v5  ;;  %v1858_v46 = vpop.permute.xlu1 %1857 }
 0x2a8   : > { %2829 = vst.msk [vmem:[%s4986_s12 + $0x188] sm:$0xff] %vm744_vm2, %v1930_v14  ;;  %v1929_v0 = vsel %vm507_vm1, %v1203_v58, %v1858_v46 }
 0x2a9   : > { %2828 = vst.msk [vmem:[%s4986_s12 + $0x180] sm:$0xff] %vm744_vm2, %v1929_v0  ;;  %v2218_v0 = vadd.f32 %v5201_v40, %v2186_v44 }
 0x2ad   : > { %v1864_v61 = vpop.permute.xlu0 %1863 }
 0x2ae   : > { %v1932_v19 = vsel %vm507_vm1, %v1206_v52, %v1864_v61  ;;  %v1862_v39 = vpop.permute.xlu1 %1861  ;;  %v2187_v52 = vmul.f32 %v5189_v22, %v4893_v31  ;;  %v2190_v31 = vmul.f32 %v5189_v22, %v4900_v7 }
 0x2af   : > { %2833 = vst.msk [vmem:[%s4986_s12 + $0x1a8] sm:$0xff] %vm744_vm2, %v1932_v19  ;;  %v1931_v2 = vsel %vm507_vm1, %v1205_v37, %v1862_v39 }
 0x2b0   : > { %2832 = vst.msk [vmem:[%s4986_s12 + $0x1a0] sm:$0xff] %vm744_vm2, %v1931_v2  ;;  %v2250_v2 = vmax.f32 %v2218_v0, 0.0  ;;  %v2219_v9 = vadd.f32 %v5201_v40, %v2187_v52  ;;  %v2222_v50 = vadd.f32 %v5201_v40, %v2190_v31  ;;  %v2195_v0 = vmul.f32 %v5189_v22, %v4933_v3  ;;  %v5502_v31 = vld [vmem:[#allocation8_spill] sm:$0xff] }
 0x2b1   : > { %v2258_v52 = vmax.f32 %v2226_v11, 0.0 }
 0x2b2   : > { %v1868_v35 = vpop.permute.xlu0 %1867  ;;  %v2254_v47 = vmax.f32 %v2222_v50, 0.0  ;;  %v2227_v3 = vadd.f32 %v5201_v40, %v2195_v0  ;;  %v2206_v0 = vmul.f32 %v5189_v22, %v5014_v60 }
 0x2b3   : > { %v1934_v34 = vsel %vm507_vm1, %v1208_v33, %v1868_v35  ;;  %v1866_v62 = vpop.permute.xlu1 %1865  ;;  %v2249_v33 = vmax.f32 %v2217_v29, 0.0 }
 0x2b4   : > { %2837 = vst.msk [vmem:[%s4986_s12 + $0x1c8] sm:$0xff] %vm744_vm2, %v1934_v34  ;;  %v1933_v48 = vsel %vm507_vm1, %v1207_v63, %v1866_v62  ;;  %v2189_v63 = vmul.f32 %v5189_v22, %v4903_v10  ;;  %v2251_v10 = vmax.f32 %v2219_v9, 0.0  ;;  %v2259_v9 = vmax.f32 %v2227_v3, 0.0 }
 0x2b5   : > { %2836 = vst.msk [vmem:[%s4986_s12 + $0x1c0] sm:$0xff] %vm744_vm2, %v1933_v48  ;;  %v5238_v51 = vpop.f32.mrb[62].mxu0  ;;  %v2192_v48 = vmul.f32 %v5189_v22, %v4910_v56  ;;  %v2238_v60 = vadd.f32 %v5201_v40, %v2206_v0 }
 0x2b6   : > { %v5240_v8 = vpop.f32.mrb[63].mxu0  ;;  %v2221_v57 = vadd.f32 %v5201_v40, %v2189_v63 }
 0x2b7   : > { %v2224_v56 = vadd.f32 %v5201_v40, %v2192_v48 }
 0x2b9   : > { %v1872_v59 = vpop.permute.xlu0 %1871  ;;  %v3419_v42 = vpop.f32.mrb[62].mxu1 }
 0x2ba   : > { %v1936_v53 = vsel %vm507_vm1, %v1210_v23, %v1872_v59  ;;  %v2555_v58 = vmul.f32 %v5189_v22, %v3419_v42  ;;  %v2515_v5 = vpop.f32.mrb[63].mxu1  ;;  %v1870_v14 = vpop.permute.xlu1 %1869  ;;  %v2253_v59 = vmax.f32 %v2221_v57, 0.0  ;;  %v2193_v42 = vmul.f32 %v5189_v22, %v4923_v24  ;;  %v5504_v57 = vld [vmem:[#allocation7_spill] sm:$0xff] }
 0x2bb   : > { %2841 = vst.msk [vmem:[%s4986_s12 + $0x1e8] sm:$0xff] %vm744_vm2, %v1936_v53  ;;  %v2554_v46 = vmul.f32 %v5189_v22, %v2515_v5  ;;  %v1935_v38 = vsel %vm507_vm1, %v1209_v17, %v1870_v14  ;;  %v2202_v30 = vmul.f32 %v5189_v22, %v5504_v57 }
 0x2bc   : > { %v2587_v12 = vadd.f32 %v5201_v40, %v2555_v58  ;;  %2840 = vst.msk [vmem:[%s4986_s12 + $0x1e0] sm:$0xff] %vm744_vm2, %v1935_v38  ;;  %v2196_v38 = vmul.f32 %v5189_v22, %v4930_v21  ;;  %v2225_v24 = vadd.f32 %v5201_v40, %v2193_v42 }
 0x2bd   : > { %v2586_v37 = vadd.f32 %v5201_v40, %v2554_v46  ;;  %v2655_v45 = vpop.permute.xlu0 %2654  ;;  %v2256_v46 = vmax.f32 %v2224_v56, 0.0  ;;  %v2234_v42 = vadd.f32 %v5201_v40, %v2202_v30 }
 0x2be   : > { %v2619_v61 = vmax.f32 %v2587_v12, 0.0  ;;  %v2749_v28 = vsel %vm507_vm1, %v2248_v36, %v2655_v45  ;;  %v2653_v19 = vpop.permute.xlu1 %2652  ;;  %v2255_v36 = vmax.f32 %v2223_v15, 0.0  ;;  %v2228_v21 = vadd.f32 %v5201_v40, %v2196_v38 }
 0x2bf   : > { %v2618_v55 = vmax.f32 %v2586_v37, 0.0  ;;  %2783 = vst.msk [vmem:[%s4986_s12 + $0x18] sm:$0xff] %vm744_vm2, %v2749_v28  ;;  %v2748_v39 = vsel %vm507_vm1, %v2247_v43, %v2653_v19  ;;  %v2198_v37 = vmul.f32 %v5189_v22, %v4940_v6  ;;  %v2257_v45 = vmax.f32 %v2225_v24, 0.0 }
 0x2c0   : > { %2782 = vst.msk [vmem:[%s4986_s12 + $0x10] sm:$0xff] %vm744_vm2, %v2748_v39  ;;  %2714 = vrot.lane.b32.xlu0 %v2619_v61, %s3473_s21  ;;  %v5501_v61 = vld [vmem:[#allocation5_spill] sm:$0xff]  ;;  %v2260_v25 = vmax.f32 %v2228_v21, 0.0  ;;  %v2266_v24 = vmax.f32 %v2234_v42, 0.0 }
 0x2c1   : > { %v2659_v35 = vpop.permute.xlu0 %2658  ;;  %2712 = vrot.lane.b32.xlu1 %v2618_v55, %s3473_s21  ;;  %v2197_v28 = vmul.f32 %v5189_v22, %v5501_v61  ;;  %v2230_v6 = vadd.f32 %v5201_v40, %v2198_v37  ;;  %v5506_v61 = vld [vmem:[#allocation2_spill] sm:$0xff] }
 0x2c2   : > { %v2751_v34 = vsel %vm507_vm1, %v2250_v2, %v2659_v35  ;;  %v2657_v62 = vpop.permute.xlu1 %2656  ;;  %v5503_v35 = vld [vmem:[#allocation6_spill] sm:$0xff] }
 0x2c3   : > { %2787 = vst.msk [vmem:[%s4986_s12 + $0x38] sm:$0xff] %vm744_vm2, %v2751_v34  ;;  %v2750_v7 = vsel %vm507_vm1, %v2249_v33, %v2657_v62  ;;  %v2200_v33 = vmul.f32 %v5189_v22, %v5502_v31  ;;  %v2229_v63 = vadd.f32 %v5201_v40, %v2197_v28  ;;  %v2199_v34 = vmul.f32 %v5189_v22, %v5503_v35 }
 0x2c4   : > { %2786 = vst.msk [vmem:[%s4986_s12 + $0x30] sm:$0xff] %vm744_vm2, %v2750_v7  ;;  %v2262_v48 = vmax.f32 %v2230_v6, 0.0  ;;  %v2207_v28 = vmul.f32 %v5189_v22, %v5506_v61  ;;  %v2210_v6 = vmul.f32 %v5189_v22, %v5054_v16 }
 0x2c5   : > { %v2663_v23 = vpop.permute.xlu0 %2662 }
 0x2c6   : > { %v2753_v54 = vsel %vm507_vm1, %v2252_v41, %v2663_v23  ;;  %v2661_v44 = vpop.permute.xlu1 %2660  ;;  %v2261_v23 = vmax.f32 %v2229_v63, 0.0  ;;  %v2242_v16 = vadd.f32 %v5201_v40, %v2210_v6 }
 0x2c7   : > { %2791 = vst.msk [vmem:[%s4986_s12 + $0x58] sm:$0xff] %vm744_vm2, %v2753_v54  ;;  %v2752_v17 = vsel %vm507_vm1, %v2251_v10, %v2661_v44  ;;  %v2232_v10 = vadd.f32 %v5201_v40, %v2200_v33  ;;  %v2231_v54 = vadd.f32 %v5201_v40, %v2199_v34  ;;  %v5505_v44 = vld [vmem:[#allocation11_spill] sm:$0xff]  ;;  %v2239_v33 = vadd.f32 %v5201_v40, %v2207_v28 }
 0x2c8   : > { %2790 = vst.msk [vmem:[%s4986_s12 + $0x50] sm:$0xff] %vm744_vm2, %v2752_v17  ;;  %v2201_v17 = vmul.f32 %v5189_v22, %v5505_v44 }
 0x2c9   : > { %v2667_v53 = vpop.permute.xlu0 %2666  ;;  %v2264_v15 = vmax.f32 %v2232_v10, 0.0 }
 0x2ca   : > { %v2755_v58 = vsel %vm507_vm1, %v2254_v47, %v2667_v53  ;;  %v2665_v5 = vpop.permute.xlu1 %2664  ;;  %v2204_v53 = vmul.f32 %v5189_v22, %v4992_v49 }
 0x2cb   : > { %2795 = vst.msk [vmem:[%s4986_s12 + $0x78] sm:$0xff] %vm744_vm2, %v2755_v58  ;;  %v2754_v14 = vsel %vm507_vm1, %v2253_v59, %v2665_v5  ;;  %v2263_v58 = vmax.f32 %v2231_v54, 0.0  ;;  %v2233_v5 = vadd.f32 %v5201_v40, %v2201_v17  ;;  %v2274_v54 = vmax.f32 %v2242_v16, 0.0 }
 0x2cc   : > { %2794 = vst.msk [vmem:[%s4986_s12 + $0x70] sm:$0xff] %vm744_vm2, %v2754_v14  ;;  %v2203_v14 = vmul.f32 %v5189_v22, %v4996_v1  ;;  %v2236_v49 = vadd.f32 %v5201_v40, %v2204_v53 }
 0x2cd   : > { %v2671_v26 = vpop.permute.xlu0 %2670 }
 0x2ce   : > { %v2757_v12 = vsel %vm507_vm1, %v2256_v46, %v2671_v26  ;;  %v2669_v43 = vpop.permute.xlu1 %2668  ;;  %v2265_v26 = vmax.f32 %v2233_v5, 0.0  ;;  %v2235_v1 = vadd.f32 %v5201_v40, %v2203_v14  ;;  %v2268_v37 = vmax.f32 %v2236_v49, 0.0 }
 0x2cf   : > { %2799 = vst.msk [vmem:[%s4986_s12 + $0x98] sm:$0xff] %vm744_vm2, %v2757_v12  ;;  %v2756_v29 = vsel %vm507_vm1, %v2255_v36, %v2669_v43  ;;  %v2205_v12 = vmul.f32 %v5189_v22, %v5018_v18  ;;  %v2214_v14 = vmul.f32 %v5189_v22, %v5238_v51 }
 0x2d0   : > { %2798 = vst.msk [vmem:[%s4986_s12 + $0x90] sm:$0xff] %vm744_vm2, %v2756_v29  ;;  %v2267_v3 = vmax.f32 %v2235_v1, 0.0 }
 0x2d1   : > { %v2675_v19 = vpop.permute.xlu0 %2674  ;;  %v2237_v18 = vadd.f32 %v5201_v40, %v2205_v12 }
 0x2d2   : > { %v2759_v55 = vsel %vm507_vm1, %v2258_v52, %v2675_v19  ;;  %v2673_v39 = vpop.permute.xlu1 %2672 }
 0x2d3   : > { %2803 = vst.msk [vmem:[%s4986_s12 + $0xb8] sm:$0xff] %vm744_vm2, %v2759_v55  ;;  %v2758_v2 = vsel %vm507_vm1, %v2257_v45, %v2673_v39  ;;  %v2208_v45 = vmul.f32 %v5189_v22, %v5036_v13  ;;  %v2269_v31 = vmax.f32 %v2237_v18, 0.0 }
 0x2d4   : > { %2802 = vst.msk [vmem:[%s4986_s12 + $0xb0] sm:$0xff] %vm744_vm2, %v2758_v2 }
 0x2d5   : > { %v2679_v62 = vpop.permute.xlu0 %2678  ;;  %v2240_v13 = vadd.f32 %v5201_v40, %v2208_v45 }
 0x2d6   : > { %v2761_v7 = vsel %vm507_vm1, %v2260_v25, %v2679_v62  ;;  %v2677_v41 = vpop.permute.xlu1 %2676  ;;  %v2270_v25 = vmax.f32 %v2238_v60, 0.0 }
 0x2d7   : > { %2807 = vst.msk [vmem:[%s4986_s12 + $0xd8] sm:$0xff] %vm744_vm2, %v2761_v7  ;;  %v2760_v50 = vsel %vm507_vm1, %v2259_v9, %v2677_v41  ;;  %v2209_v9 = vmul.f32 %v5189_v22, %v5058_v20  ;;  %v2272_v7 = vmax.f32 %v2240_v13, 0.0  ;;  %v2212_v41 = vmul.f32 %v5189_v22, %v5074_v4 }
 0x2d8   : > { %2806 = vst.msk [vmem:[%s4986_s12 + $0xd0] sm:$0xff] %vm744_vm2, %v2760_v50  ;;  %v2271_v50 = vmax.f32 %v2239_v33, 0.0 }
 0x2d9   : > { %v2683_v47 = vpop.permute.xlu0 %2682  ;;  %v2241_v20 = vadd.f32 %v5201_v40, %v2209_v9  ;;  %v2244_v4 = vadd.f32 %v5201_v40, %v2212_v41 }
 0x2da   : > { %v2763_v56 = vsel %vm507_vm1, %v2262_v48, %v2683_v47  ;;  %v2681_v32 = vpop.permute.xlu1 %2680  ;;  %v2211_v48 = vmul.f32 %v5189_v22, %v5078_v27 }
 0x2db   : > { %2811 = vst.msk [vmem:[%s4986_s12 + $0xf8] sm:$0xff] %vm744_vm2, %v2763_v56  ;;  %v2762_v59 = vsel %vm507_vm1, %v2261_v23, %v2681_v32  ;;  %v2273_v44 = vmax.f32 %v2241_v20, 0.0 }
 0x2dc   : > { %2810 = vst.msk [vmem:[%s4986_s12 + $0xf0] sm:$0xff] %vm744_vm2, %v2762_v59  ;;  %v2243_v17 = vadd.f32 %v5201_v40, %v2211_v48  ;;  %v2276_v59 = vmax.f32 %v2244_v4, 0.0 }
 0x2dd   : > { %v2687_v46 = vpop.permute.xlu0 %2686 }
 0x2de   : > { %v2765_v11 = vsel %vm507_vm1, %v2264_v15, %v2687_v46  ;;  %v2685_v38 = vpop.permute.xlu1 %2684  ;;  %v2275_v15 = vmax.f32 %v2243_v17, 0.0  ;;  %v2213_v46 = vmul.f32 %v5189_v22, %v5240_v8 }
 0x2df   : > { %2815 = vst.msk [vmem:[%s4986_s12 + $0x118] sm:$0xff] %vm744_vm2, %v2765_v11  ;;  %v2764_v36 = vsel %vm507_vm1, %v2263_v58, %v2685_v38  ;;  %v2246_v11 = vadd.f32 %v5201_v40, %v2214_v14 }
 0x2e0   : > { %2814 = vst.msk [vmem:[%s4986_s12 + $0x110] sm:$0xff] %vm744_vm2, %v2764_v36  ;;  %v2245_v38 = vadd.f32 %v5201_v40, %v2213_v46 }
 0x2e1   : > { %v2691_v43 = vpop.permute.xlu0 %2690  ;;  %v2278_v36 = vmax.f32 %v2246_v11, 0.0 }
 0x2e2   : > { %v2767_v29 = vsel %vm507_vm1, %v2266_v24, %v2691_v43  ;;  %v2689_v52 = vpop.permute.xlu1 %2688  ;;  %v2277_v24 = vmax.f32 %v2245_v38, 0.0 }
 0x2e3   : > { %2819 = vst.msk [vmem:[%s4986_s12 + $0x138] sm:$0xff] %vm744_vm2, %v2767_v29  ;;  %v2766_v21 = vsel %vm507_vm1, %v2265_v26, %v2689_v52 }
 0x2e4   : > { %2818 = vst.msk [vmem:[%s4986_s12 + $0x130] sm:$0xff] %vm744_vm2, %v2766_v21 }
 0x2e5   : > { %v2695_v19 = vpop.permute.xlu0 %2694 }
 0x2e6   : > { %v2769_v55 = vsel %vm507_vm1, %v2268_v37, %v2695_v19  ;;  %v2693_v39 = vpop.permute.xlu1 %2692 }
 0x2e7   : > { %2823 = vst.msk [vmem:[%s4986_s12 + $0x158] sm:$0xff] %vm744_vm2, %v2769_v55  ;;  %v2768_v2 = vsel %vm507_vm1, %v2267_v3, %v2693_v39 }
 0x2e8   : > { %2822 = vst.msk [vmem:[%s4986_s12 + $0x150] sm:$0xff] %vm744_vm2, %v2768_v2 }
 0x2e9   : > { %v2699_v63 = vpop.permute.xlu0 %2698 }
 0x2ea   : > { %v2771_v35 = vsel %vm507_vm1, %v2270_v25, %v2699_v63  ;;  %v2697_v34 = vpop.permute.xlu1 %2696 }
 0x2eb   : > { %2827 = vst.msk [vmem:[%s4986_s12 + $0x178] sm:$0xff] %vm744_vm2, %v2771_v35  ;;  %v2770_v62 = vsel %vm507_vm1, %v2269_v31, %v2697_v34 }
 0x2ec   : > { %2826 = vst.msk [vmem:[%s4986_s12 + $0x170] sm:$0xff] %vm744_vm2, %v2770_v62 }
 0x2ed   : > { %v2703_v10 = vpop.permute.xlu0 %2702 }
 0x2ee   : > { %v2773_v57 = vsel %vm507_vm1, %v2272_v7, %v2703_v10  ;;  %v2701_v30 = vpop.permute.xlu1 %2700 }
 0x2ef   : > { %2831 = vst.msk [vmem:[%s4986_s12 + $0x198] sm:$0xff] %vm744_vm2, %v2773_v57  ;;  %v2772_v23 = vsel %vm507_vm1, %v2271_v50, %v2701_v30 }
 0x2f0   : > { %2830 = vst.msk [vmem:[%s4986_s12 + $0x190] sm:$0xff] %vm744_vm2, %v2772_v23 }
 0x2f1   : > { %v2707_v27 = vpop.permute.xlu0 %2706 }
 0x2f2   : > { %v2775_v47 = vsel %vm507_vm1, %v2274_v54, %v2707_v27  ;;  %v2705_v56 = vpop.permute.xlu1 %2704 }
 0x2f3   : > { %2835 = vst.msk [vmem:[%s4986_s12 + $0x1b8] sm:$0xff] %vm744_vm2, %v2775_v47  ;;  %v2774_v32 = vsel %vm507_vm1, %v2273_v44, %v2705_v56 }
 0x2f4   : > { %2834 = vst.msk [vmem:[%s4986_s12 + $0x1b0] sm:$0xff] %vm744_vm2, %v2774_v32 }
 0x2f5   : > { %v2711_v42 = vpop.permute.xlu0 %2710 }
 0x2f6   : > { %v2777_v53 = vsel %vm507_vm1, %v2276_v59, %v2711_v42  ;;  %v2709_v58 = vpop.permute.xlu1 %2708 }
 0x2f7   : > { %2839 = vst.msk [vmem:[%s4986_s12 + $0x1d8] sm:$0xff] %vm744_vm2, %v2777_v53  ;;  %v2776_v5 = vsel %vm507_vm1, %v2275_v15, %v2709_v58 }
 0x2f8   : > { %2838 = vst.msk [vmem:[%s4986_s12 + $0x1d0] sm:$0xff] %vm744_vm2, %v2776_v5 }
 0x332   : > { %v2715_v49 = vpop.permute.xlu0 %2714 }
 0x333   : > { %v2779_v0 = vsel %vm507_vm1, %v2278_v36, %v2715_v49  ;;  %v2713_v26 = vpop.permute.xlu1 %2712 }
 0x334   : > { %2843 = vst.msk [vmem:[%s4986_s12 + $0x1f8] sm:$0xff] %vm744_vm2, %v2779_v0  ;;  %v2778_v1 = vsel %vm507_vm1, %v2277_v24, %v2713_v26 }
 0x335   : > { %2842 = vst.msk [vmem:[%s4986_s12 + $0x1f0] sm:$0xff] %vm744_vm2, %v2778_v1 }
 0x336 PF: > { %s14_s15 = sadd.s32 1, %s3471_s15  }
 0x337   : > { %p11_p4 = scmp.ge.s32.totalorder %s14_s15, 4  }
 0x339   :  { %13 = sbr.rel (!%p11_p4) target bundleno = 1 (0x1), region = 69 }

</bundles_post_ra>
